<compile_context>
chip_gen: v7x
topology: tpu7x:2x2x1
jax: 0.10.0
libtpu: 0.0.40
codegen_flags: <defaults>
</compile_context>

<pallas_src>
import functools

import jax
import jax.numpy as jnp
from jax.experimental import pallas as pl
from jax.experimental.pallas import tpu as pltpu

LANE = 128


def _round_up(x, m):
    return (x + m - 1) // m * m


def _pick_m_tile(m, target=512):
    """Largest tile <= target that divides m (keeps blocks aligned, no row padding)."""
    for t in (target, 256, 128, 64, 32, 16, 8):
        if t <= m and m % t == 0:
            return t
    return m  # TODO(synk): ragged/odd M falls back to a single block.


# ---------------------------------------------------------------------------
# Kernels
# ---------------------------------------------------------------------------

def _matmul_stats_kernel(x_ref, w_ref, y_ref, ps_ref, pss_ref):
    """y = x @ w on the MXU (bf16 in, f32 acc); BN partial sums fused into the epilogue."""
    acc = jnp.dot(x_ref[...], w_ref[...], preferred_element_type=jnp.float32)
    y_ref[...] = acc.astype(y_ref.dtype)
    ps_ref[0] = jnp.sum(acc, axis=0, keepdims=True)
    pss_ref[0] = jnp.sum(acc * acc, axis=0, keepdims=True)


def matmul_stats(x2d, w, *, m_tile=512, out_dtype=jnp.bfloat16):
    """[M, K] @ [K, N] -> (y [M, N], per-tile channel sum, per-tile channel sumsq)."""
    M, K = x2d.shape
    _, Np = w.shape
    tm = _pick_m_tile(M, m_tile)
    gm = M // tm
    cost = pl.CostEstimate(
        flops=2 * M * K * Np, transcendentals=0,
        bytes_accessed=(M * K + K * Np + M * Np) * 2 + 2 * gm * Np * 4)
    return pl.pallas_call(
        _matmul_stats_kernel,
        out_shape=(jax.ShapeDtypeStruct((M, Np), out_dtype),
                   jax.ShapeDtypeStruct((gm, 1, Np), jnp.float32),
                   jax.ShapeDtypeStruct((gm, 1, Np), jnp.float32)),
        grid=(gm,),
        in_specs=[pl.BlockSpec((tm, K), lambda i: (i, 0)),
                  pl.BlockSpec((K, Np), lambda i: (0, 0))],
        out_specs=(pl.BlockSpec((tm, Np), lambda i: (i, 0)),
                   pl.BlockSpec((1, 1, Np), lambda i: (i, 0, 0)),
                   pl.BlockSpec((1, 1, Np), lambda i: (i, 0, 0))),
        compiler_params=pltpu.CompilerParams(dimension_semantics=("parallel",)),
        cost_estimate=cost,
    )(x2d, w)


def _conv3x3_stats_kernel(x_ref, w_ref, y_ref, ps_ref, pss_ref, acc_ref, *,
                          Ho, Wo, stride):
    """3x3 conv as 9 shifted-window matmuls accumulated in an f32 VMEM scratch."""
    acc_ref[...] = jnp.zeros_like(acc_ref)
    for kh in range(3):
        for kw in range(3):
            if stride == 1:
                win = x_ref[0, kh:kh + Ho, kw:kw + Wo, :]
            else:  # strided window via sublane-strided ref load
                win = x_ref[0, pl.ds(kh, Ho, stride), pl.ds(kw, Wo, stride), :]
            win = win.reshape(Ho * Wo, win.shape[-1])
            acc_ref[...] += jnp.dot(win, w_ref[kh * 3 + kw],
                                    preferred_element_type=jnp.float32)
    acc = acc_ref[...]
    y_ref[0] = acc.astype(y_ref.dtype)
    ps_ref[0] = jnp.sum(acc, axis=0, keepdims=True)
    pss_ref[0] = jnp.sum(acc * acc, axis=0, keepdims=True)


def conv3x3_stats(x_padded, w2, Ho, Wo, stride, *, out_dtype=jnp.bfloat16):
    """x_padded: (N, H+2, W+2, Cp) bf16 (spatial zero pad); w2: (9, Cp, Np) bf16."""
    N, Hp, Wp, Cp = x_padded.shape
    Np = w2.shape[-1]
    cost = pl.CostEstimate(
        flops=2 * N * Ho * Wo * 9 * Cp * Np, transcendentals=0,
        bytes_accessed=(N * Hp * Wp * Cp + 9 * Cp * Np + N * Ho * Wo * Np) * 2)
    y, ps, pss = pl.pallas_call(
        functools.partial(_conv3x3_stats_kernel, Ho=Ho, Wo=Wo, stride=stride),
        out_shape=(jax.ShapeDtypeStruct((N, Ho * Wo, Np), out_dtype),
                   jax.ShapeDtypeStruct((N, 1, Np), jnp.float32),
                   jax.ShapeDtypeStruct((N, 1, Np), jnp.float32)),
        grid=(N,),
        in_specs=[pl.BlockSpec((1, Hp, Wp, Cp), lambda n: (n, 0, 0, 0)),
                  pl.BlockSpec((9, Cp, Np), lambda n: (0, 0, 0))],
        out_specs=(pl.BlockSpec((1, Ho * Wo, Np), lambda n: (n, 0, 0)),
                   pl.BlockSpec((1, 1, Np), lambda n: (n, 0, 0)),
                   pl.BlockSpec((1, 1, Np), lambda n: (n, 0, 0))),
        scratch_shapes=[pltpu.VMEM((Ho * Wo, Np), jnp.float32)],
        compiler_params=pltpu.CompilerParams(dimension_semantics=("parallel",)),
        cost_estimate=cost,
    )(x_padded, w2)
    return y.reshape(N * Ho * Wo, Np), ps, pss


def _affine_kernel(y_ref, a_ref, b_ref, o_ref, *, relu):
    y = y_ref[...].astype(jnp.float32) * a_ref[...] + b_ref[...]
    if relu:
        y = jnp.maximum(y, 0.0)
    o_ref[...] = y.astype(o_ref.dtype)


def bn_apply(y2d, scale, shift, *, relu, out_dtype=jnp.bfloat16, m_tile=512):
    """Tiled per-channel affine (folded BN) with optional fused ReLU."""
    M, C = y2d.shape
    tm = _pick_m_tile(M, m_tile)
    return pl.pallas_call(
        functools.partial(_affine_kernel, relu=relu),
        out_shape=jax.ShapeDtypeStruct((M, C), out_dtype),
        grid=(M // tm,),
        in_specs=[pl.BlockSpec((tm, C), lambda i: (i, 0)),
                  pl.BlockSpec((1, C), lambda i: (0, 0)),
                  pl.BlockSpec((1, C), lambda i: (0, 0))],
        out_specs=pl.BlockSpec((tm, C), lambda i: (i, 0)),
        compiler_params=pltpu.CompilerParams(dimension_semantics=("parallel",)),
    )(y2d, scale, shift)


def _affine2_add_relu_kernel(y_ref, a_ref, b_ref, s_ref, sa_ref, sb_ref, o_ref):
    main = y_ref[...].astype(jnp.float32) * a_ref[...] + b_ref[...]
    sc = s_ref[...].astype(jnp.float32) * sa_ref[...] + sb_ref[...]
    o_ref[...] = jnp.maximum(main + sc, 0.0).astype(o_ref.dtype)


def bn_add_relu(y2d, scale, shift, s2d, s_scale, s_shift, *, m_tile=512):
    """relu(bn3(y) + bn_s(s)) fused in one tiled pass (identity shortcut: scale=1, shift=0)."""
    M, C = y2d.shape
    tm = _pick_m_tile(M, m_tile)
    return pl.pallas_call(
        _affine2_add_relu_kernel,
        out_shape=jax.ShapeDtypeStruct((M, C), jnp.float32),
        grid=(M // tm,),
        in_specs=[pl.BlockSpec((tm, C), lambda i: (i, 0)),
                  pl.BlockSpec((1, C), lambda i: (0, 0)),
                  pl.BlockSpec((1, C), lambda i: (0, 0)),
                  pl.BlockSpec((tm, C), lambda i: (i, 0)),
                  pl.BlockSpec((1, C), lambda i: (0, 0)),
                  pl.BlockSpec((1, C), lambda i: (0, 0))],
        out_specs=pl.BlockSpec((tm, C), lambda i: (i, 0)),
        compiler_params=pltpu.CompilerParams(dimension_semantics=("parallel",)),
    )(y2d, scale, shift, s2d, s_scale, s_shift)


# ---------------------------------------------------------------------------
# Wrapper-level glue (tiny per-channel math, one-time weight prep, layout)
# ---------------------------------------------------------------------------

def _bn_coeffs(ps, pss, gamma, beta, count, eps):
    """Fold training-mode BN (batch mean, biased batch var) into per-channel scale/shift."""
    s = jnp.sum(ps, axis=(0, 1))
    ss = jnp.sum(pss, axis=(0, 1))
    mean = s / count
    var = ss / count - mean * mean
    scale = gamma * jax.lax.rsqrt(var + eps)
    shift = beta - mean * scale
    return scale.reshape(1, -1), shift.reshape(1, -1)


def prepare_params(p, dtype=jnp.bfloat16):
    """One-time weight prep: [K, N] layout, channels zero-padded to 128 lanes, bf16."""
    width, cin = p['w1'].shape[:2]
    cout = p['w3'].shape[0]
    cin_p, wid_p, cout_p = (_round_up(c, LANE) for c in (cin, width, cout))

    def pad_kn(w_oi, K, N):  # torch 1x1 conv weight (O, I) -> padded (K=I, N=O)
        o, i = w_oi.shape
        return jnp.zeros((K, N), dtype).at[:i, :o].set(w_oi.T.astype(dtype))

    def pad_c(v, C):         # zero-pad gamma/beta so padded channels stay exactly 0
        return jnp.zeros((C,), jnp.float32).at[:v.shape[0]].set(v.astype(jnp.float32))

    prep = {
        'w1': pad_kn(p['w1'][:, :, 0, 0], cin_p, wid_p),
        'w3': pad_kn(p['w3'][:, :, 0, 0], wid_p, cout_p),
        'g1': pad_c(p['g1'], wid_p), 'b1': pad_c(p['b1'], wid_p),
        'g2': pad_c(p['g2'], wid_p), 'b2': pad_c(p['b2'], wid_p),
        'g3': pad_c(p['g3'], cout_p), 'b3': pad_c(p['b3'], cout_p),
    }
    # conv2 weights: OIHW -> (9 taps, K=I, N=O), zero-padded.
    w2 = jnp.transpose(p['w2'], (2, 3, 1, 0)).reshape(9, width, width).astype(dtype)
    prep['w2'] = jnp.zeros((9, wid_p, wid_p), dtype).at[:, :width, :width].set(w2)
    if 'ws' in p:
        prep['ws'] = pad_kn(p['ws'][:, :, 0, 0], cin_p, cout_p)
        prep['gs'] = pad_c(p['gs'], cout_p)
        prep['bs'] = pad_c(p['bs'], cout_p)
    return prep


def residual_block_pallas(x_nchw, prep, *, out_channels, stride=1, eps=1e-5):
    N, Cin, H, W = x_nchw.shape
    cin_p, wid_p = prep['w1'].shape
    cout_p = prep['w3'].shape[1]
    Ho, Wo = (H - 1) // stride + 1, (W - 1) // stride + 1

    # NCHW -> channel-padded, lane-dense (N*H*W, cin_p) bf16 slab.
    x_nhwc = jnp.transpose(x_nchw, (0, 2, 3, 1)).astype(jnp.bfloat16)
    x_p = jnp.zeros((N, H, W, cin_p), jnp.bfloat16).at[..., :Cin].set(x_nhwc)
    x2d = x_p.reshape(N * H * W, cin_p)

    # conv1 (1x1) -> bn1 -> relu; BN stats come out of the matmul epilogue.
    y1, ps1, pss1 = matmul_stats(x2d, prep['w1'])
    a1, b1 = _bn_coeffs(ps1, pss1, prep['g1'], prep['b1'], N * H * W, eps)
    h1 = bn_apply(y1, a1, b1, relu=True)                            # (N*H*W, wid_p) bf16

    # conv2 (3x3, pad=1, stride) -> bn2 -> relu; 9-tap accumulating kernel (no im2col).
    hp = jnp.pad(h1.reshape(N, H, W, wid_p), ((0, 0), (1, 1), (1, 1), (0, 0)))
    y2, ps2, pss2 = conv3x3_stats(hp, prep['w2'], Ho, Wo, stride)
    a2, b2 = _bn_coeffs(ps2, pss2, prep['g2'], prep['b2'], N * Ho * Wo, eps)
    h2 = bn_apply(y2, a2, b2, relu=True)                            # (N*Ho*Wo, wid_p) bf16

    # conv3 (1x1); bn3 + shortcut-bn + residual add + relu are fused in the final kernel.
    y3, ps3, pss3 = matmul_stats(h2, prep['w3'])
    a3, b3 = _bn_coeffs(ps3, pss3, prep['g3'], prep['b3'], N * Ho * Wo, eps)

    if Cin != out_channels:      # projection shortcut: 1x1 strided conv + bn
        xs = x2d if stride == 1 else x_p[:, ::stride, ::stride, :].reshape(N * Ho * Wo, cin_p)
        ys, ps_s, pss_s = matmul_stats(xs, prep['ws'])
        sa, sb = _bn_coeffs(ps_s, pss_s, prep['gs'], prep['bs'], N * Ho * Wo, eps)
        s2d = ys
    else:
        # identity shortcut — same condition as the PyTorch module (in==out channels);
        # as in the original module it assumes stride == 1 in that case.
        s2d = x2d
        sa = jnp.ones((1, cout_p), jnp.float32)
        sb = jnp.zeros((1, cout_p), jnp.float32)

    out = bn_add_relu(y3, a3, b3, s2d, sa, sb)                      # (N*Ho*Wo, cout_p) f32
    out = out.reshape(N, Ho, Wo, cout_p)[..., :out_channels]
    return jnp.transpose(out, (0, 3, 1, 2))                         # back to NCHW


# ---------------------------------------------------------------------------
# Pure-JAX reference (mirrors the PyTorch module, training-mode BN)
# ---------------------------------------------------------------------------

def residual_block_ref(x, p, stride=1, eps=1e-5):
    def conv(x, w, s=1, pad='VALID'):
        return jax.lax.conv_general_dilated(
            x, w, (s, s), pad, dimension_numbers=('NCHW', 'OIHW', 'NCHW'))

    def bn(x, g, b):
        mean = jnp.mean(x, axis=(0, 2, 3), keepdims=True)
        var = jnp.mean((x - mean) ** 2, axis=(0, 2, 3), keepdims=True)
        return (x - mean) / jnp.sqrt(var + eps) * g.reshape(1, -1, 1, 1) + b.reshape(1, -1, 1, 1)

    out = jax.nn.relu(bn(conv(x, p['w1']), p['g1'], p['b1']))
    out = jax.nn.relu(bn(conv(out, p['w2'], stride, ((1, 1), (1, 1))), p['g2'], p['b2']))
    out = bn(conv(out, p['w3']), p['g3'], p['b3'])
    if x.shape[1] != p['w3'].shape[0]:
        sc = bn(conv(x, p['ws'], stride), p['gs'], p['bs'])
    else:
        sc = x
    return jax.nn.relu(out + sc)


# ---------------------------------------------------------------------------

if __name__ == "__main__":
    key = jax.random.PRNGKey(0)
    N, Cin, H, W = 2, 4, 16, 16
    Cout, stride = 16, 1
    width = Cout // 4

    k = jax.random.split(key, 5)
    # Deterministic parameter init (PyTorch shapes: conv weights OIHW, BN gamma=1/beta=0).
    p = {
        'w1': jax.random.normal(k[0], (width, Cin, 1, 1), jnp.float32) * 0.3,
        'w2': jax.random.normal(k[1], (width, width, 3, 3), jnp.float32) * 0.2,
        'w3': jax.random.normal(k[2], (Cout, width, 1, 1), jnp.float32) * 0.3,
        'ws': jax.random.normal(k[3], (Cout, Cin, 1, 1), jnp.float32) * 0.3,
        'g1': jnp.ones((width,), jnp.float32), 'b1': jnp.zeros((width,), jnp.float32),
        'g2': jnp.ones((width,), jnp.float32), 'b2': jnp.zeros((width,), jnp.float32),
        'g3': jnp.ones((Cout,), jnp.float32), 'b3': jnp.zeros((Cout,), jnp.float32),
        'gs': jnp.ones((Cout,), jnp.float32), 'bs': jnp.zeros((Cout,), jnp.float32),
    }
    x = jax.random.normal(k[4], (N, Cin, H, W), jnp.float32)

    prep = prepare_params(p)   # one-time weight prep, hoisted out of the forward path
    fwd = jax.jit(functools.partial(residual_block_pallas, out_channels=Cout, stride=stride))
    out = jax.block_until_ready(fwd(x, prep))

    ref = residual_block_ref(x, p, stride=stride)
    assert out.shape == (N, Cout, H // stride, W // stride), out.shape
    err = jnp.abs(out - ref)
    max_err, mean_err = float(jnp.max(err)), float(jnp.mean(err))
    # bf16 MXU inputs (f32 accumulation): rounding gives O(1e-2) abs error after the
    # BN normalizations; implementation bugs would give O(1) errors.
    assert max_err < 1.5e-1 and mean_err < 3e-2, f"mismatch vs reference: {max_err}, {mean_err}"

    print("KERNEL_OK")
</pallas_src>

<mosaic_0001>
module attributes {stable_mosaic.version = 11 : i64} {
  func.func @_matmul_stats_kernel(%arg0: i32, %arg1: memref<512x128xbf16, #tpu.memory_space<vmem>>, %arg2: memref<128x128xbf16, #tpu.memory_space<vmem>>, %arg3: memref<512x128xbf16, #tpu.memory_space<vmem>>, %arg4: memref<1x1x128xf32, #tpu.memory_space<vmem>>, %arg5: memref<1x1x128xf32, #tpu.memory_space<vmem>>) attributes {dimension_semantics = [#tpu.dimension_semantics<parallel>], iteration_bounds = array<i64: 1>, scalar_prefetch = 0 : i64, scratch_operands = 0 : i64, tpu.core_type = #tpu.core_type<tc>, window_params = [{transform_indices = @transform_0, window_bounds = array<i64: 512, 128>}, {pipeline_mode = #tpu.pipeline_mode<synchronous>, transform_indices = @transform_1, window_bounds = array<i64: 128, 128>}, {transform_indices = @transform_2, window_bounds = array<i64: 512, 128>}, {transform_indices = @transform_3, window_bounds = array<i64: 1, 1, 128>}, {transform_indices = @transform_4, window_bounds = array<i64: 1, 1, 128>}]} {
    %c0 = arith.constant 0 : index
    %c0_0 = arith.constant 0 : index
    %0 = vector.load %arg1[%c0, %c0_0] : memref<512x128xbf16, #tpu.memory_space<vmem>>, vector<512x128xbf16>
    %c0_1 = arith.constant 0 : index
    %c0_2 = arith.constant 0 : index
    %1 = vector.load %arg2[%c0_1, %c0_2] : memref<128x128xbf16, #tpu.memory_space<vmem>>, vector<128x128xbf16>
    %cst = arith.constant dense<0.000000e+00> : vector<512x128xf32>
    %2 = tpu.matmul %0, %1, %cst {dimension_numbers = #tpu.dot_dimension_numbers<[1], [0], [0], [1], [0, 0, 1, 1], [], []>} : vector<512x128xbf16>, vector<128x128xbf16>, vector<512x128xf32> -> vector<512x128xf32>
    %3 = arith.truncf %2 : vector<512x128xf32> to vector<512x128xbf16>
    %c0_3 = arith.constant 0 : index
    %c0_4 = arith.constant 0 : index
    %4 = vector.load %arg3[%c0_3, %c0_4] : memref<512x128xbf16, #tpu.memory_space<vmem>>, vector<512x128xbf16>
    tpu.vector_store %arg3[%c0_3, %c0_4], %3 {strides = array<i32>} : memref<512x128xbf16, #tpu.memory_space<vmem>>, vector<512x128xbf16>,
    %cst_5 = arith.constant dense<0.000000e+00> : vector<128xf32>
    %5 = vector.multi_reduction <add>, %2, %cst_5 [0] : vector<512x128xf32> to vector<128xf32>
    %6 = vector.shape_cast %5 : vector<128xf32> to vector<1x128xf32>
    %c0_6 = arith.constant 0 : index
    %c0_7 = arith.constant 0 : index
    %c0_8 = arith.constant 0 : index
    %7 = vector.load %arg4[%c0_6, %c0_7, %c0_8] : memref<1x1x128xf32, #tpu.memory_space<vmem>>, vector<1x1x128xf32>
    %8 = vector.shape_cast %7 : vector<1x1x128xf32> to vector<1x128xf32>
    %9 = vector.shape_cast %6 : vector<1x128xf32> to vector<1x1x128xf32>
    tpu.vector_store %arg4[%c0_6, %c0_7, %c0_8], %9 {strides = array<i32>} : memref<1x1x128xf32, #tpu.memory_space<vmem>>, vector<1x1x128xf32>,
    %10 = arith.mulf %2, %2 : vector<512x128xf32>
    %cst_9 = arith.constant dense<0.000000e+00> : vector<128xf32>
    %11 = vector.multi_reduction <add>, %10, %cst_9 [0] : vector<512x128xf32> to vector<128xf32>
    %12 = vector.shape_cast %11 : vector<128xf32> to vector<1x128xf32>
    %c0_10 = arith.constant 0 : index
    %c0_11 = arith.constant 0 : index
    %c0_12 = arith.constant 0 : index
    %13 = vector.load %arg5[%c0_10, %c0_11, %c0_12] : memref<1x1x128xf32, #tpu.memory_space<vmem>>, vector<1x1x128xf32>
    %14 = vector.shape_cast %13 : vector<1x1x128xf32> to vector<1x128xf32>
    %15 = vector.shape_cast %12 : vector<1x128xf32> to vector<1x1x128xf32>
    tpu.vector_store %arg5[%c0_10, %c0_11, %c0_12], %15 {strides = array<i32>} : memref<1x1x128xf32, #tpu.memory_space<vmem>>, vector<1x1x128xf32>,
    return
  }
  func.func @transform_0(%arg0: i32) -> (i32, i32) {
    %c0_i32 = arith.constant 0 : i32
    %c0_i32_0 = arith.constant 0 : i32
    return %arg0, %c0_i32 : i32, i32
  }
  func.func @transform_1(%arg0: i32) -> (i32, i32) {
    %c0_i32 = arith.constant 0 : i32
    %c0_i32_0 = arith.constant 0 : i32
    %c0_i32_1 = arith.constant 0 : i32
    return %c0_i32, %c0_i32_0 : i32, i32
  }
  func.func @transform_2(%arg0: i32) -> (i32, i32) {
    %c0_i32 = arith.constant 0 : i32
    %c0_i32_0 = arith.constant 0 : i32
    return %arg0, %c0_i32 : i32, i32
  }
  func.func @transform_3(%arg0: i32) -> (i32, i32, i32) {
    %c0_i32 = arith.constant 0 : i32
    %c0_i32_0 = arith.constant 0 : i32
    %c0_i32_1 = arith.constant 0 : i32
    return %arg0, %c0_i32, %c0_i32_0 : i32, i32, i32
  }
  func.func @transform_4(%arg0: i32) -> (i32, i32, i32) {
    %c0_i32 = arith.constant 0 : i32
    %c0_i32_0 = arith.constant 0 : i32
    %c0_i32_1 = arith.constant 0 : i32
    return %arg0, %c0_i32, %c0_i32_0 : i32, i32, i32
  }
}

module attributes {stable_mosaic.version = 11 : i64} {
  func.func @_conv3x3_stats_kernel(%arg0: i32, %arg1: memref<1x18x18x128xbf16, #tpu.memory_space<vmem>>, %arg2: memref<9x128x128xbf16, #tpu.memory_space<vmem>>, %arg3: memref<1x256x128xbf16, #tpu.memory_space<vmem>>, %arg4: memref<1x1x128xf32, #tpu.memory_space<vmem>>, %arg5: memref<1x1x128xf32, #tpu.memory_space<vmem>>, %arg6: memref<256x128xf32, #tpu.memory_space<vmem>>) attributes {dimension_semantics = [#tpu.dimension_semantics<parallel>], iteration_bounds = array<i64: 2>, scalar_prefetch = 0 : i64, scratch_operands = 1 : i64, tpu.core_type = #tpu.core_type<tc>, window_params = [{transform_indices = @transform_0, window_bounds = array<i64: 1, 18, 18, 128>}, {pipeline_mode = #tpu.pipeline_mode<synchronous>, transform_indices = @transform_1, window_bounds = array<i64: 9, 128, 128>}, {transform_indices = @transform_2, window_bounds = array<i64: 1, 256, 128>}, {transform_indices = @transform_3, window_bounds = array<i64: 1, 1, 128>}, {transform_indices = @transform_4, window_bounds = array<i64: 1, 1, 128>}]} {
    %cst = arith.constant 0.000000e+00 : f32
    %0 = vector.broadcast %cst : f32 to vector<256x128xf32>
    %c0 = arith.constant 0 : index
    %c0_0 = arith.constant 0 : index
    %1 = vector.load %arg6[%c0, %c0_0] : memref<256x128xf32, #tpu.memory_space<vmem>>, vector<256x128xf32>
    tpu.vector_store %arg6[%c0, %c0_0], %0 {strides = array<i32>} : memref<256x128xf32, #tpu.memory_space<vmem>>, vector<256x128xf32>,
    %c0_1 = arith.constant 0 : index
    %c0_2 = arith.constant 0 : index
    %c0_3 = arith.constant 0 : index
    %c0_4 = arith.constant 0 : index
    %2 = vector.load %arg1[%c0_1, %c0_2, %c0_3, %c0_4] : memref<1x18x18x128xbf16, #tpu.memory_space<vmem>>, vector<1x16x16x128xbf16>
    %3 = vector.shape_cast %2 : vector<1x16x16x128xbf16> to vector<16x16x128xbf16>
    %4 = vector.shape_cast %3 : vector<16x16x128xbf16> to vector<256x128xbf16>
    %c0_5 = arith.constant 0 : index
    %c0_6 = arith.constant 0 : index
    %5 = vector.load %arg6[%c0_5, %c0_6] : memref<256x128xf32, #tpu.memory_space<vmem>>, vector<256x128xf32>
    %c0_7 = arith.constant 0 : index
    %c0_8 = arith.constant 0 : index
    %c0_9 = arith.constant 0 : index
    %6 = vector.load %arg2[%c0_7, %c0_8, %c0_9] : memref<9x128x128xbf16, #tpu.memory_space<vmem>>, vector<1x128x128xbf16>
    %7 = vector.shape_cast %6 : vector<1x128x128xbf16> to vector<128x128xbf16>
    %cst_10 = arith.constant dense<0.000000e+00> : vector<256x128xf32>
    %8 = tpu.matmul %4, %7, %cst_10 {dimension_numbers = #tpu.dot_dimension_numbers<[1], [0], [0], [1], [0, 0, 1, 1], [], []>} : vector<256x128xbf16>, vector<128x128xbf16>, vector<256x128xf32> -> vector<256x128xf32>
    %9 = arith.addf %5, %8 : vector<256x128xf32>
    %c0_11 = arith.constant 0 : index
    %c0_12 = arith.constant 0 : index
    %10 = vector.load %arg6[%c0_11, %c0_12] : memref<256x128xf32, #tpu.memory_space<vmem>>, vector<256x128xf32>
    tpu.vector_store %arg6[%c0_11, %c0_12], %9 {strides = array<i32>} : memref<256x128xf32, #tpu.memory_space<vmem>>, vector<256x128xf32>,
    %c0_13 = arith.constant 0 : index
    %c0_14 = arith.constant 0 : index
    %c1 = arith.constant 1 : index
    %c0_15 = arith.constant 0 : index
    %11 = vector.load %arg1[%c0_13, %c0_14, %c1, %c0_15] : memref<1x18x18x128xbf16, #tpu.memory_space<vmem>>, vector<1x16x16x128xbf16>
    %12 = vector.shape_cast %11 : vector<1x16x16x128xbf16> to vector<16x16x128xbf16>
    %13 = vector.shape_cast %12 : vector<16x16x128xbf16> to vector<256x128xbf16>
    %c0_16 = arith.constant 0 : index
    %c0_17 = arith.constant 0 : index
    %14 = vector.load %arg6[%c0_16, %c0_17] : memref<256x128xf32, #tpu.memory_space<vmem>>, vector<256x128xf32>
    %c1_18 = arith.constant 1 : index
    %c0_19 = arith.constant 0 : index
    %c0_20 = arith.constant 0 : index
    %15 = vector.load %arg2[%c1_18, %c0_19, %c0_20] : memref<9x128x128xbf16, #tpu.memory_space<vmem>>, vector<1x128x128xbf16>
    %16 = vector.shape_cast %15 : vector<1x128x128xbf16> to vector<128x128xbf16>
    %cst_21 = arith.constant dense<0.000000e+00> : vector<256x128xf32>
    %17 = tpu.matmul %13, %16, %cst_21 {dimension_numbers = #tpu.dot_dimension_numbers<[1], [0], [0], [1], [0, 0, 1, 1], [], []>} : vector<256x128xbf16>, vector<128x128xbf16>, vector<256x128xf32> -> vector<256x128xf32>
    %18 = arith.addf %14, %17 : vector<256x128xf32>
    %c0_22 = arith.constant 0 : index
    %c0_23 = arith.constant 0 : index
    %19 = vector.load %arg6[%c0_22, %c0_23] : memref<256x128xf32, #tpu.memory_space<vmem>>, vector<256x128xf32>
    tpu.vector_store %arg6[%c0_22, %c0_23], %18 {strides = array<i32>} : memref<256x128xf32, #tpu.memory_space<vmem>>, vector<256x128xf32>,
    %c0_24 = arith.constant 0 : index
    %c0_25 = arith.constant 0 : index
    %c2 = arith.constant 2 : index
    %c0_26 = arith.constant 0 : index
    %20 = vector.load %arg1[%c0_24, %c0_25, %c2, %c0_26] : memref<1x18x18x128xbf16, #tpu.memory_space<vmem>>, vector<1x16x16x128xbf16>
    %21 = vector.shape_cast %20 : vector<1x16x16x128xbf16> to vector<16x16x128xbf16>
    %22 = vector.shape_cast %21 : vector<16x16x128xbf16> to vector<256x128xbf16>
    %c0_27 = arith.constant 0 : index
    %c0_28 = arith.constant 0 : index
    %23 = vector.load %arg6[%c0_27, %c0_28] : memref<256x128xf32, #tpu.memory_space<vmem>>, vector<256x128xf32>
    %c2_29 = arith.constant 2 : index
    %c0_30 = arith.constant 0 : index
    %c0_31 = arith.constant 0 : index
    %24 = vector.load %arg2[%c2_29, %c0_30, %c0_31] : memref<9x128x128xbf16, #tpu.memory_space<vmem>>, vector<1x128x128xbf16>
    %25 = vector.shape_cast %24 : vector<1x128x128xbf16> to vector<128x128xbf16>
    %cst_32 = arith.constant dense<0.000000e+00> : vector<256x128xf32>
    %26 = tpu.matmul %22, %25, %cst_32 {dimension_numbers = #tpu.dot_dimension_numbers<[1], [0], [0], [1], [0, 0, 1, 1], [], []>} : vector<256x128xbf16>, vector<128x128xbf16>, vector<256x128xf32> -> vector<256x128xf32>
    %27 = arith.addf %23, %26 : vector<256x128xf32>
    %c0_33 = arith.constant 0 : index
    %c0_34 = arith.constant 0 : index
    %28 = vector.load %arg6[%c0_33, %c0_34] : memref<256x128xf32, #tpu.memory_space<vmem>>, vector<256x128xf32>
    tpu.vector_store %arg6[%c0_33, %c0_34], %27 {strides = array<i32>} : memref<256x128xf32, #tpu.memory_space<vmem>>, vector<256x128xf32>,
    %c0_35 = arith.constant 0 : index
    %c1_36 = arith.constant 1 : index
    %c0_37 = arith.constant 0 : index
    %c0_38 = arith.constant 0 : index
    %29 = vector.load %arg1[%c0_35, %c1_36, %c0_37, %c0_38] : memref<1x18x18x128xbf16, #tpu.memory_space<vmem>>, vector<1x16x16x128xbf16>
    %30 = vector.shape_cast %29 : vector<1x16x16x128xbf16> to vector<16x16x128xbf16>
    %31 = vector.shape_cast %30 : vector<16x16x128xbf16> to vector<256x128xbf16>
    %c0_39 = arith.constant 0 : index
    %c0_40 = arith.constant 0 : index
    %32 = vector.load %arg6[%c0_39, %c0_40] : memref<256x128xf32, #tpu.memory_space<vmem>>, vector<256x128xf32>
    %c3 = arith.constant 3 : index
    %c0_41 = arith.constant 0 : index
    %c0_42 = arith.constant 0 : index
    %33 = vector.load %arg2[%c3, %c0_41, %c0_42] : memref<9x128x128xbf16, #tpu.memory_space<vmem>>, vector<1x128x128xbf16>
    %34 = vector.shape_cast %33 : vector<1x128x128xbf16> to vector<128x128xbf16>
    %cst_43 = arith.constant dense<0.000000e+00> : vector<256x128xf32>
    %35 = tpu.matmul %31, %34, %cst_43 {dimension_numbers = #tpu.dot_dimension_numbers<[1], [0], [0], [1], [0, 0, 1, 1], [], []>} : vector<256x128xbf16>, vector<128x128xbf16>, vector<256x128xf32> -> vector<256x128xf32>
    %36 = arith.addf %32, %35 : vector<256x128xf32>
    %c0_44 = arith.constant 0 : index
    %c0_45 = arith.constant 0 : index
    %37 = vector.load %arg6[%c0_44, %c0_45] : memref<256x128xf32, #tpu.memory_space<vmem>>, vector<256x128xf32>
    tpu.vector_store %arg6[%c0_44, %c0_45], %36 {strides = array<i32>} : memref<256x128xf32, #tpu.memory_space<vmem>>, vector<256x128xf32>,
    %c0_46 = arith.constant 0 : index
    %c1_47 = arith.constant 1 : index
    %c1_48 = arith.constant 1 : index
    %c0_49 = arith.constant 0 : index
    %38 = vector.load %arg1[%c0_46, %c1_47, %c1_48, %c0_49] : memref<1x18x18x128xbf16, #tpu.memory_space<vmem>>, vector<1x16x16x128xbf16>
    %39 = vector.shape_cast %38 : vector<1x16x16x128xbf16> to vector<16x16x128xbf16>
    %40 = vector.shape_cast %39 : vector<16x16x128xbf16> to vector<256x128xbf16>
    %c0_50 = arith.constant 0 : index
    %c0_51 = arith.constant 0 : index
    %41 = vector.load %arg6[%c0_50, %c0_51] : memref<256x128xf32, #tpu.memory_space<vmem>>, vector<256x128xf32>
    %c4 = arith.constant 4 : index
    %c0_52 = arith.constant 0 : index
    %c0_53 = arith.constant 0 : index
    %42 = vector.load %arg2[%c4, %c0_52, %c0_53] : memref<9x128x128xbf16, #tpu.memory_space<vmem>>, vector<1x128x128xbf16>
    %43 = vector.shape_cast %42 : vector<1x128x128xbf16> to vector<128x128xbf16>
    %cst_54 = arith.constant dense<0.000000e+00> : vector<256x128xf32>
    %44 = tpu.matmul %40, %43, %cst_54 {dimension_numbers = #tpu.dot_dimension_numbers<[1], [0], [0], [1], [0, 0, 1, 1], [], []>} : vector<256x128xbf16>, vector<128x128xbf16>, vector<256x128xf32> -> vector<256x128xf32>
    %45 = arith.addf %41, %44 : vector<256x128xf32>
    %c0_55 = arith.constant 0 : index
    %c0_56 = arith.constant 0 : index
    %46 = vector.load %arg6[%c0_55, %c0_56] : memref<256x128xf32, #tpu.memory_space<vmem>>, vector<256x128xf32>
    tpu.vector_store %arg6[%c0_55, %c0_56], %45 {strides = array<i32>} : memref<256x128xf32, #tpu.memory_space<vmem>>, vector<256x128xf32>,
    %c0_57 = arith.constant 0 : index
    %c1_58 = arith.constant 1 : index
    %c2_59 = arith.constant 2 : index
    %c0_60 = arith.constant 0 : index
    %47 = vector.load %arg1[%c0_57, %c1_58, %c2_59, %c0_60] : memref<1x18x18x128xbf16, #tpu.memory_space<vmem>>, vector<1x16x16x128xbf16>
    %48 = vector.shape_cast %47 : vector<1x16x16x128xbf16> to vector<16x16x128xbf16>
    %49 = vector.shape_cast %48 : vector<16x16x128xbf16> to vector<256x128xbf16>
    %c0_61 = arith.constant 0 : index
    %c0_62 = arith.constant 0 : index
    %50 = vector.load %arg6[%c0_61, %c0_62] : memref<256x128xf32, #tpu.memory_space<vmem>>, vector<256x128xf32>
    %c5 = arith.constant 5 : index
    %c0_63 = arith.constant 0 : index
    %c0_64 = arith.constant 0 : index
    %51 = vector.load %arg2[%c5, %c0_63, %c0_64] : memref<9x128x128xbf16, #tpu.memory_space<vmem>>, vector<1x128x128xbf16>
    %52 = vector.shape_cast %51 : vector<1x128x128xbf16> to vector<128x128xbf16>
    %cst_65 = arith.constant dense<0.000000e+00> : vector<256x128xf32>
    %53 = tpu.matmul %49, %52, %cst_65 {dimension_numbers = #tpu.dot_dimension_numbers<[1], [0], [0], [1], [0, 0, 1, 1], [], []>} : vector<256x128xbf16>, vector<128x128xbf16>, vector<256x128xf32> -> vector<256x128xf32>
    %54 = arith.addf %50, %53 : vector<256x128xf32>
    %c0_66 = arith.constant 0 : index
    %c0_67 = arith.constant 0 : index
    %55 = vector.load %arg6[%c0_66, %c0_67] : memref<256x128xf32, #tpu.memory_space<vmem>>, vector<256x128xf32>
    tpu.vector_store %arg6[%c0_66, %c0_67], %54 {strides = array<i32>} : memref<256x128xf32, #tpu.memory_space<vmem>>, vector<256x128xf32>,
    %c0_68 = arith.constant 0 : index
    %c2_69 = arith.constant 2 : index
    %c0_70 = arith.constant 0 : index
    %c0_71 = arith.constant 0 : index
    %56 = vector.load %arg1[%c0_68, %c2_69, %c0_70, %c0_71] : memref<1x18x18x128xbf16, #tpu.memory_space<vmem>>, vector<1x16x16x128xbf16>
    %57 = vector.shape_cast %56 : vector<1x16x16x128xbf16> to vector<16x16x128xbf16>
    %58 = vector.shape_cast %57 : vector<16x16x128xbf16> to vector<256x128xbf16>
    %c0_72 = arith.constant 0 : index
    %c0_73 = arith.constant 0 : index
    %59 = vector.load %arg6[%c0_72, %c0_73] : memref<256x128xf32, #tpu.memory_space<vmem>>, vector<256x128xf32>
    %c6 = arith.constant 6 : index
    %c0_74 = arith.constant 0 : index
    %c0_75 = arith.constant 0 : index
    %60 = vector.load %arg2[%c6, %c0_74, %c0_75] : memref<9x128x128xbf16, #tpu.memory_space<vmem>>, vector<1x128x128xbf16>
    %61 = vector.shape_cast %60 : vector<1x128x128xbf16> to vector<128x128xbf16>
    %cst_76 = arith.constant dense<0.000000e+00> : vector<256x128xf32>
    %62 = tpu.matmul %58, %61, %cst_76 {dimension_numbers = #tpu.dot_dimension_numbers<[1], [0], [0], [1], [0, 0, 1, 1], [], []>} : vector<256x128xbf16>, vector<128x128xbf16>, vector<256x128xf32> -> vector<256x128xf32>
    %63 = arith.addf %59, %62 : vector<256x128xf32>
    %c0_77 = arith.constant 0 : index
    %c0_78 = arith.constant 0 : index
    %64 = vector.load %arg6[%c0_77, %c0_78] : memref<256x128xf32, #tpu.memory_space<vmem>>, vector<256x128xf32>
    tpu.vector_store %arg6[%c0_77, %c0_78], %63 {strides = array<i32>} : memref<256x128xf32, #tpu.memory_space<vmem>>, vector<256x128xf32>,
    %c0_79 = arith.constant 0 : index
    %c2_80 = arith.constant 2 : index
    %c1_81 = arith.constant 1 : index
    %c0_82 = arith.constant 0 : index
    %65 = vector.load %arg1[%c0_79, %c2_80, %c1_81, %c0_82] : memref<1x18x18x128xbf16, #tpu.memory_space<vmem>>, vector<1x16x16x128xbf16>
    %66 = vector.shape_cast %65 : vector<1x16x16x128xbf16> to vector<16x16x128xbf16>
    %67 = vector.shape_cast %66 : vector<16x16x128xbf16> to vector<256x128xbf16>
    %c0_83 = arith.constant 0 : index
    %c0_84 = arith.constant 0 : index
    %68 = vector.load %arg6[%c0_83, %c0_84] : memref<256x128xf32, #tpu.memory_space<vmem>>, vector<256x128xf32>
    %c7 = arith.constant 7 : index
    %c0_85 = arith.constant 0 : index
    %c0_86 = arith.constant 0 : index
    %69 = vector.load %arg2[%c7, %c0_85, %c0_86] : memref<9x128x128xbf16, #tpu.memory_space<vmem>>, vector<1x128x128xbf16>
    %70 = vector.shape_cast %69 : vector<1x128x128xbf16> to vector<128x128xbf16>
    %cst_87 = arith.constant dense<0.000000e+00> : vector<256x128xf32>
    %71 = tpu.matmul %67, %70, %cst_87 {dimension_numbers = #tpu.dot_dimension_numbers<[1], [0], [0], [1], [0, 0, 1, 1], [], []>} : vector<256x128xbf16>, vector<128x128xbf16>, vector<256x128xf32> -> vector<256x128xf32>
    %72 = arith.addf %68, %71 : vector<256x128xf32>
    %c0_88 = arith.constant 0 : index
    %c0_89 = arith.constant 0 : index
    %73 = vector.load %arg6[%c0_88, %c0_89] : memref<256x128xf32, #tpu.memory_space<vmem>>, vector<256x128xf32>
    tpu.vector_store %arg6[%c0_88, %c0_89], %72 {strides = array<i32>} : memref<256x128xf32, #tpu.memory_space<vmem>>, vector<256x128xf32>,
    %c0_90 = arith.constant 0 : index
    %c2_91 = arith.constant 2 : index
    %c2_92 = arith.constant 2 : index
    %c0_93 = arith.constant 0 : index
    %74 = vector.load %arg1[%c0_90, %c2_91, %c2_92, %c0_93] : memref<1x18x18x128xbf16, #tpu.memory_space<vmem>>, vector<1x16x16x128xbf16>
    %75 = vector.shape_cast %74 : vector<1x16x16x128xbf16> to vector<16x16x128xbf16>
    %76 = vector.shape_cast %75 : vector<16x16x128xbf16> to vector<256x128xbf16>
    %c0_94 = arith.constant 0 : index
    %c0_95 = arith.constant 0 : index
    %77 = vector.load %arg6[%c0_94, %c0_95] : memref<256x128xf32, #tpu.memory_space<vmem>>, vector<256x128xf32>
    %c8 = arith.constant 8 : index
    %c0_96 = arith.constant 0 : index
    %c0_97 = arith.constant 0 : index
    %78 = vector.load %arg2[%c8, %c0_96, %c0_97] : memref<9x128x128xbf16, #tpu.memory_space<vmem>>, vector<1x128x128xbf16>
    %79 = vector.shape_cast %78 : vector<1x128x128xbf16> to vector<128x128xbf16>
    %cst_98 = arith.constant dense<0.000000e+00> : vector<256x128xf32>
    %80 = tpu.matmul %76, %79, %cst_98 {dimension_numbers = #tpu.dot_dimension_numbers<[1], [0], [0], [1], [0, 0, 1, 1], [], []>} : vector<256x128xbf16>, vector<128x128xbf16>, vector<256x128xf32> -> vector<256x128xf32>
    %81 = arith.addf %77, %80 : vector<256x128xf32>
    %c0_99 = arith.constant 0 : index
    %c0_100 = arith.constant 0 : index
    %82 = vector.load %arg6[%c0_99, %c0_100] : memref<256x128xf32, #tpu.memory_space<vmem>>, vector<256x128xf32>
    tpu.vector_store %arg6[%c0_99, %c0_100], %81 {strides = array<i32>} : memref<256x128xf32, #tpu.memory_space<vmem>>, vector<256x128xf32>,
    %c0_101 = arith.constant 0 : index
    %c0_102 = arith.constant 0 : index
    %83 = vector.load %arg6[%c0_101, %c0_102] : memref<256x128xf32, #tpu.memory_space<vmem>>, vector<256x128xf32>
    %84 = arith.truncf %83 : vector<256x128xf32> to vector<256x128xbf16>
    %c0_103 = arith.constant 0 : index
    %c0_104 = arith.constant 0 : index
    %c0_105 = arith.constant 0 : index
    %85 = vector.load %arg3[%c0_103, %c0_104, %c0_105] : memref<1x256x128xbf16, #tpu.memory_space<vmem>>, vector<1x256x128xbf16>
    %86 = vector.shape_cast %85 : vector<1x256x128xbf16> to vector<256x128xbf16>
    %87 = vector.shape_cast %84 : vector<256x128xbf16> to vector<1x256x128xbf16>
    tpu.vector_store %arg3[%c0_103, %c0_104, %c0_105], %87 {strides = array<i32>} : memref<1x256x128xbf16, #tpu.memory_space<vmem>>, vector<1x256x128xbf16>,
    %cst_106 = arith.constant dense<0.000000e+00> : vector<128xf32>
    %88 = vector.multi_reduction <add>, %83, %cst_106 [0] : vector<256x128xf32> to vector<128xf32>
    %89 = vector.shape_cast %88 : vector<128xf32> to vector<1x128xf32>
    %c0_107 = arith.constant 0 : index
    %c0_108 = arith.constant 0 : index
    %c0_109 = arith.constant 0 : index
    %90 = vector.load %arg4[%c0_107, %c0_108, %c0_109] : memref<1x1x128xf32, #tpu.memory_space<vmem>>, vector<1x1x128xf32>
    %91 = vector.shape_cast %90 : vector<1x1x128xf32> to vector<1x128xf32>
    %92 = vector.shape_cast %89 : vector<1x128xf32> to vector<1x1x128xf32>
    tpu.vector_store %arg4[%c0_107, %c0_108, %c0_109], %92 {strides = array<i32>} : memref<1x1x128xf32, #tpu.memory_space<vmem>>, vector<1x1x128xf32>,
    %93 = arith.mulf %83, %83 : vector<256x128xf32>
    %cst_110 = arith.constant dense<0.000000e+00> : vector<128xf32>
    %94 = vector.multi_reduction <add>, %93, %cst_110 [0] : vector<256x128xf32> to vector<128xf32>
    %95 = vector.shape_cast %94 : vector<128xf32> to vector<1x128xf32>
    %c0_111 = arith.constant 0 : index
    %c0_112 = arith.constant 0 : index
    %c0_113 = arith.constant 0 : index
    %96 = vector.load %arg5[%c0_111, %c0_112, %c0_113] : memref<1x1x128xf32, #tpu.memory_space<vmem>>, vector<1x1x128xf32>
    %97 = vector.shape_cast %96 : vector<1x1x128xf32> to vector<1x128xf32>
    %98 = vector.shape_cast %95 : vector<1x128xf32> to vector<1x1x128xf32>
    tpu.vector_store %arg5[%c0_111, %c0_112, %c0_113], %98 {strides = array<i32>} : memref<1x1x128xf32, #tpu.memory_space<vmem>>, vector<1x1x128xf32>,
    return
  }
  func.func @transform_0(%arg0: i32) -> (i32, i32, i32, i32) {
    %c0_i32 = arith.constant 0 : i32
    %c0_i32_0 = arith.constant 0 : i32
    %c0_i32_1 = arith.constant 0 : i32
    %c0_i32_2 = arith.constant 0 : i32
    return %arg0, %c0_i32, %c0_i32_0, %c0_i32_1 : i32, i32, i32, i32
  }
  func.func @transform_1(%arg0: i32) -> (i32, i32, i32) {
    %c0_i32 = arith.constant 0 : i32
    %c0_i32_0 = arith.constant 0 : i32
    %c0_i32_1 = arith.constant 0 : i32
    %c0_i32_2 = arith.constant 0 : i32
    return %c0_i32, %c0_i32_0, %c0_i32_1 : i32, i32, i32
  }
  func.func @transform_2(%arg0: i32) -> (i32, i32, i32) {
    %c0_i32 = arith.constant 0 : i32
    %c0_i32_0 = arith.constant 0 : i32
    %c0_i32_1 = arith.constant 0 : i32
    return %arg0, %c0_i32, %c0_i32_0 : i32, i32, i32
  }
  func.func @transform_3(%arg0: i32) -> (i32, i32, i32) {
    %c0_i32 = arith.constant 0 : i32
    %c0_i32_0 = arith.constant 0 : i32
    %c0_i32_1 = arith.constant 0 : i32
    return %arg0, %c0_i32, %c0_i32_0 : i32, i32, i32
  }
  func.func @transform_4(%arg0: i32) -> (i32, i32, i32) {
    %c0_i32 = arith.constant 0 : i32
    %c0_i32_0 = arith.constant 0 : i32
    %c0_i32_1 = arith.constant 0 : i32
    return %arg0, %c0_i32, %c0_i32_0 : i32, i32, i32
  }
}

module attributes {stable_mosaic.version = 11 : i64} {
  func.func @_affine_kernel(%arg0: i32, %arg1: memref<512x128xbf16, #tpu.memory_space<vmem>>, %arg2: memref<1x128xf32, #tpu.memory_space<vmem>>, %arg3: memref<1x128xf32, #tpu.memory_space<vmem>>, %arg4: memref<512x128xbf16, #tpu.memory_space<vmem>>) attributes {dimension_semantics = [#tpu.dimension_semantics<parallel>], iteration_bounds = array<i64: 1>, scalar_prefetch = 0 : i64, scratch_operands = 0 : i64, tpu.core_type = #tpu.core_type<tc>, window_params = [{transform_indices = @transform_0, window_bounds = array<i64: 512, 128>}, {pipeline_mode = #tpu.pipeline_mode<synchronous>, transform_indices = @transform_1, window_bounds = array<i64: 1, 128>}, {pipeline_mode = #tpu.pipeline_mode<synchronous>, transform_indices = @transform_2, window_bounds = array<i64: 1, 128>}, {transform_indices = @transform_3, window_bounds = array<i64: 512, 128>}]} {
    %c0 = arith.constant 0 : index
    %c0_0 = arith.constant 0 : index
    %0 = vector.load %arg1[%c0, %c0_0] : memref<512x128xbf16, #tpu.memory_space<vmem>>, vector<512x128xbf16>
    %1 = arith.extf %0 : vector<512x128xbf16> to vector<512x128xf32>
    %c0_1 = arith.constant 0 : index
    %c0_2 = arith.constant 0 : index
    %2 = vector.load %arg2[%c0_1, %c0_2] : memref<1x128xf32, #tpu.memory_space<vmem>>, vector<1x128xf32>
    %3 = vector.broadcast %2 : vector<1x128xf32> to vector<512x128xf32>
    %4 = arith.mulf %1, %3 : vector<512x128xf32>
    %c0_3 = arith.constant 0 : index
    %c0_4 = arith.constant 0 : index
    %5 = vector.load %arg3[%c0_3, %c0_4] : memref<1x128xf32, #tpu.memory_space<vmem>>, vector<1x128xf32>
    %6 = vector.broadcast %5 : vector<1x128xf32> to vector<512x128xf32>
    %7 = arith.addf %4, %6 : vector<512x128xf32>
    %cst = arith.constant 0.000000e+00 : f32
    %8 = vector.broadcast %cst : f32 to vector<512x128xf32>
    %9 = arith.maximumf %7, %8 : vector<512x128xf32>
    %10 = arith.truncf %9 : vector<512x128xf32> to vector<512x128xbf16>
    %c0_5 = arith.constant 0 : index
    %c0_6 = arith.constant 0 : index
    %11 = vector.load %arg4[%c0_5, %c0_6] : memref<512x128xbf16, #tpu.memory_space<vmem>>, vector<512x128xbf16>
    tpu.vector_store %arg4[%c0_5, %c0_6], %10 {strides = array<i32>} : memref<512x128xbf16, #tpu.memory_space<vmem>>, vector<512x128xbf16>,
    return
  }
  func.func @transform_0(%arg0: i32) -> (i32, i32) {
    %c0_i32 = arith.constant 0 : i32
    %c0_i32_0 = arith.constant 0 : i32
    return %arg0, %c0_i32 : i32, i32
  }
  func.func @transform_1(%arg0: i32) -> (i32, i32) {
    %c0_i32 = arith.constant 0 : i32
    %c0_i32_0 = arith.constant 0 : i32
    %c0_i32_1 = arith.constant 0 : i32
    return %c0_i32, %c0_i32_0 : i32, i32
  }
  func.func @transform_2(%arg0: i32) -> (i32, i32) {
    %c0_i32 = arith.constant 0 : i32
    %c0_i32_0 = arith.constant 0 : i32
    %c0_i32_1 = arith.constant 0 : i32
    return %c0_i32, %c0_i32_0 : i32, i32
  }
  func.func @transform_3(%arg0: i32) -> (i32, i32) {
    %c0_i32 = arith.constant 0 : i32
    %c0_i32_0 = arith.constant 0 : i32
    return %arg0, %c0_i32 : i32, i32
  }
}

module attributes {stable_mosaic.version = 11 : i64} {
  func.func @_affine2_add_relu_kernel(%arg0: i32, %arg1: memref<512x128xbf16, #tpu.memory_space<vmem>>, %arg2: memref<1x128xf32, #tpu.memory_space<vmem>>, %arg3: memref<1x128xf32, #tpu.memory_space<vmem>>, %arg4: memref<512x128xbf16, #tpu.memory_space<vmem>>, %arg5: memref<1x128xf32, #tpu.memory_space<vmem>>, %arg6: memref<1x128xf32, #tpu.memory_space<vmem>>, %arg7: memref<512x128xf32, #tpu.memory_space<vmem>>) attributes {dimension_semantics = [#tpu.dimension_semantics<parallel>], iteration_bounds = array<i64: 1>, scalar_prefetch = 0 : i64, scratch_operands = 0 : i64, tpu.core_type = #tpu.core_type<tc>, window_params = [{transform_indices = @transform_0, window_bounds = array<i64: 512, 128>}, {pipeline_mode = #tpu.pipeline_mode<synchronous>, transform_indices = @transform_1, window_bounds = array<i64: 1, 128>}, {pipeline_mode = #tpu.pipeline_mode<synchronous>, transform_indices = @transform_2, window_bounds = array<i64: 1, 128>}, {transform_indices = @transform_3, window_bounds = array<i64: 512, 128>}, {pipeline_mode = #tpu.pipeline_mode<synchronous>, transform_indices = @transform_4, window_bounds = array<i64: 1, 128>}, {pipeline_mode = #tpu.pipeline_mode<synchronous>, transform_indices = @transform_5, window_bounds = array<i64: 1, 128>}, {transform_indices = @transform_6, window_bounds = array<i64: 512, 128>}]} {
    %c0 = arith.constant 0 : index
    %c0_0 = arith.constant 0 : index
    %0 = vector.load %arg1[%c0, %c0_0] : memref<512x128xbf16, #tpu.memory_space<vmem>>, vector<512x128xbf16>
    %1 = arith.extf %0 : vector<512x128xbf16> to vector<512x128xf32>
    %c0_1 = arith.constant 0 : index
    %c0_2 = arith.constant 0 : index
    %2 = vector.load %arg2[%c0_1, %c0_2] : memref<1x128xf32, #tpu.memory_space<vmem>>, vector<1x128xf32>
    %3 = vector.broadcast %2 : vector<1x128xf32> to vector<512x128xf32>
    %4 = arith.mulf %1, %3 : vector<512x128xf32>
    %c0_3 = arith.constant 0 : index
    %c0_4 = arith.constant 0 : index
    %5 = vector.load %arg3[%c0_3, %c0_4] : memref<1x128xf32, #tpu.memory_space<vmem>>, vector<1x128xf32>
    %6 = vector.broadcast %5 : vector<1x128xf32> to vector<512x128xf32>
    %7 = arith.addf %4, %6 : vector<512x128xf32>
    %c0_5 = arith.constant 0 : index
    %c0_6 = arith.constant 0 : index
    %8 = vector.load %arg4[%c0_5, %c0_6] : memref<512x128xbf16, #tpu.memory_space<vmem>>, vector<512x128xbf16>
    %9 = arith.extf %8 : vector<512x128xbf16> to vector<512x128xf32>
    %c0_7 = arith.constant 0 : index
    %c0_8 = arith.constant 0 : index
    %10 = vector.load %arg5[%c0_7, %c0_8] : memref<1x128xf32, #tpu.memory_space<vmem>>, vector<1x128xf32>
    %11 = vector.broadcast %10 : vector<1x128xf32> to vector<512x128xf32>
    %12 = arith.mulf %9, %11 : vector<512x128xf32>
    %c0_9 = arith.constant 0 : index
    %c0_10 = arith.constant 0 : index
    %13 = vector.load %arg6[%c0_9, %c0_10] : memref<1x128xf32, #tpu.memory_space<vmem>>, vector<1x128xf32>
    %14 = vector.broadcast %13 : vector<1x128xf32> to vector<512x128xf32>
    %15 = arith.addf %12, %14 : vector<512x128xf32>
    %16 = arith.addf %7, %15 : vector<512x128xf32>
    %cst = arith.constant 0.000000e+00 : f32
    %17 = vector.broadcast %cst : f32 to vector<512x128xf32>
    %18 = arith.maximumf %16, %17 : vector<512x128xf32>
    %c0_11 = arith.constant 0 : index
    %c0_12 = arith.constant 0 : index
    %19 = vector.load %arg7[%c0_11, %c0_12] : memref<512x128xf32, #tpu.memory_space<vmem>>, vector<512x128xf32>
    tpu.vector_store %arg7[%c0_11, %c0_12], %18 {strides = array<i32>} : memref<512x128xf32, #tpu.memory_space<vmem>>, vector<512x128xf32>,
    return
  }
  func.func @transform_0(%arg0: i32) -> (i32, i32) {
    %c0_i32 = arith.constant 0 : i32
    %c0_i32_0 = arith.constant 0 : i32
    return %arg0, %c0_i32 : i32, i32
  }
  func.func @transform_1(%arg0: i32) -> (i32, i32) {
    %c0_i32 = arith.constant 0 : i32
    %c0_i32_0 = arith.constant 0 : i32
    %c0_i32_1 = arith.constant 0 : i32
    return %c0_i32, %c0_i32_0 : i32, i32
  }
  func.func @transform_2(%arg0: i32) -> (i32, i32) {
    %c0_i32 = arith.constant 0 : i32
    %c0_i32_0 = arith.constant 0 : i32
    %c0_i32_1 = arith.constant 0 : i32
    return %c0_i32, %c0_i32_0 : i32, i32
  }
  func.func @transform_3(%arg0: i32) -> (i32, i32) {
    %c0_i32 = arith.constant 0 : i32
    %c0_i32_0 = arith.constant 0 : i32
    return %arg0, %c0_i32 : i32, i32
  }
  func.func @transform_4(%arg0: i32) -> (i32, i32) {
    %c0_i32 = arith.constant 0 : i32
    %c0_i32_0 = arith.constant 0 : i32
    %c0_i32_1 = arith.constant 0 : i32
    return %c0_i32, %c0_i32_0 : i32, i32
  }
  func.func @transform_5(%arg0: i32) -> (i32, i32) {
    %c0_i32 = arith.constant 0 : i32
    %c0_i32_0 = arith.constant 0 : i32
    %c0_i32_1 = arith.constant 0 : i32
    return %c0_i32, %c0_i32_0 : i32, i32
  }
  func.func @transform_6(%arg0: i32) -> (i32, i32) {
    %c0_i32 = arith.constant 0 : i32
    %c0_i32_0 = arith.constant 0 : i32
    return %arg0, %c0_i32 : i32, i32
  }
}

</mosaic_0001>

<bundles_post_ra>
// kernel: residual_block_pallas.12
= control target key start
LH: loop header
LB: loop body
LE: loop exit
PB: predicated region body
PF: predicated region fallthrough
CT: control target
= control target key end

     0   :  { %s2134_s1 = inlined_call_operand.vmem [shape: bf16[128,128], index: 1, kind: input, shape index: {}]   ;;  %s2135_s0 = inlined_call_operand.vmem [shape: bf16[512,128], index: 0, kind: input, shape index: {}]   ;;  %s2136_s2 = inlined_call_operand.vmem [shape: bf16[512,128], index: 2, kind: output, shape index: {0}]   ;;  %s2137_s3 = inlined_call_operand.vmem [shape: f32[1,1,128], index: 3, kind: output, shape index: {1}]   ;;  %s2138_s4 = inlined_call_operand.vmem [shape: f32[1,1,128], index: 4, kind: output, shape index: {2}]  }
   0x1   :  { %v1655_v0 = vld [vmem:[%s2134_s1] sm:$0xff]   ;;  %v1656_v1 = vld [vmem:[%s2134_s1 + $0x8] sm:$0xff]   ;;  %v1657_v2 = vld [vmem:[%s2134_s1 + $0x10] sm:$0xff]  }
   0x2   :  { %1559 = vmatprep.subr.bf16.mxu0 %v1655_v0  ;;  %1639 = vmatprep.subr.bf16.mxu1 %v1655_v0  ;;  %v1658_v3 = vld [vmem:[%s2134_s1 + $0x18] sm:$0xff]   ;;  %v1663_v4 = vld [vmem:[%s2135_s0] sm:$0xff]   ;;  %v1660_v6 = vld [vmem:[%s2134_s1 + $0x28] sm:$0xff]  }
   0x3   :  { %1560 = vmatpush3.bf16.msra.mxu0 %v1655_v0  ;;  %1647 = vmatpush3.bf16.msra.mxu1 %v1655_v0  ;;  %v1659_v5 = vld [vmem:[%s2134_s1 + $0x20] sm:$0xff]   ;;  %v1661_v7 = vld [vmem:[%s2134_s1 + $0x30] sm:$0xff]   ;;  %v1662_v8 = vld [vmem:[%s2134_s1 + $0x38] sm:$0xff]  }
   0x4   :  { %1561 = vmatprep.subr.bf16.mxu0 %v1656_v1  ;;  %1640 = vmatprep.subr.bf16.mxu1 %v1656_v1  ;;  %v1679_v9 = vld [vmem:[%s2135_s0 + $0x80] sm:$0xff]   ;;  %v1664_v10 = vld [vmem:[%s2135_s0 + $0x8] sm:$0xff]   ;;  %v1665_v11 = vld [vmem:[%s2135_s0 + $0x10] sm:$0xff]  }
   0x5   :  { %1575 = vmatprep.mubr.bf16.mxu0 %v1663_v4  ;;  %1607 = vmatprep.mubr.bf16.mxu1 %v1679_v9  ;;  %v1680_v12 = vld [vmem:[%s2135_s0 + $0x88] sm:$0xff]   ;;  %v1681_v13 = vld [vmem:[%s2135_s0 + $0x90] sm:$0xff]   ;;  %v1666_v14 = vld [vmem:[%s2135_s0 + $0x18] sm:$0xff]  }
   0x6   :  { %v1667_v15 = vld [vmem:[%s2135_s0 + $0x20] sm:$0xff]   ;;  %v1682_v16 = vld [vmem:[%s2135_s0 + $0x98] sm:$0xff]   ;;  %v1668_v18 = vld [vmem:[%s2135_s0 + $0x28] sm:$0xff]  }
   0x7   :  { %1562 = vmatpush3.bf16.msra.mxu0 %v1656_v1  ;;  %1648 = vmatpush3.bf16.msra.mxu1 %v1656_v1  ;;  %v1683_v17 = vld [vmem:[%s2135_s0 + $0xa0] sm:$0xff]   ;;  %v1684_v19 = vld [vmem:[%s2135_s0 + $0xa8] sm:$0xff]   ;;  %v1669_v20 = vld [vmem:[%s2135_s0 + $0x30] sm:$0xff]  }
   0x8   :  { %1563 = vmatprep.subr.bf16.mxu0 %v1657_v2  ;;  %1641 = vmatprep.subr.bf16.mxu1 %v1657_v2  ;;  %v1685_v21 = vld [vmem:[%s2135_s0 + $0xb0] sm:$0xff]   ;;  %v1670_v22 = vld [vmem:[%s2135_s0 + $0x38] sm:$0xff]   ;;  %v1671_v24 = vld [vmem:[%s2135_s0 + $0x40] sm:$0xff]  }
   0x9   :  { %v1686_v23 = vld [vmem:[%s2135_s0 + $0xb8] sm:$0xff]   ;;  %v1687_v25 = vld [vmem:[%s2135_s0 + $0xc0] sm:$0xff]   ;;  %v1672_v26 = vld [vmem:[%s2135_s0 + $0x48] sm:$0xff]  }
   0xa   :  { %v1688_v27 = vld [vmem:[%s2135_s0 + $0xc8] sm:$0xff]   ;;  %v1673_v28 = vld [vmem:[%s2135_s0 + $0x50] sm:$0xff]   ;;  %v1674_v30 = vld [vmem:[%s2135_s0 + $0x58] sm:$0xff]  }
   0xb   :  { %1564 = vmatpush3.bf16.msra.mxu0 %v1657_v2  ;;  %1649 = vmatpush3.bf16.msra.mxu1 %v1657_v2  ;;  %v1689_v29 = vld [vmem:[%s2135_s0 + $0xd0] sm:$0xff]   ;;  %v1690_v31 = vld [vmem:[%s2135_s0 + $0xd8] sm:$0xff]   ;;  %v1675_v32 = vld [vmem:[%s2135_s0 + $0x60] sm:$0xff]  }
   0xc   :  { %1565 = vmatprep.subr.bf16.mxu0 %v1658_v3  ;;  %1642 = vmatprep.subr.bf16.mxu1 %v1658_v3  ;;  %v1691_v33 = vld [vmem:[%s2135_s0 + $0xe0] sm:$0xff]   ;;  %v1676_v34 = vld [vmem:[%s2135_s0 + $0x68] sm:$0xff]   ;;  %v1677_v36 = vld [vmem:[%s2135_s0 + $0x70] sm:$0xff]  }
   0xd   :  { %v1692_v35 = vld [vmem:[%s2135_s0 + $0xe8] sm:$0xff]   ;;  %v1693_v37 = vld [vmem:[%s2135_s0 + $0xf0] sm:$0xff]   ;;  %v1678_v38 = vld [vmem:[%s2135_s0 + $0x78] sm:$0xff]  }
   0xe   :  { %v1694_v39 = vld [vmem:[%s2135_s0 + $0xf8] sm:$0xff]  }
   0xf   :  { %1566 = vmatpush3.bf16.msra.mxu0 %v1658_v3  ;;  %1650 = vmatpush3.bf16.msra.mxu1 %v1658_v3 }
  0x10   :  { %1567 = vmatprep.subr.bf16.mxu0 %v1659_v5  ;;  %1643 = vmatprep.subr.bf16.mxu1 %v1659_v5 }
  0x13   :  { %1568 = vmatpush3.bf16.msra.mxu0 %v1659_v5  ;;  %1651 = vmatpush3.bf16.msra.mxu1 %v1659_v5 }
  0x14   :  { %1569 = vmatprep.subr.bf16.mxu0 %v1660_v6  ;;  %1644 = vmatprep.subr.bf16.mxu1 %v1660_v6 }
  0x17   :  { %1570 = vmatpush3.bf16.msra.mxu0 %v1660_v6  ;;  %1652 = vmatpush3.bf16.msra.mxu1 %v1660_v6 }
  0x18   :  { %1571 = vmatprep.subr.bf16.mxu0 %v1661_v7  ;;  %1645 = vmatprep.subr.bf16.mxu1 %v1661_v7 }
  0x1b   :  { %1572 = vmatpush3.bf16.msra.mxu0 %v1661_v7  ;;  %1653 = vmatpush3.bf16.msra.mxu1 %v1661_v7 }
  0x1c   :  { %1573 = vmatprep.subr.bf16.mxu0 %v1662_v8  ;;  %1646 = vmatprep.subr.bf16.mxu1 %v1662_v8 }
  0x1f   :  { %1574 = vmatpush3.bf16.msra.mxu0 %v1662_v8  ;;  %1654 = vmatpush3.bf16.msra.mxu1 %v1662_v8 }
  0x22   :  { %1576 = vmatmul.mubr.bf16.vlgmr.msra.gmra.mrb[0].mxu0 %v1664_v10  ;;  %1608 = vmatmul.mubr.bf16.vlgmr.msra.gmra.mrb[0].mxu1 %v1680_v12 }
  0x23   :  { %1579 = vmatprep.mubr.bf16.mxu0 %v1665_v11  ;;  %1611 = vmatprep.mubr.bf16.mxu1 %v1681_v13 }
  0x2a   :  { %1580 = vmatmul.mubr.bf16.gmra.mrb[4].mxu0 %v1666_v14  ;;  %1612 = vmatmul.mubr.bf16.gmra.mrb[4].mxu1 %v1682_v16 }
  0x2b   :  { %1583 = vmatprep.mubr.bf16.mxu0 %v1667_v15  ;;  %1615 = vmatprep.mubr.bf16.mxu1 %v1683_v17 }
  0x32   :  { %1584 = vmatmul.mubr.bf16.gmra.mrb[8].mxu0 %v1668_v18  ;;  %1616 = vmatmul.mubr.bf16.gmra.mrb[8].mxu1 %v1684_v19 }
  0x33   :  { %1587 = vmatprep.mubr.bf16.mxu0 %v1669_v20  ;;  %1619 = vmatprep.mubr.bf16.mxu1 %v1685_v21 }
  0x3a   :  { %1588 = vmatmul.mubr.bf16.gmra.mrb[12].mxu0 %v1670_v22  ;;  %1620 = vmatmul.mubr.bf16.gmra.mrb[12].mxu1 %v1686_v23 }
  0x3b   :  { %1591 = vmatprep.mubr.bf16.mxu0 %v1671_v24  ;;  %1623 = vmatprep.mubr.bf16.mxu1 %v1687_v25 }
  0x42   :  { %1592 = vmatmul.mubr.bf16.gmra.mrb[16].mxu0 %v1672_v26  ;;  %1624 = vmatmul.mubr.bf16.gmra.mrb[16].mxu1 %v1688_v27 }
  0x43   :  { %1595 = vmatprep.mubr.bf16.mxu0 %v1673_v28  ;;  %1627 = vmatprep.mubr.bf16.mxu1 %v1689_v29 }
  0x4a   :  { %1596 = vmatmul.mubr.bf16.gmra.mrb[20].mxu0 %v1674_v30  ;;  %1628 = vmatmul.mubr.bf16.gmra.mrb[20].mxu1 %v1690_v31 }
  0x4b   :  { %1599 = vmatprep.mubr.bf16.mxu0 %v1675_v32  ;;  %1631 = vmatprep.mubr.bf16.mxu1 %v1691_v33 }
  0x52   :  { %1600 = vmatmul.mubr.bf16.gmra.mrb[24].mxu0 %v1676_v34  ;;  %1632 = vmatmul.mubr.bf16.gmra.mrb[24].mxu1 %v1692_v35 }
  0x53   :  { %1603 = vmatprep.mubr.bf16.mxu0 %v1677_v36  ;;  %1635 = vmatprep.mubr.bf16.mxu1 %v1693_v37 }
  0x5a   :  { %1604 = vmatmul.mubr.bf16.gmra.mrb[28].mxu0 %v1678_v38  ;;  %1636 = vmatmul.mubr.bf16.gmra.mrb[28].mxu1 %v1694_v39 }
  0xf5   :  { %v1577_v40 = vpop.f32.mrb[0].mxu0  ;;  %v1840_v41 = vpop.f32.mrb[0].mxu1 }
  0xf6   :  { %v369_v42 = vpop.f32.mrb[1].mxu0  ;;  %v1842_v43 = vpop.f32.mrb[1].mxu1  ;;  %v1016_v55 = vmul.f32 %v1577_v40, %v1577_v40 }
  0xf7   :  { %v1578_v44 = vpop.f32.mrb[2].mxu0  ;;  %v1844_v45 = vpop.f32.mrb[2].mxu1  ;;  %v1014_v46 = vmul.f32 %v369_v42, %v369_v42 }
  0xf8   :  { %v1336_v47 = vpack.c.bf16 %v1578_v44, %v1577_v40  ;;  %v372_v48 = vpop.f32.mrb[3].mxu0  ;;  %v1416_v49 = vpack.c.bf16 %v1844_v45, %v1840_v41  ;;  %v1848_v50 = vpop.f32.mrb[3].mxu1  ;;  %v1017_v58 = vmul.f32 %v1578_v44, %v1578_v44 }
  0xf9   :  { %v1331_v51 = vpack.c.bf16 %v372_v48, %v369_v42  ;;  %v944_v52 = vadd.f32 %v372_v48, %v369_v42  ;;  %v1015_v53 = vmul.f32 %v372_v48, %v372_v48  ;;  %v1411_v54 = vpack.c.bf16 %v1848_v50, %v1842_v43 }
  0xfa   :  { %1488 = vst [vmem:[%s2136_s2 + $0x8] sm:$0xff] %v1336_v47   ;;  %1504 = vst [vmem:[%s2136_s2 + $0x88] sm:$0xff] %v1416_v49  }
  0xfb   :  { %1332 = vst [vmem:[%s2136_s2] sm:$0xff] %v1331_v51   ;;  %v945_v56 = vadd.f32 %v1577_v40, %v944_v52  ;;  %v1078_v57 = vadd.f32 %v1015_v53, %v1014_v46  ;;  %1503 = vst [vmem:[%s2136_s2 + $0x80] sm:$0xff] %v1411_v54  }
  0xfd   :  { %v1079_v59 = vadd.f32 %v1078_v57, %v1016_v55  ;;  %v1581_v60 = vpop.f32.mrb[4].mxu0  ;;  %v946_v61 = vadd.f32 %v1578_v44, %v945_v56  ;;  %v1864_v62 = vpop.f32.mrb[4].mxu1 }
  0xfe   :  { %v385_v63 = vpop.f32.mrb[5].mxu0  ;;  %v1866_v0 = vpop.f32.mrb[5].mxu1  ;;  %v1020_v15 = vmul.f32 %v1581_v60, %v1581_v60 }
  0xff   :  { %v947_v1 = vadd.f32 %v946_v61, %v385_v63  ;;  %v1018_v2 = vmul.f32 %v385_v63, %v385_v63  ;;  %v1080_v3 = vadd.f32 %v1079_v59, %v1017_v58  ;;  %v1582_v4 = vpop.f32.mrb[6].mxu0  ;;  %v1868_v5 = vpop.f32.mrb[6].mxu1 }
 0x100   :  { %v1346_v6 = vpack.c.bf16 %v1582_v4, %v1581_v60  ;;  %v388_v7 = vpop.f32.mrb[7].mxu0  ;;  %v1426_v8 = vpack.c.bf16 %v1868_v5, %v1864_v62  ;;  %v1872_v9 = vpop.f32.mrb[7].mxu1  ;;  %v1021_v18 = vmul.f32 %v1582_v4, %v1582_v4 }
 0x101   :  { %v1081_v10 = vadd.f32 %v1080_v3, %v1018_v2  ;;  %v1341_v11 = vpack.c.bf16 %v388_v7, %v385_v63  ;;  %v948_v12 = vadd.f32 %v947_v1, %v388_v7  ;;  %v1019_v13 = vmul.f32 %v388_v7, %v388_v7 }
 0x102   :  { %1490 = vst [vmem:[%s2136_s2 + $0x18] sm:$0xff] %v1346_v6   ;;  %1506 = vst [vmem:[%s2136_s2 + $0x98] sm:$0xff] %v1426_v8   ;;  %v1421_v14 = vpack.c.bf16 %v1872_v9, %v1866_v0 }
 0x103   :  { %1489 = vst [vmem:[%s2136_s2 + $0x10] sm:$0xff] %v1341_v11   ;;  %v949_v16 = vadd.f32 %v1581_v60, %v948_v12  ;;  %v1082_v17 = vadd.f32 %v1081_v10, %v1019_v13 }
 0x104   :  { %1505 = vst [vmem:[%s2136_s2 + $0x90] sm:$0xff] %v1421_v14  }
 0x105   :  { %v1083_v19 = vadd.f32 %v1082_v17, %v1020_v15  ;;  %v1585_v20 = vpop.f32.mrb[8].mxu0  ;;  %v950_v21 = vadd.f32 %v1582_v4, %v949_v16  ;;  %v1888_v22 = vpop.f32.mrb[8].mxu1 }
 0x106   :  { %v401_v23 = vpop.f32.mrb[9].mxu0  ;;  %v1890_v24 = vpop.f32.mrb[9].mxu1  ;;  %v1024_v39 = vmul.f32 %v1585_v20, %v1585_v20 }
 0x107   :  { %v951_v25 = vadd.f32 %v950_v21, %v401_v23  ;;  %v1022_v26 = vmul.f32 %v401_v23, %v401_v23  ;;  %v1084_v27 = vadd.f32 %v1083_v19, %v1021_v18  ;;  %v1586_v28 = vpop.f32.mrb[10].mxu0  ;;  %v1892_v29 = vpop.f32.mrb[10].mxu1 }
 0x108   :  { %v1356_v30 = vpack.c.bf16 %v1586_v28, %v1585_v20  ;;  %v404_v31 = vpop.f32.mrb[11].mxu0  ;;  %v1436_v32 = vpack.c.bf16 %v1892_v29, %v1888_v22  ;;  %v1896_v33 = vpop.f32.mrb[11].mxu1  ;;  %v1025_v44 = vmul.f32 %v1586_v28, %v1586_v28 }
 0x109   :  { %v1085_v34 = vadd.f32 %v1084_v27, %v1022_v26  ;;  %v1351_v35 = vpack.c.bf16 %v404_v31, %v401_v23  ;;  %v952_v36 = vadd.f32 %v951_v25, %v404_v31  ;;  %v1023_v37 = vmul.f32 %v404_v31, %v404_v31 }
 0x10a   :  { %1492 = vst [vmem:[%s2136_s2 + $0x28] sm:$0xff] %v1356_v30   ;;  %1508 = vst [vmem:[%s2136_s2 + $0xa8] sm:$0xff] %v1436_v32   ;;  %v1431_v38 = vpack.c.bf16 %v1896_v33, %v1890_v24 }
 0x10b   :  { %1491 = vst [vmem:[%s2136_s2 + $0x20] sm:$0xff] %v1351_v35   ;;  %v953_v40 = vadd.f32 %v1585_v20, %v952_v36  ;;  %v1086_v42 = vadd.f32 %v1085_v34, %v1023_v37 }
 0x10c   :  { %1507 = vst [vmem:[%s2136_s2 + $0xa0] sm:$0xff] %v1431_v38  }
 0x10d   :  { %v1087_v46 = vadd.f32 %v1086_v42, %v1024_v39  ;;  %v1589_v47 = vpop.f32.mrb[12].mxu0  ;;  %v954_v48 = vadd.f32 %v1586_v28, %v953_v40  ;;  %v1912_v49 = vpop.f32.mrb[12].mxu1 }
 0x10e   :  { %v417_v51 = vpop.f32.mrb[13].mxu0  ;;  %v1914_v52 = vpop.f32.mrb[13].mxu1  ;;  %v1028_v6 = vmul.f32 %v1589_v47, %v1589_v47 }
 0x10f   :  { %v955_v53 = vadd.f32 %v954_v48, %v417_v51  ;;  %v1026_v54 = vmul.f32 %v417_v51, %v417_v51  ;;  %v1088_v55 = vadd.f32 %v1087_v46, %v1025_v44  ;;  %v1590_v56 = vpop.f32.mrb[14].mxu0  ;;  %v1916_v57 = vpop.f32.mrb[14].mxu1 }
 0x110   :  { %v1366_v58 = vpack.c.bf16 %v1590_v56, %v1589_v47  ;;  %v420_v59 = vpop.f32.mrb[15].mxu0  ;;  %v1446_v60 = vpack.c.bf16 %v1916_v57, %v1912_v49  ;;  %v1920_v61 = vpop.f32.mrb[15].mxu1  ;;  %v1029_v10 = vmul.f32 %v1590_v56, %v1590_v56 }
 0x111   :  { %v1089_v63 = vadd.f32 %v1088_v55, %v1026_v54  ;;  %v1361_v1 = vpack.c.bf16 %v420_v59, %v417_v51  ;;  %v956_v2 = vadd.f32 %v955_v53, %v420_v59  ;;  %v1027_v3 = vmul.f32 %v420_v59, %v420_v59 }
 0x112   :  { %1494 = vst [vmem:[%s2136_s2 + $0x38] sm:$0xff] %v1366_v58   ;;  %1510 = vst [vmem:[%s2136_s2 + $0xb8] sm:$0xff] %v1446_v60   ;;  %v1441_v4 = vpack.c.bf16 %v1920_v61, %v1914_v52 }
 0x113   :  { %1493 = vst [vmem:[%s2136_s2 + $0x30] sm:$0xff] %v1361_v1   ;;  %v957_v7 = vadd.f32 %v1589_v47, %v956_v2  ;;  %v1090_v8 = vadd.f32 %v1089_v63, %v1027_v3 }
 0x114   :  { %1509 = vst [vmem:[%s2136_s2 + $0xb0] sm:$0xff] %v1441_v4  }
 0x115   :  { %v1091_v11 = vadd.f32 %v1090_v8, %v1028_v6  ;;  %v1593_v12 = vpop.f32.mrb[16].mxu0  ;;  %v958_v13 = vadd.f32 %v1590_v56, %v957_v7  ;;  %v1936_v14 = vpop.f32.mrb[16].mxu1 }
 0x116   :  { %v433_v15 = vpop.f32.mrb[17].mxu0  ;;  %v1938_v16 = vpop.f32.mrb[17].mxu1  ;;  %v1032_v35 = vmul.f32 %v1593_v12, %v1593_v12 }
 0x117   :  { %v959_v17 = vadd.f32 %v958_v13, %v433_v15  ;;  %v1030_v18 = vmul.f32 %v433_v15, %v433_v15  ;;  %v1092_v19 = vadd.f32 %v1091_v11, %v1029_v10  ;;  %v1594_v20 = vpop.f32.mrb[18].mxu0  ;;  %v1940_v21 = vpop.f32.mrb[18].mxu1 }
 0x118   :  { %v1376_v23 = vpack.c.bf16 %v1594_v20, %v1593_v12  ;;  %v436_v25 = vpop.f32.mrb[19].mxu0  ;;  %v1456_v26 = vpack.c.bf16 %v1940_v21, %v1936_v14  ;;  %v1944_v27 = vpop.f32.mrb[19].mxu1  ;;  %v1033_v38 = vmul.f32 %v1594_v20, %v1594_v20 }
 0x119   :  { %v1093_v28 = vadd.f32 %v1092_v19, %v1030_v18  ;;  %v1371_v30 = vpack.c.bf16 %v436_v25, %v433_v15  ;;  %v960_v31 = vadd.f32 %v959_v17, %v436_v25  ;;  %v1031_v32 = vmul.f32 %v436_v25, %v436_v25 }
 0x11a   :  { %1496 = vst [vmem:[%s2136_s2 + $0x48] sm:$0xff] %v1376_v23   ;;  %1512 = vst [vmem:[%s2136_s2 + $0xc8] sm:$0xff] %v1456_v26   ;;  %v1451_v34 = vpack.c.bf16 %v1944_v27, %v1938_v16 }
 0x11b   :  { %1495 = vst [vmem:[%s2136_s2 + $0x40] sm:$0xff] %v1371_v30   ;;  %v961_v36 = vadd.f32 %v1593_v12, %v960_v31  ;;  %v1094_v37 = vadd.f32 %v1093_v28, %v1031_v32 }
 0x11c   :  { %1511 = vst [vmem:[%s2136_s2 + $0xc0] sm:$0xff] %v1451_v34  }
 0x11d   :  { %v1095_v39 = vadd.f32 %v1094_v37, %v1032_v35  ;;  %v1597_v40 = vpop.f32.mrb[20].mxu0  ;;  %v962_v42 = vadd.f32 %v1594_v20, %v961_v36  ;;  %v1960_v44 = vpop.f32.mrb[20].mxu1 }
 0x11e   :  { %v449_v46 = vpop.f32.mrb[21].mxu0  ;;  %v1962_v47 = vpop.f32.mrb[21].mxu1  ;;  %v1036_v6 = vmul.f32 %v1597_v40, %v1597_v40 }
 0x11f   :  { %v963_v48 = vadd.f32 %v962_v42, %v449_v46  ;;  %v1034_v51 = vmul.f32 %v449_v46, %v449_v46  ;;  %v1096_v53 = vadd.f32 %v1095_v39, %v1033_v38  ;;  %v1598_v54 = vpop.f32.mrb[22].mxu0  ;;  %v1964_v55 = vpop.f32.mrb[22].mxu1 }
 0x120   :  { %v1386_v56 = vpack.c.bf16 %v1598_v54, %v1597_v40  ;;  %v452_v58 = vpop.f32.mrb[23].mxu0  ;;  %v1466_v59 = vpack.c.bf16 %v1964_v55, %v1960_v44  ;;  %v1968_v60 = vpop.f32.mrb[23].mxu1  ;;  %v1037_v10 = vmul.f32 %v1598_v54, %v1598_v54 }
 0x121   :  { %v1097_v63 = vadd.f32 %v1096_v53, %v1034_v51  ;;  %v1381_v1 = vpack.c.bf16 %v452_v58, %v449_v46  ;;  %v964_v2 = vadd.f32 %v963_v48, %v452_v58  ;;  %v1035_v3 = vmul.f32 %v452_v58, %v452_v58 }
 0x122   :  { %1498 = vst [vmem:[%s2136_s2 + $0x58] sm:$0xff] %v1386_v56   ;;  %1514 = vst [vmem:[%s2136_s2 + $0xd8] sm:$0xff] %v1466_v59   ;;  %v1461_v4 = vpack.c.bf16 %v1968_v60, %v1962_v47 }
 0x123   :  { %1497 = vst [vmem:[%s2136_s2 + $0x50] sm:$0xff] %v1381_v1   ;;  %v965_v7 = vadd.f32 %v1597_v40, %v964_v2  ;;  %v1098_v8 = vadd.f32 %v1097_v63, %v1035_v3 }
 0x124   :  { %1513 = vst [vmem:[%s2136_s2 + $0xd0] sm:$0xff] %v1461_v4  }
 0x125   :  { %v1099_v11 = vadd.f32 %v1098_v8, %v1036_v6  ;;  %v1601_v12 = vpop.f32.mrb[24].mxu0  ;;  %v966_v13 = vadd.f32 %v1598_v54, %v965_v7  ;;  %v1984_v15 = vpop.f32.mrb[24].mxu1 }
 0x126   :  { %v465_v17 = vpop.f32.mrb[25].mxu0  ;;  %v1986_v18 = vpop.f32.mrb[25].mxu1  ;;  %v1040_v39 = vmul.f32 %v1601_v12, %v1601_v12 }
 0x127   :  { %v967_v19 = vadd.f32 %v966_v13, %v465_v17  ;;  %v1038_v20 = vmul.f32 %v465_v17, %v465_v17  ;;  %v1100_v23 = vadd.f32 %v1099_v11, %v1037_v10  ;;  %v1602_v25 = vpop.f32.mrb[26].mxu0  ;;  %v1988_v26 = vpop.f32.mrb[26].mxu1 }
 0x128   :  { %v1396_v28 = vpack.c.bf16 %v1602_v25, %v1601_v12  ;;  %v468_v30 = vpop.f32.mrb[27].mxu0  ;;  %v1476_v31 = vpack.c.bf16 %v1988_v26, %v1984_v15  ;;  %v1992_v32 = vpop.f32.mrb[27].mxu1  ;;  %v1041_v46 = vmul.f32 %v1602_v25, %v1602_v25 }
 0x129   :  { %v1101_v34 = vadd.f32 %v1100_v23, %v1038_v20  ;;  %v1391_v35 = vpack.c.bf16 %v468_v30, %v465_v17  ;;  %v968_v36 = vadd.f32 %v967_v19, %v468_v30  ;;  %v1039_v37 = vmul.f32 %v468_v30, %v468_v30 }
 0x12a   :  { %1500 = vst [vmem:[%s2136_s2 + $0x68] sm:$0xff] %v1396_v28   ;;  %1516 = vst [vmem:[%s2136_s2 + $0xe8] sm:$0xff] %v1476_v31   ;;  %v1471_v38 = vpack.c.bf16 %v1992_v32, %v1986_v18  ;;  %v1046_v31 = vmul.f32 %v1842_v43, %v1842_v43 }
 0x12b   :  { %1499 = vst [vmem:[%s2136_s2 + $0x60] sm:$0xff] %v1391_v35   ;;  %v969_v40 = vadd.f32 %v1601_v12, %v968_v36  ;;  %v1102_v42 = vadd.f32 %v1101_v34, %v1039_v37 }
 0x12c   :  { %1515 = vst [vmem:[%s2136_s2 + $0xe0] sm:$0xff] %v1471_v38   ;;  %v1047_v38 = vmul.f32 %v1848_v50, %v1848_v50 }
 0x12d   :  { %v1103_v48 = vadd.f32 %v1102_v42, %v1040_v39  ;;  %v1605_v51 = vpop.f32.mrb[28].mxu0  ;;  %v970_v53 = vadd.f32 %v1602_v25, %v969_v40  ;;  %v2008_v54 = vpop.f32.mrb[28].mxu1  ;;  %v1048_v39 = vmul.f32 %v1840_v41, %v1840_v41 }
 0x12e   :  { %v481_v56 = vpop.f32.mrb[29].mxu0  ;;  %v2010_v58 = vpop.f32.mrb[29].mxu1  ;;  %v1044_v19 = vmul.f32 %v1605_v51, %v1605_v51 }
 0x12f   :  { %v971_v59 = vadd.f32 %v970_v53, %v481_v56  ;;  %v1042_v63 = vmul.f32 %v481_v56, %v481_v56  ;;  %v1104_v1 = vadd.f32 %v1103_v48, %v1041_v46  ;;  %v1606_v2 = vpop.f32.mrb[30].mxu0  ;;  %v2012_v3 = vpop.f32.mrb[30].mxu1  ;;  %v1049_v46 = vmul.f32 %v1844_v45, %v1844_v45 }
 0x130   :  { %v1406_v4 = vpack.c.bf16 %v1606_v2, %v1605_v51  ;;  %v484_v6 = vpop.f32.mrb[31].mxu0  ;;  %v1486_v7 = vpack.c.bf16 %v2012_v3, %v2008_v54  ;;  %v2016_v8 = vpop.f32.mrb[31].mxu1  ;;  %v1045_v25 = vmul.f32 %v1606_v2, %v1606_v2 }
 0x131   :  { %v1105_v10 = vadd.f32 %v1104_v1, %v1042_v63  ;;  %v1401_v11 = vpack.c.bf16 %v484_v6, %v481_v56  ;;  %v972_v12 = vadd.f32 %v971_v59, %v484_v6  ;;  %v1043_v13 = vmul.f32 %v484_v6, %v484_v6 }
 0x132   :  { %1502 = vst [vmem:[%s2136_s2 + $0x78] sm:$0xff] %v1406_v4   ;;  %1518 = vst [vmem:[%s2136_s2 + $0xf8] sm:$0xff] %v1486_v7   ;;  %v1481_v17 = vpack.c.bf16 %v2016_v8, %v2010_v58  ;;  %v1051_v63 = vmul.f32 %v1872_v9, %v1872_v9 }
 0x133   :  { %1501 = vst [vmem:[%s2136_s2 + $0x70] sm:$0xff] %v1401_v11   ;;  %v973_v20 = vadd.f32 %v1605_v51, %v972_v12  ;;  %v1106_v23 = vadd.f32 %v1105_v10, %v1043_v13  ;;  %v1055_v12 = vmul.f32 %v1896_v33, %v1896_v33 }
 0x134   :  { %1517 = vst [vmem:[%s2136_s2 + $0xf0] sm:$0xff] %v1481_v17  }
 0x135   :  { %v1107_v28 = vadd.f32 %v1106_v23, %v1044_v19  ;;  %v974_v30 = vadd.f32 %v1606_v2, %v973_v20 }
 0x137   :  { %v975_v34 = vadd.f32 %v974_v30, %v1842_v43  ;;  %v1108_v35 = vadd.f32 %v1107_v28, %v1045_v25  ;;  %v1050_v43 = vmul.f32 %v1866_v0, %v1866_v0  ;;  %v1059_v30 = vmul.f32 %v1920_v61, %v1920_v61 }
 0x139   :  { %v1109_v36 = vadd.f32 %v1108_v35, %v1046_v31  ;;  %v976_v37 = vadd.f32 %v975_v34, %v1848_v50 }
 0x13b   :  { %v977_v40 = vadd.f32 %v1840_v41, %v976_v37  ;;  %v1110_v42 = vadd.f32 %v1109_v36, %v1047_v38  ;;  %v1052_v41 = vmul.f32 %v1864_v62, %v1864_v62 }
 0x13d   :  { %v1111_v48 = vadd.f32 %v1110_v42, %v1048_v39  ;;  %v978_v51 = vadd.f32 %v1844_v45, %v977_v40  ;;  %v1053_v45 = vmul.f32 %v1868_v5, %v1868_v5  ;;  %v1063_v40 = vmul.f32 %v1944_v27, %v1944_v27 }
 0x13f   :  { %v979_v53 = vadd.f32 %v978_v51, %v1866_v0  ;;  %v1112_v56 = vadd.f32 %v1111_v48, %v1049_v46  ;;  %v1054_v0 = vmul.f32 %v1890_v24, %v1890_v24 }
 0x141   :  { %v1113_v59 = vadd.f32 %v1112_v56, %v1050_v43  ;;  %v980_v50 = vadd.f32 %v979_v53, %v1872_v9 }
 0x143   :  { %v981_v1 = vadd.f32 %v1864_v62, %v980_v50  ;;  %v1114_v2 = vadd.f32 %v1113_v59, %v1051_v63  ;;  %v1056_v62 = vmul.f32 %v1888_v22, %v1888_v22  ;;  %v1067_v59 = vmul.f32 %v1968_v60, %v1968_v60 }
 0x145   :  { %v1115_v4 = vadd.f32 %v1114_v2, %v1052_v41  ;;  %v982_v6 = vadd.f32 %v1868_v5, %v981_v1  ;;  %v1057_v5 = vmul.f32 %v1892_v29, %v1892_v29 }
 0x147   :  { %v983_v7 = vadd.f32 %v982_v6, %v1890_v24  ;;  %v1116_v10 = vadd.f32 %v1115_v4, %v1053_v45  ;;  %v1058_v24 = vmul.f32 %v1914_v52, %v1914_v52  ;;  %v1071_v6 = vmul.f32 %v1992_v32, %v1992_v32 }
 0x149   :  { %v1117_v11 = vadd.f32 %v1116_v10, %v1054_v0  ;;  %v984_v9 = vadd.f32 %v983_v7, %v1896_v33 }
 0x14b   :  { %v985_v13 = vadd.f32 %v1888_v22, %v984_v9  ;;  %v1118_v17 = vadd.f32 %v1117_v11, %v1055_v12  ;;  %v1060_v22 = vmul.f32 %v1912_v49, %v1912_v49 }
 0x14d   :  { %v1119_v19 = vadd.f32 %v1118_v17, %v1056_v62  ;;  %v986_v20 = vadd.f32 %v1892_v29, %v985_v13  ;;  %v1061_v29 = vmul.f32 %v1916_v57, %v1916_v57  ;;  %v1075_v13 = vmul.f32 %v2016_v8, %v2016_v8 }
 0x14f   :  { %v987_v23 = vadd.f32 %v986_v20, %v1914_v52  ;;  %v1120_v25 = vadd.f32 %v1119_v19, %v1057_v5  ;;  %v1062_v52 = vmul.f32 %v1938_v16, %v1938_v16 }
 0x151   :  { %v1121_v28 = vadd.f32 %v1120_v25, %v1058_v24  ;;  %v988_v33 = vadd.f32 %v987_v23, %v1920_v61 }
 0x153   :  { %v989_v31 = vadd.f32 %v1912_v49, %v988_v33  ;;  %v1122_v34 = vadd.f32 %v1121_v28, %v1059_v30  ;;  %v1064_v49 = vmul.f32 %v1936_v14, %v1936_v14 }
 0x155   :  { %v1123_v35 = vadd.f32 %v1122_v34, %v1060_v22  ;;  %v990_v36 = vadd.f32 %v1916_v57, %v989_v31  ;;  %v1065_v57 = vmul.f32 %v1940_v21, %v1940_v21 }
 0x157   :  { %v991_v37 = vadd.f32 %v990_v36, %v1938_v16  ;;  %v1124_v38 = vadd.f32 %v1123_v35, %v1061_v29  ;;  %v1066_v16 = vmul.f32 %v1962_v47, %v1962_v47 }
 0x159   :  { %v1125_v39 = vadd.f32 %v1124_v38, %v1062_v52  ;;  %v992_v61 = vadd.f32 %v991_v37, %v1944_v27 }
 0x15b   :  { %v993_v42 = vadd.f32 %v1936_v14, %v992_v61  ;;  %v1126_v46 = vadd.f32 %v1125_v39, %v1063_v40  ;;  %v1068_v14 = vmul.f32 %v1960_v44, %v1960_v44 }
 0x15d   :  { %v1127_v48 = vadd.f32 %v1126_v46, %v1064_v49  ;;  %v994_v51 = vadd.f32 %v1940_v21, %v993_v42  ;;  %v1069_v21 = vmul.f32 %v1964_v55, %v1964_v55 }
 0x15f   :  { %v995_v43 = vadd.f32 %v994_v51, %v1962_v47  ;;  %v1128_v53 = vadd.f32 %v1127_v48, %v1065_v57  ;;  %v1070_v47 = vmul.f32 %v1986_v18, %v1986_v18 }
 0x161   :  { %v1129_v56 = vadd.f32 %v1128_v53, %v1066_v16  ;;  %v996_v27 = vadd.f32 %v995_v43, %v1968_v60 }
 0x163   :  { %v997_v50 = vadd.f32 %v1960_v44, %v996_v27  ;;  %v1130_v63 = vadd.f32 %v1129_v56, %v1067_v59  ;;  %v1072_v44 = vmul.f32 %v1984_v15, %v1984_v15 }
 0x165   :  { %v1131_v41 = vadd.f32 %v1130_v63, %v1068_v14  ;;  %v998_v1 = vadd.f32 %v1964_v55, %v997_v50  ;;  %v1073_v55 = vmul.f32 %v1988_v26, %v1988_v26 }
 0x167   :  { %v999_v2 = vadd.f32 %v998_v1, %v1986_v18  ;;  %v1132_v45 = vadd.f32 %v1131_v41, %v1069_v21  ;;  %v1074_v18 = vmul.f32 %v2010_v58, %v2010_v58 }
 0x169   :  { %v1133_v4 = vadd.f32 %v1132_v45, %v1070_v47  ;;  %v1000_v60 = vadd.f32 %v999_v2, %v1992_v32 }
 0x16b   :  { %v1001_v0 = vadd.f32 %v1984_v15, %v1000_v60  ;;  %v1134_v7 = vadd.f32 %v1133_v4, %v1071_v6  ;;  %v1076_v15 = vmul.f32 %v2008_v54, %v2008_v54 }
 0x16d   :  { %v1135_v10 = vadd.f32 %v1134_v7, %v1072_v44  ;;  %v1002_v11 = vadd.f32 %v1988_v26, %v1001_v0  ;;  %v1077_v26 = vmul.f32 %v2012_v3, %v2012_v3 }
 0x16f   :  { %v1003_v9 = vadd.f32 %v1002_v11, %v2010_v58  ;;  %v1136_v12 = vadd.f32 %v1135_v10, %v1073_v55 }
 0x171   :  { %v1137_v62 = vadd.f32 %v1136_v12, %v1074_v18  ;;  %v1004_v32 = vadd.f32 %v1003_v9, %v2016_v8 }
 0x173   :  { %v1005_v17 = vadd.f32 %v2008_v54, %v1004_v32  ;;  %v1138_v5 = vadd.f32 %v1137_v62, %v1075_v13 }
 0x175   :  { %v1006_v19 = vadd.f32 %v2012_v3, %v1005_v17  ;;  %v1139_v20 = vadd.f32 %v1138_v5, %v1076_v15 }
 0x177   :  { %v1007_v58 = vrot.slane %v1006_v19, 4  ;;  %v1140_v24 = vadd.f32 %v1139_v20, %v1077_v26 }
 0x179   :  { %v1008_v23 = vadd.f32 %v1007_v58, %v1006_v19  ;;  %v1141_v25 = vrot.slane %v1140_v24, 4 }
 0x17b   :  { %v1009_v28 = vrot.slane %v1008_v23, 2  ;;  %v1142_v33 = vadd.f32 %v1141_v25, %v1140_v24 }
 0x17d   :  { %v1010_v30 = vadd.f32 %v1009_v28, %v1008_v23  ;;  %v1143_v8 = vrot.slane %v1142_v33, 2 }
 0x17f   :  { %v1011_v22 = vrot.slane %v1010_v30, 1  ;;  %v1144_v31 = vadd.f32 %v1143_v8, %v1142_v33 }
 0x181   :  { %v1012_v34 = vadd.f32 %v1011_v22, %v1010_v30  ;;  %v1145_v29 = vrot.slane %v1144_v31, 1 }
 0x183   :  { %1013 = vst [vmem:[%s2137_s3] sm:$0x1] %v1012_v34  ;;  %v1146_v54 = vadd.f32 %v1145_v29, %v1144_v31 }
 0x185   :  { %1147 = vst [vmem:[%s2138_s4] sm:$0x1] %v1146_v54 }

// kernel: residual_block_pallas.8
= control target key start
LH: loop header
LB: loop body
LE: loop exit
PB: predicated region body
PF: predicated region fallthrough
CT: control target
= control target key end

     0   :  { %s1502_s0 = inlined_call_operand.vmem [shape: bf16[512,128], index: 0, kind: input, shape index: {}]   ;;  %s1503_s1 = inlined_call_operand.vmem [shape: f32[1,128], index: 1, kind: input, shape index: {}]   ;;  %s1504_s2 = inlined_call_operand.vmem [shape: f32[1,128], index: 2, kind: input, shape index: {}]   ;;  %s1505_s3 = inlined_call_operand.vmem [shape: bf16[512,128], index: 3, kind: output, shape index: {}]  }
   0x1   :  { %v803_v0 = vld [vmem:[%s1502_s0] sm:$0xff]   ;;  %v1090_v4 = vld [vmem:[%s1502_s0 + $0x8] sm:$0xff]   ;;  %v1091_v5 = vld [vmem:[%s1502_s0 + $0x10] sm:$0xff]  }
   0x2   :  { %v1178_v1 = vld [vmem:[%s1503_s1] ss:$0 sm:$0xff]  ;;  %v804_v2 = vunpack.c.l.bf16 %v803_v0  ;;  %v805_v3 = vunpack.c.h.bf16 %v803_v0  ;;  %v1092_v6 = vld [vmem:[%s1502_s0 + $0x18] sm:$0xff]   ;;  %v808_v8 = vunpack.c.l.bf16 %v1090_v4  ;;  %v809_v9 = vunpack.c.h.bf16 %v1090_v4  ;;  %v1094_v33 = vld [vmem:[%s1502_s0 + $0x28] sm:$0xff]  }
   0x3   :  { %v1192_v7 = vld [vmem:[%s1504_s2] ss:$0 sm:$0xff]  ;;  %v812_v10 = vunpack.c.l.bf16 %v1091_v5  ;;  %v813_v11 = vunpack.c.h.bf16 %v1091_v5  ;;  %v816_v14 = vunpack.c.l.bf16 %v1092_v6  ;;  %v817_v15 = vunpack.c.h.bf16 %v1092_v6  ;;  %v1095_v38 = vld [vmem:[%s1502_s0 + $0x30] sm:$0xff]   ;;  %v1096_v43 = vld [vmem:[%s1502_s0 + $0x38] sm:$0xff]  }
   0x4   :  { %v149_v12 = vmul.f32 %v804_v2, %v1178_v1  ;;  %v150_v13 = vmul.f32 %v805_v3, %v1178_v1  ;;  %v151_v16 = vmul.f32 %v808_v8, %v1178_v1  ;;  %v152_v17 = vmul.f32 %v809_v9, %v1178_v1  ;;  %v1093_v28 = vld [vmem:[%s1502_s0 + $0x20] sm:$0xff]  }
   0x5   :  { %v153_v18 = vmul.f32 %v812_v10, %v1178_v1  ;;  %v154_v19 = vmul.f32 %v813_v11, %v1178_v1  ;;  %v155_v22 = vmul.f32 %v816_v14, %v1178_v1  ;;  %v156_v23 = vmul.f32 %v817_v15, %v1178_v1  ;;  %v1097_v0 = vld [vmem:[%s1502_s0 + $0x40] sm:$0xff]   ;;  %v1098_v11 = vld [vmem:[%s1502_s0 + $0x48] sm:$0xff]  }
   0x6   :  { %v220_v20 = vadd.f32 %v1192_v7, %v149_v12  ;;  %v221_v21 = vadd.f32 %v1192_v7, %v150_v13  ;;  %v222_v24 = vadd.f32 %v1192_v7, %v151_v16  ;;  %v223_v25 = vadd.f32 %v1192_v7, %v152_v17  ;;  %v1099_v16 = vld [vmem:[%s1502_s0 + $0x50] sm:$0xff]  }
   0x7   :  { %v224_v26 = vadd.f32 %v1192_v7, %v153_v18  ;;  %v225_v27 = vadd.f32 %v1192_v7, %v154_v19  ;;  %v226_v31 = vadd.f32 %v1192_v7, %v155_v22  ;;  %v227_v32 = vadd.f32 %v1192_v7, %v156_v23 }
   0x8   :  { %v284_v29 = vmax.f32 %v220_v20, 0.0  ;;  %v285_v30 = vmax.f32 %v221_v21, 0.0  ;;  %v286_v34 = vmax.f32 %v222_v24, 0.0  ;;  %v287_v35 = vmax.f32 %v223_v25, 0.0  ;;  %v1100_v25 = vld [vmem:[%s1502_s0 + $0x58] sm:$0xff]  }
   0x9   :  { %v288_v36 = vmax.f32 %v224_v26, 0.0  ;;  %v289_v37 = vmax.f32 %v225_v27, 0.0  ;;  %v290_v40 = vmax.f32 %v226_v31, 0.0  ;;  %v291_v41 = vmax.f32 %v227_v32, 0.0 }
   0xa   :  { %v933_v39 = vpack.c.bf16 %v285_v30, %v284_v29  ;;  %v820_v42 = vunpack.c.l.bf16 %v1093_v28  ;;  %v938_v44 = vpack.c.bf16 %v287_v35, %v286_v34  ;;  %v821_v46 = vunpack.c.h.bf16 %v1093_v28 }
   0xb   :  { %v943_v45 = vpack.c.bf16 %v289_v37, %v288_v36  ;;  %v824_v47 = vunpack.c.l.bf16 %v1094_v33  ;;  %v948_v48 = vpack.c.bf16 %v291_v41, %v290_v40  ;;  %v825_v50 = vunpack.c.h.bf16 %v1094_v33 }
   0xc   :  { %934 = vst [vmem:[%s1505_s3] sm:$0xff] %v933_v39   ;;  %v157_v49 = vmul.f32 %v820_v42, %v1178_v1  ;;  %v828_v51 = vunpack.c.l.bf16 %v1095_v38  ;;  %1121 = vst [vmem:[%s1505_s3 + $0x8] sm:$0xff] %v938_v44   ;;  %v158_v52 = vmul.f32 %v821_v46, %v1178_v1  ;;  %v829_v54 = vunpack.c.h.bf16 %v1095_v38  ;;  %v1101_v38 = vld [vmem:[%s1502_s0 + $0x60] sm:$0xff]  }
   0xd   :  { %1122 = vst [vmem:[%s1505_s3 + $0x10] sm:$0xff] %v943_v45   ;;  %v159_v53 = vmul.f32 %v824_v47, %v1178_v1  ;;  %v832_v55 = vunpack.c.l.bf16 %v1096_v43  ;;  %1123 = vst [vmem:[%s1505_s3 + $0x18] sm:$0xff] %v948_v48   ;;  %v160_v57 = vmul.f32 %v825_v50, %v1178_v1  ;;  %v833_v59 = vunpack.c.h.bf16 %v1096_v43 }
   0xe   :  { %v228_v56 = vadd.f32 %v1192_v7, %v157_v49  ;;  %v161_v58 = vmul.f32 %v828_v51, %v1178_v1  ;;  %v229_v60 = vadd.f32 %v1192_v7, %v158_v52  ;;  %v162_v62 = vmul.f32 %v829_v54, %v1178_v1  ;;  %v1102_v51 = vld [vmem:[%s1502_s0 + $0x68] sm:$0xff]  }
   0xf   :  { %v230_v61 = vadd.f32 %v1192_v7, %v159_v53  ;;  %v163_v63 = vmul.f32 %v832_v55, %v1178_v1  ;;  %v231_v3 = vadd.f32 %v1192_v7, %v160_v57  ;;  %v164_v5 = vmul.f32 %v833_v59, %v1178_v1 }
  0x10   :  { %v292_v2 = vmax.f32 %v228_v56, 0.0  ;;  %v232_v4 = vadd.f32 %v1192_v7, %v161_v58  ;;  %v293_v6 = vmax.f32 %v229_v60, 0.0  ;;  %v233_v9 = vadd.f32 %v1192_v7, %v162_v62  ;;  %v1103_v60 = vld [vmem:[%s1502_s0 + $0x70] sm:$0xff]  }
  0x11   :  { %v294_v8 = vmax.f32 %v230_v61, 0.0  ;;  %v234_v10 = vadd.f32 %v1192_v7, %v163_v63  ;;  %v295_v12 = vmax.f32 %v231_v3, 0.0  ;;  %v235_v14 = vadd.f32 %v1192_v7, %v164_v5 }
  0x12   :  { %v296_v13 = vmax.f32 %v232_v4, 0.0  ;;  %v836_v15 = vunpack.c.l.bf16 %v1097_v0  ;;  %v953_v17 = vpack.c.bf16 %v293_v6, %v292_v2  ;;  %v297_v18 = vmax.f32 %v233_v9, 0.0  ;;  %v1104_v2 = vld [vmem:[%s1502_s0 + $0x78] sm:$0xff]  }
  0x13   :  { %v298_v19 = vmax.f32 %v234_v10, 0.0  ;;  %v837_v20 = vunpack.c.h.bf16 %v1097_v0  ;;  %v958_v21 = vpack.c.bf16 %v295_v12, %v294_v8  ;;  %v299_v22 = vmax.f32 %v235_v14, 0.0  ;;  %v1105_v12 = vld [vmem:[%s1502_s0 + $0x80] sm:$0xff]  }
  0x14   :  { %v165_v23 = vmul.f32 %v836_v15, %v1178_v1  ;;  %v840_v24 = vunpack.c.l.bf16 %v1098_v11  ;;  %1124 = vst [vmem:[%s1505_s3 + $0x20] sm:$0xff] %v953_v17   ;;  %v963_v26 = vpack.c.bf16 %v297_v18, %v296_v13  ;;  %v841_v28 = vunpack.c.h.bf16 %v1098_v11 }
  0x15   :  { %v166_v27 = vmul.f32 %v837_v20, %v1178_v1  ;;  %v844_v29 = vunpack.c.l.bf16 %v1099_v16  ;;  %1125 = vst [vmem:[%s1505_s3 + $0x28] sm:$0xff] %v958_v21   ;;  %v968_v30 = vpack.c.bf16 %v299_v22, %v298_v19  ;;  %v845_v33 = vunpack.c.h.bf16 %v1099_v16 }
  0x16   :  { %v236_v31 = vadd.f32 %v1192_v7, %v165_v23  ;;  %v167_v32 = vmul.f32 %v840_v24, %v1178_v1  ;;  %1126 = vst [vmem:[%s1505_s3 + $0x30] sm:$0xff] %v963_v26   ;;  %v168_v35 = vmul.f32 %v841_v28, %v1178_v1  ;;  %v848_v37 = vunpack.c.l.bf16 %v1100_v25 }
  0x17   :  { %v237_v34 = vadd.f32 %v1192_v7, %v166_v27  ;;  %v169_v36 = vmul.f32 %v844_v29, %v1178_v1  ;;  %1127 = vst [vmem:[%s1505_s3 + $0x38] sm:$0xff] %v968_v30   ;;  %v170_v41 = vmul.f32 %v845_v33, %v1178_v1  ;;  %v849_v42 = vunpack.c.h.bf16 %v1100_v25  ;;  %v1106_v29 = vld [vmem:[%s1502_s0 + $0x88] sm:$0xff]  }
  0x18   :  { %v300_v39 = vmax.f32 %v236_v31, 0.0  ;;  %v238_v40 = vadd.f32 %v1192_v7, %v167_v32  ;;  %v239_v44 = vadd.f32 %v1192_v7, %v168_v35  ;;  %v171_v46 = vmul.f32 %v848_v37, %v1178_v1 }
  0x19   :  { %v301_v43 = vmax.f32 %v237_v34, 0.0  ;;  %v240_v45 = vadd.f32 %v1192_v7, %v169_v36  ;;  %v241_v48 = vadd.f32 %v1192_v7, %v170_v41  ;;  %v172_v49 = vmul.f32 %v849_v42, %v1178_v1  ;;  %v1107_v34 = vld [vmem:[%s1502_s0 + $0x90] sm:$0xff]  }
  0x1a   :  { %v302_v47 = vmax.f32 %v238_v40, 0.0  ;;  %v852_v50 = vunpack.c.l.bf16 %v1101_v38  ;;  %v303_v53 = vmax.f32 %v239_v44, 0.0  ;;  %v242_v55 = vadd.f32 %v1192_v7, %v171_v46 }
  0x1b   :  { %v973_v52 = vpack.c.bf16 %v301_v43, %v300_v39  ;;  %v304_v54 = vmax.f32 %v240_v45, 0.0  ;;  %v305_v56 = vmax.f32 %v241_v48, 0.0  ;;  %v243_v57 = vadd.f32 %v1192_v7, %v172_v49  ;;  %v1108_v43 = vld [vmem:[%s1502_s0 + $0x98] sm:$0xff]  }
  0x1c   :  { %v853_v58 = vunpack.c.h.bf16 %v1101_v38  ;;  %v173_v59 = vmul.f32 %v852_v50, %v1178_v1  ;;  %v978_v61 = vpack.c.bf16 %v303_v53, %v302_v47  ;;  %v306_v62 = vmax.f32 %v242_v55, 0.0 }
  0x1d   :  { %1128 = vst [vmem:[%s1505_s3 + $0x40] sm:$0xff] %v973_v52   ;;  %v856_v63 = vunpack.c.l.bf16 %v1102_v51  ;;  %v857_v0 = vunpack.c.h.bf16 %v1102_v51  ;;  %v983_v3 = vpack.c.bf16 %v305_v56, %v304_v54  ;;  %v307_v4 = vmax.f32 %v243_v57, 0.0  ;;  %v1109_v56 = vld [vmem:[%s1502_s0 + $0xa0] sm:$0xff]  }
  0x1e   :  { %v174_v5 = vmul.f32 %v853_v58, %v1178_v1  ;;  %v244_v6 = vadd.f32 %v1192_v7, %v173_v59  ;;  %1129 = vst [vmem:[%s1505_s3 + $0x48] sm:$0xff] %v978_v61   ;;  %v860_v10 = vunpack.c.l.bf16 %v1103_v60  ;;  %v861_v11 = vunpack.c.h.bf16 %v1103_v60 }
  0x1f   :  { %v175_v8 = vmul.f32 %v856_v63, %v1178_v1  ;;  %v176_v9 = vmul.f32 %v857_v0, %v1178_v1  ;;  %1130 = vst [vmem:[%s1505_s3 + $0x50] sm:$0xff] %v983_v3   ;;  %v988_v13 = vpack.c.bf16 %v307_v4, %v306_v62  ;;  %v864_v16 = vunpack.c.l.bf16 %v1104_v2 }
  0x20   :  { %v245_v14 = vadd.f32 %v1192_v7, %v174_v5  ;;  %v308_v15 = vmax.f32 %v244_v6, 0.0  ;;  %v177_v19 = vmul.f32 %v860_v10, %v1178_v1  ;;  %v178_v20 = vmul.f32 %v861_v11, %v1178_v1 }
  0x21   :  { %v246_v17 = vadd.f32 %v1192_v7, %v175_v8  ;;  %v247_v18 = vadd.f32 %v1192_v7, %v176_v9  ;;  %1131 = vst [vmem:[%s1505_s3 + $0x58] sm:$0xff] %v988_v13   ;;  %v865_v22 = vunpack.c.h.bf16 %v1104_v2  ;;  %v179_v23 = vmul.f32 %v864_v16, %v1178_v1  ;;  %v1110_v2 = vld [vmem:[%s1502_s0 + $0xa8] sm:$0xff]   ;;  %v1111_v16 = vld [vmem:[%s1502_s0 + $0xb0] sm:$0xff]  }
  0x22   :  { %v309_v21 = vmax.f32 %v245_v14, 0.0  ;;  %v868_v24 = vunpack.c.l.bf16 %v1105_v12  ;;  %v248_v27 = vadd.f32 %v1192_v7, %v177_v19  ;;  %v249_v28 = vadd.f32 %v1192_v7, %v178_v20 }
  0x23   :  { %v310_v25 = vmax.f32 %v246_v17, 0.0  ;;  %v311_v26 = vmax.f32 %v247_v18, 0.0  ;;  %v180_v31 = vmul.f32 %v865_v22, %v1178_v1  ;;  %v250_v32 = vadd.f32 %v1192_v7, %v179_v23 }
  0x24   :  { %v993_v30 = vpack.c.bf16 %v309_v21, %v308_v15  ;;  %v869_v33 = vunpack.c.h.bf16 %v1105_v12  ;;  %v312_v36 = vmax.f32 %v248_v27, 0.0  ;;  %v313_v37 = vmax.f32 %v249_v28, 0.0  ;;  %v1112_v21 = vld [vmem:[%s1502_s0 + $0xb8] sm:$0xff]  }
  0x25   :  { %v998_v35 = vpack.c.bf16 %v311_v26, %v310_v25  ;;  %v181_v38 = vmul.f32 %v868_v24, %v1178_v1  ;;  %v251_v39 = vadd.f32 %v1192_v7, %v180_v31  ;;  %v314_v40 = vmax.f32 %v250_v32, 0.0 }
  0x26   :  { %1132 = vst [vmem:[%s1505_s3 + $0x60] sm:$0xff] %v993_v30   ;;  %v182_v41 = vmul.f32 %v869_v33, %v1178_v1  ;;  %v872_v42 = vunpack.c.l.bf16 %v1106_v29  ;;  %v1003_v44 = vpack.c.bf16 %v313_v37, %v312_v36  ;;  %v873_v46 = vunpack.c.h.bf16 %v1106_v29 }
  0x27   :  { %1133 = vst [vmem:[%s1505_s3 + $0x68] sm:$0xff] %v998_v35   ;;  %v252_v45 = vadd.f32 %v1192_v7, %v181_v38  ;;  %v876_v47 = vunpack.c.l.bf16 %v1107_v34  ;;  %v315_v48 = vmax.f32 %v251_v39, 0.0  ;;  %v877_v51 = vunpack.c.h.bf16 %v1107_v34  ;;  %v1113_v34 = vld [vmem:[%s1502_s0 + $0xc0] sm:$0xff]  }
  0x28   :  { %v253_v49 = vadd.f32 %v1192_v7, %v182_v41  ;;  %v183_v50 = vmul.f32 %v872_v42, %v1178_v1  ;;  %1134 = vst [vmem:[%s1505_s3 + $0x70] sm:$0xff] %v1003_v44   ;;  %v184_v53 = vmul.f32 %v873_v46, %v1178_v1  ;;  %v880_v55 = vunpack.c.l.bf16 %v1108_v43 }
  0x29   :  { %v316_v52 = vmax.f32 %v252_v45, 0.0  ;;  %v185_v54 = vmul.f32 %v876_v47, %v1178_v1  ;;  %v1008_v57 = vpack.c.bf16 %v315_v48, %v314_v40  ;;  %v186_v60 = vmul.f32 %v877_v51, %v1178_v1  ;;  %v1114_v47 = vld [vmem:[%s1502_s0 + $0xc8] sm:$0xff]  }
  0x2a   :  { %v317_v58 = vmax.f32 %v253_v49, 0.0  ;;  %v254_v59 = vadd.f32 %v1192_v7, %v183_v50  ;;  %v255_v61 = vadd.f32 %v1192_v7, %v184_v53  ;;  %v881_v63 = vunpack.c.h.bf16 %v1108_v43 }
  0x2b   :  { %v256_v62 = vadd.f32 %v1192_v7, %v185_v54  ;;  %v187_v0 = vmul.f32 %v880_v55, %v1178_v1  ;;  %1135 = vst [vmem:[%s1505_s3 + $0x78] sm:$0xff] %v1008_v57   ;;  %v257_v5 = vadd.f32 %v1192_v7, %v186_v60  ;;  %v884_v6 = vunpack.c.l.bf16 %v1109_v56 }
  0x2c   :  { %v1013_v3 = vpack.c.bf16 %v317_v58, %v316_v52  ;;  %v318_v4 = vmax.f32 %v254_v59, 0.0  ;;  %v319_v8 = vmax.f32 %v255_v61, 0.0  ;;  %v188_v10 = vmul.f32 %v881_v63, %v1178_v1  ;;  %v1115_v52 = vld [vmem:[%s1502_s0 + $0xd0] sm:$0xff]   ;;  %v1116_v61 = vld [vmem:[%s1502_s0 + $0xd8] sm:$0xff]  }
  0x2d   :  { %v320_v9 = vmax.f32 %v256_v62, 0.0  ;;  %v258_v11 = vadd.f32 %v1192_v7, %v187_v0  ;;  %v321_v12 = vmax.f32 %v257_v5, 0.0  ;;  %v885_v13 = vunpack.c.h.bf16 %v1109_v56 }
  0x2e   :  { %1136 = vst [vmem:[%s1505_s3 + $0x80] sm:$0xff] %v1013_v3   ;;  %v189_v14 = vmul.f32 %v884_v6, %v1178_v1  ;;  %v888_v15 = vunpack.c.l.bf16 %v1110_v2  ;;  %v1018_v17 = vpack.c.bf16 %v319_v8, %v318_v4  ;;  %v259_v18 = vadd.f32 %v1192_v7, %v188_v10 }
  0x2f   :  { %v322_v19 = vmax.f32 %v258_v11, 0.0  ;;  %v889_v20 = vunpack.c.h.bf16 %v1110_v2  ;;  %v1023_v22 = vpack.c.bf16 %v321_v12, %v320_v9  ;;  %v190_v23 = vmul.f32 %v885_v13, %v1178_v1  ;;  %v1117_v12 = vld [vmem:[%s1502_s0 + $0xe0] sm:$0xff]  }
  0x30   :  { %v260_v24 = vadd.f32 %v1192_v7, %v189_v14  ;;  %v191_v25 = vmul.f32 %v888_v15, %v1178_v1  ;;  %1137 = vst [vmem:[%s1505_s3 + $0x88] sm:$0xff] %v1018_v17   ;;  %v323_v26 = vmax.f32 %v259_v18, 0.0  ;;  %v892_v28 = vunpack.c.l.bf16 %v1111_v16 }
  0x31   :  { %v192_v27 = vmul.f32 %v889_v20, %v1178_v1  ;;  %v893_v29 = vunpack.c.h.bf16 %v1111_v16  ;;  %1138 = vst [vmem:[%s1505_s3 + $0x90] sm:$0xff] %v1023_v22   ;;  %v261_v30 = vadd.f32 %v1192_v7, %v190_v23  ;;  %v896_v33 = vunpack.c.l.bf16 %v1112_v21 }
  0x32   :  { %v324_v31 = vmax.f32 %v260_v24, 0.0  ;;  %v262_v32 = vadd.f32 %v1192_v7, %v191_v25  ;;  %v1028_v35 = vpack.c.bf16 %v323_v26, %v322_v19  ;;  %v193_v37 = vmul.f32 %v892_v28, %v1178_v1 }
  0x33   :  { %v263_v36 = vadd.f32 %v1192_v7, %v192_v27  ;;  %v194_v38 = vmul.f32 %v893_v29, %v1178_v1  ;;  %v325_v39 = vmax.f32 %v261_v30, 0.0  ;;  %v897_v41 = vunpack.c.h.bf16 %v1112_v21  ;;  %v1118_v21 = vld [vmem:[%s1502_s0 + $0xe8] sm:$0xff]  }
  0x34   :  { %v326_v40 = vmax.f32 %v262_v32, 0.0  ;;  %v195_v42 = vmul.f32 %v896_v33, %v1178_v1  ;;  %1139 = vst [vmem:[%s1505_s3 + $0x98] sm:$0xff] %v1028_v35   ;;  %v264_v44 = vadd.f32 %v1192_v7, %v193_v37  ;;  %v900_v46 = vunpack.c.l.bf16 %v1113_v34 }
  0x35   :  { %v327_v43 = vmax.f32 %v263_v36, 0.0  ;;  %v265_v45 = vadd.f32 %v1192_v7, %v194_v38  ;;  %v1033_v48 = vpack.c.bf16 %v325_v39, %v324_v31  ;;  %v196_v49 = vmul.f32 %v897_v41, %v1178_v1  ;;  %v1120_v39 = vld [vmem:[%s1502_s0 + $0xf8] sm:$0xff]  }
  0x36   :  { %v266_v50 = vadd.f32 %v1192_v7, %v195_v42  ;;  %v901_v51 = vunpack.c.h.bf16 %v1113_v34  ;;  %v328_v54 = vmax.f32 %v264_v44, 0.0  ;;  %v197_v56 = vmul.f32 %v900_v46, %v1178_v1  ;;  %v1119_v34 = vld [vmem:[%s1502_s0 + $0xf0] sm:$0xff]  }
  0x37   :  { %v1038_v53 = vpack.c.bf16 %v327_v43, %v326_v40  ;;  %v329_v55 = vmax.f32 %v265_v45, 0.0  ;;  %1140 = vst [vmem:[%s1505_s3 + $0xa0] sm:$0xff] %v1033_v48   ;;  %v267_v57 = vadd.f32 %v1192_v7, %v196_v49  ;;  %v904_v60 = vunpack.c.l.bf16 %v1114_v47 }
  0x38   :  { %v330_v58 = vmax.f32 %v266_v50, 0.0  ;;  %v198_v59 = vmul.f32 %v901_v51, %v1178_v1  ;;  %v268_v63 = vadd.f32 %v1192_v7, %v197_v56  ;;  %v905_v0 = vunpack.c.h.bf16 %v1114_v47 }
  0x39   :  { %1141 = vst [vmem:[%s1505_s3 + $0xa8] sm:$0xff] %v1038_v53   ;;  %v1043_v62 = vpack.c.bf16 %v329_v55, %v328_v54  ;;  %v908_v2 = vunpack.c.l.bf16 %v1115_v52  ;;  %v331_v3 = vmax.f32 %v267_v57, 0.0  ;;  %v199_v5 = vmul.f32 %v904_v60, %v1178_v1 }
  0x3a   :  { %v269_v4 = vadd.f32 %v1192_v7, %v198_v59  ;;  %v909_v6 = vunpack.c.h.bf16 %v1115_v52  ;;  %v332_v8 = vmax.f32 %v268_v63, 0.0  ;;  %v200_v9 = vmul.f32 %v905_v0, %v1178_v1 }
  0x3b   :  { %1142 = vst [vmem:[%s1505_s3 + $0xb0] sm:$0xff] %v1043_v62   ;;  %v201_v10 = vmul.f32 %v908_v2, %v1178_v1  ;;  %v912_v11 = vunpack.c.l.bf16 %v1116_v61  ;;  %v1048_v13 = vpack.c.bf16 %v331_v3, %v330_v58  ;;  %v270_v15 = vadd.f32 %v1192_v7, %v199_v5 }
  0x3c   :  { %v333_v14 = vmax.f32 %v269_v4, 0.0  ;;  %v202_v16 = vmul.f32 %v909_v6, %v1178_v1  ;;  %v271_v17 = vadd.f32 %v1192_v7, %v200_v9  ;;  %v913_v19 = vunpack.c.h.bf16 %v1116_v61 }
  0x3d   :  { %v272_v18 = vadd.f32 %v1192_v7, %v201_v10  ;;  %v203_v20 = vmul.f32 %v912_v11, %v1178_v1  ;;  %1143 = vst [vmem:[%s1505_s3 + $0xb8] sm:$0xff] %v1048_v13   ;;  %v334_v23 = vmax.f32 %v270_v15, 0.0  ;;  %v916_v25 = vunpack.c.l.bf16 %v1117_v12 }
  0x3e   :  { %v1053_v22 = vpack.c.bf16 %v333_v14, %v332_v8  ;;  %v273_v24 = vadd.f32 %v1192_v7, %v202_v16  ;;  %v335_v26 = vmax.f32 %v271_v17, 0.0  ;;  %v204_v28 = vmul.f32 %v913_v19, %v1178_v1 }
  0x3f   :  { %v336_v27 = vmax.f32 %v272_v18, 0.0  ;;  %v274_v29 = vadd.f32 %v1192_v7, %v203_v20  ;;  %v917_v31 = vunpack.c.h.bf16 %v1117_v12  ;;  %v205_v32 = vmul.f32 %v916_v25, %v1178_v1 }
  0x40   :  { %1144 = vst [vmem:[%s1505_s3 + $0xc0] sm:$0xff] %v1053_v22   ;;  %v337_v30 = vmax.f32 %v273_v24, 0.0  ;;  %v920_v33 = vunpack.c.l.bf16 %v1118_v21  ;;  %v1058_v35 = vpack.c.bf16 %v335_v26, %v334_v23  ;;  %v275_v36 = vadd.f32 %v1192_v7, %v204_v28 }
  0x41   :  { %v338_v37 = vmax.f32 %v274_v29, 0.0  ;;  %v921_v38 = vunpack.c.h.bf16 %v1118_v21  ;;  %v206_v41 = vmul.f32 %v917_v31, %v1178_v1  ;;  %v276_v42 = vadd.f32 %v1192_v7, %v205_v32 }
  0x42   :  { %v1063_v40 = vpack.c.bf16 %v337_v30, %v336_v27  ;;  %v207_v43 = vmul.f32 %v920_v33, %v1178_v1  ;;  %1145 = vst [vmem:[%s1505_s3 + $0xc8] sm:$0xff] %v1058_v35   ;;  %v339_v44 = vmax.f32 %v275_v36, 0.0  ;;  %v924_v46 = vunpack.c.l.bf16 %v1119_v34 }
  0x43   :  { %v208_v45 = vmul.f32 %v921_v38, %v1178_v1  ;;  %v925_v47 = vunpack.c.h.bf16 %v1119_v34  ;;  %v277_v48 = vadd.f32 %v1192_v7, %v206_v41  ;;  %v340_v49 = vmax.f32 %v276_v42, 0.0 }
  0x44   :  { %1146 = vst [vmem:[%s1505_s3 + $0xd0] sm:$0xff] %v1063_v40   ;;  %v278_v50 = vadd.f32 %v1192_v7, %v207_v43  ;;  %v928_v51 = vunpack.c.l.bf16 %v1120_v39  ;;  %v1068_v52 = vpack.c.bf16 %v339_v44, %v338_v37  ;;  %v209_v54 = vmul.f32 %v924_v46, %v1178_v1 }
  0x45   :  { %v279_v53 = vadd.f32 %v1192_v7, %v208_v45  ;;  %v210_v55 = vmul.f32 %v925_v47, %v1178_v1  ;;  %v341_v56 = vmax.f32 %v277_v48, 0.0  ;;  %v929_v58 = vunpack.c.h.bf16 %v1120_v39 }
  0x46   :  { %v342_v57 = vmax.f32 %v278_v50, 0.0  ;;  %v211_v59 = vmul.f32 %v928_v51, %v1178_v1  ;;  %1147 = vst [vmem:[%s1505_s3 + $0xd8] sm:$0xff] %v1068_v52   ;;  %v280_v61 = vadd.f32 %v1192_v7, %v209_v54 }
  0x47   :  { %v343_v60 = vmax.f32 %v279_v53, 0.0  ;;  %v281_v62 = vadd.f32 %v1192_v7, %v210_v55  ;;  %v1073_v63 = vpack.c.bf16 %v341_v56, %v340_v49  ;;  %v212_v0 = vmul.f32 %v929_v58, %v1178_v1 }
  0x48   :  { %v282_v2 = vadd.f32 %v1192_v7, %v211_v59  ;;  %v344_v4 = vmax.f32 %v280_v61, 0.0 }
  0x49   :  { %v1078_v3 = vpack.c.bf16 %v343_v60, %v342_v57  ;;  %v345_v5 = vmax.f32 %v281_v62, 0.0  ;;  %1148 = vst [vmem:[%s1505_s3 + $0xe0] sm:$0xff] %v1073_v63   ;;  %v283_v6 = vadd.f32 %v1192_v7, %v212_v0 }
  0x4a   :  { %v346_v8 = vmax.f32 %v282_v2, 0.0 }
  0x4b   :  { %1149 = vst [vmem:[%s1505_s3 + $0xe8] sm:$0xff] %v1078_v3   ;;  %v1083_v9 = vpack.c.bf16 %v345_v5, %v344_v4  ;;  %v347_v10 = vmax.f32 %v283_v6, 0.0 }
  0x4d   :  { %1150 = vst [vmem:[%s1505_s3 + $0xf0] sm:$0xff] %v1083_v9   ;;  %v1088_v1 = vpack.c.bf16 %v347_v10, %v346_v8 }
  0x4f   :  { %1151 = vst [vmem:[%s1505_s3 + $0xf8] sm:$0xff] %v1088_v1  }

// kernel: residual_block_pallas.13
= control target key start
LH: loop header
LB: loop body
LE: loop exit
PB: predicated region body
PF: predicated region fallthrough
CT: control target
= control target key end

     0   :  { %s1800_s0 = inlined_call_operand.vmem [shape: bf16[512,128], index: 0, kind: input, shape index: {}]   ;;  %s1801_s1 = inlined_call_operand.vmem [shape: f32[1,128], index: 1, kind: input, shape index: {}]   ;;  %s1802_s2 = inlined_call_operand.vmem [shape: f32[1,128], index: 2, kind: input, shape index: {}]   ;;  %s1803_s3 = inlined_call_operand.vmem [shape: bf16[512,128], index: 3, kind: input, shape index: {}]   ;;  %s1804_s4 = inlined_call_operand.vmem [shape: f32[1,128], index: 4, kind: input, shape index: {}]   ;;  %s1805_s5 = inlined_call_operand.vmem [shape: f32[1,128], index: 5, kind: input, shape index: {}]   ;;  %s1806_s6 = inlined_call_operand.vmem [shape: f32[512,128], index: 6, kind: output, shape index: {}]  }
   0x1   :  { %v764_v0 = vld [vmem:[%s1800_s0] sm:$0xff]   ;;  %v1019_v9 = vld [vmem:[%s1800_s0 + $0x8] sm:$0xff]   ;;  %v1020_v20 = vld [vmem:[%s1800_s0 + $0x10] sm:$0xff]  }
   0x2   :  { %v1126_v1 = vld [vmem:[%s1801_s1] ss:$0 sm:$0xff]  ;;  %v765_v2 = vunpack.c.l.bf16 %v764_v0  ;;  %v766_v5 = vunpack.c.h.bf16 %v764_v0  ;;  %v1050_v10 = vld [vmem:[%s1803_s3 + $0x8] sm:$0xff]   ;;  %v769_v14 = vunpack.c.l.bf16 %v1019_v9  ;;  %v770_v18 = vunpack.c.h.bf16 %v1019_v9  ;;  %v1051_v21 = vld [vmem:[%s1803_s3 + $0x10] sm:$0xff]  }
   0x3   :  { %v892_v3 = vld [vmem:[%s1803_s3] sm:$0xff]   ;;  %v897_v15 = vunpack.c.l.bf16 %v1050_v10  ;;  %v898_v19 = vunpack.c.h.bf16 %v1050_v10  ;;  %v773_v32 = vunpack.c.l.bf16 %v1020_v20  ;;  %v901_v33 = vunpack.c.l.bf16 %v1051_v21  ;;  %v1021_v42 = vld [vmem:[%s1800_s0 + $0x18] sm:$0xff]  }
   0x4   :  { %v1134_v4 = vld [vmem:[%s1804_s4] ss:$0 sm:$0xff]  ;;  %v893_v7 = vunpack.c.l.bf16 %v892_v3  ;;  %v894_v8 = vunpack.c.h.bf16 %v892_v3  ;;  %v158_v11 = vmul.f32 %v765_v2, %v1126_v1  ;;  %v159_v13 = vmul.f32 %v766_v5, %v1126_v1  ;;  %v1052_v43 = vld [vmem:[%s1803_s3 + $0x18] sm:$0xff]  }
   0x5   :  { %v1139_v6 = vld [vmem:[%s1802_s2] ss:$0 sm:$0xff]  ;;  %v160_v24 = vmul.f32 %v769_v14, %v1126_v1  ;;  %v430_v25 = vmul.f32 %v897_v15, %v1134_v4  ;;  %v161_v28 = vmul.f32 %v770_v18, %v1126_v1  ;;  %v431_v29 = vmul.f32 %v898_v19, %v1134_v4  ;;  %v1023_v14 = vld [vmem:[%s1800_s0 + $0x28] sm:$0xff]  }
   0x6   :  { %v1151_v12 = vld [vmem:[%s1805_s5] ss:$0 sm:$0xff]  ;;  %v428_v16 = vmul.f32 %v893_v7, %v1134_v4  ;;  %v429_v17 = vmul.f32 %v894_v8, %v1134_v4  ;;  %v229_v22 = vadd.f32 %v1139_v6, %v158_v11  ;;  %v230_v23 = vadd.f32 %v1139_v6, %v159_v13  ;;  %v1054_v19 = vld [vmem:[%s1803_s3 + $0x28] sm:$0xff]  }
   0x7   :  { %v231_v30 = vadd.f32 %v1139_v6, %v160_v24  ;;  %v501_v31 = vadd.f32 %v1151_v12, %v430_v25  ;;  %v232_v36 = vadd.f32 %v1139_v6, %v161_v28  ;;  %v502_v37 = vadd.f32 %v1151_v12, %v431_v29  ;;  %v1022_v52 = vld [vmem:[%s1800_s0 + $0x20] sm:$0xff]  }
   0x8   :  { %v499_v26 = vadd.f32 %v1151_v12, %v428_v16  ;;  %v500_v27 = vadd.f32 %v1151_v12, %v429_v17  ;;  %v162_v39 = vmul.f32 %v773_v32, %v1126_v1  ;;  %v432_v40 = vmul.f32 %v901_v33, %v1134_v4  ;;  %v1053_v57 = vld [vmem:[%s1803_s3 + $0x20] sm:$0xff]   ;;  %v1024_v32 = vld [vmem:[%s1800_s0 + $0x30] sm:$0xff]  }
   0x9   :  { %v565_v38 = vadd.f32 %v501_v31, %v231_v30  ;;  %v774_v41 = vunpack.c.h.bf16 %v1020_v20  ;;  %v566_v46 = vadd.f32 %v502_v37, %v232_v36  ;;  %v902_v47 = vunpack.c.h.bf16 %v1051_v21  ;;  %v1055_v33 = vld [vmem:[%s1803_s3 + $0x30] sm:$0xff]  }
   0xa   :  { %v563_v34 = vadd.f32 %v499_v26, %v229_v22  ;;  %v564_v35 = vadd.f32 %v500_v27, %v230_v23  ;;  %v233_v49 = vadd.f32 %v1139_v6, %v162_v39  ;;  %v503_v50 = vadd.f32 %v1151_v12, %v432_v40 }
   0xb   :  { %v629_v48 = vmax.f32 %v565_v38, 0.0  ;;  %v163_v51 = vmul.f32 %v774_v41, %v1126_v1  ;;  %v630_v53 = vmax.f32 %v566_v46, 0.0  ;;  %v433_v54 = vmul.f32 %v902_v47, %v1134_v4  ;;  %v1025_v46 = vld [vmem:[%s1800_s0 + $0x38] sm:$0xff]  }
   0xc   :  { %v627_v44 = vmax.f32 %v563_v34, 0.0  ;;  %v628_v45 = vmax.f32 %v564_v35, 0.0  ;;  %v777_v55 = vunpack.c.l.bf16 %v1021_v42  ;;  %v905_v56 = vunpack.c.l.bf16 %v1052_v43 }
   0xd   :  { %693 = vst [vmem:[%s1806_s6 + $0x10] sm:$0xff] %v629_v48  ;;  %v567_v58 = vadd.f32 %v503_v50, %v233_v49  ;;  %v234_v59 = vadd.f32 %v1139_v6, %v163_v51  ;;  %v778_v60 = vunpack.c.h.bf16 %v1021_v42  ;;  %v906_v61 = vunpack.c.h.bf16 %v1052_v43  ;;  %694 = vst [vmem:[%s1806_s6 + $0x18] sm:$0xff] %v630_v53 }
   0xe   :  { %691 = vst [vmem:[%s1806_s6] sm:$0xff] %v627_v44  ;;  %692 = vst [vmem:[%s1806_s6 + $0x8] sm:$0xff] %v628_v45  ;;  %v504_v62 = vadd.f32 %v1151_v12, %v433_v54  ;;  %v164_v63 = vmul.f32 %v777_v55, %v1126_v1  ;;  %v434_v0 = vmul.f32 %v905_v56, %v1134_v4  ;;  %v781_v2 = vunpack.c.l.bf16 %v1022_v52  ;;  %v1056_v55 = vld [vmem:[%s1803_s3 + $0x38] sm:$0xff]  }
   0xf   :  { %v631_v3 = vmax.f32 %v567_v58, 0.0  ;;  %v165_v5 = vmul.f32 %v778_v60, %v1126_v1  ;;  %v435_v7 = vmul.f32 %v906_v61, %v1134_v4  ;;  %v909_v8 = vunpack.c.l.bf16 %v1053_v57 }
  0x10   :  { %v568_v9 = vadd.f32 %v504_v62, %v234_v59  ;;  %v235_v10 = vadd.f32 %v1139_v6, %v164_v63  ;;  %v505_v11 = vadd.f32 %v1151_v12, %v434_v0  ;;  %v166_v13 = vmul.f32 %v781_v2, %v1126_v1 }
  0x11   :  { %695 = vst [vmem:[%s1806_s6 + $0x20] sm:$0xff] %v631_v3  ;;  %v236_v15 = vadd.f32 %v1139_v6, %v165_v5  ;;  %v506_v16 = vadd.f32 %v1151_v12, %v435_v7  ;;  %v436_v17 = vmul.f32 %v909_v8, %v1134_v4  ;;  %v782_v18 = vunpack.c.h.bf16 %v1022_v52  ;;  %v1026_v7 = vld [vmem:[%s1800_s0 + $0x40] sm:$0xff]  }
  0x12   :  { %v632_v20 = vmax.f32 %v568_v9, 0.0  ;;  %v569_v21 = vadd.f32 %v505_v11, %v235_v10  ;;  %v237_v22 = vadd.f32 %v1139_v6, %v166_v13  ;;  %v910_v23 = vunpack.c.h.bf16 %v1053_v57  ;;  %v1057_v13 = vld [vmem:[%s1803_s3 + $0x40] sm:$0xff]  }
  0x13   :  { %v570_v24 = vadd.f32 %v506_v16, %v236_v15  ;;  %v507_v25 = vadd.f32 %v1151_v12, %v436_v17  ;;  %v167_v26 = vmul.f32 %v782_v18, %v1126_v1  ;;  %v785_v27 = vunpack.c.l.bf16 %v1023_v14 }
  0x14   :  { %696 = vst [vmem:[%s1806_s6 + $0x28] sm:$0xff] %v632_v20  ;;  %v633_v28 = vmax.f32 %v569_v21, 0.0  ;;  %v437_v29 = vmul.f32 %v910_v23, %v1134_v4  ;;  %v913_v30 = vunpack.c.l.bf16 %v1054_v19  ;;  %v786_v31 = vunpack.c.h.bf16 %v1023_v14 }
  0x15   :  { %v634_v34 = vmax.f32 %v570_v24, 0.0  ;;  %v571_v35 = vadd.f32 %v507_v25, %v237_v22  ;;  %v238_v36 = vadd.f32 %v1139_v6, %v167_v26  ;;  %v168_v37 = vmul.f32 %v785_v27, %v1126_v1  ;;  %v1027_v26 = vld [vmem:[%s1800_s0 + $0x48] sm:$0xff]  }
  0x16   :  { %697 = vst [vmem:[%s1806_s6 + $0x30] sm:$0xff] %v633_v28  ;;  %v508_v38 = vadd.f32 %v1151_v12, %v437_v29  ;;  %v438_v39 = vmul.f32 %v913_v30, %v1134_v4  ;;  %v169_v40 = vmul.f32 %v786_v31, %v1126_v1  ;;  %v914_v41 = vunpack.c.h.bf16 %v1054_v19  ;;  %v1058_v27 = vld [vmem:[%s1803_s3 + $0x48] sm:$0xff]  }
  0x17   :  { %698 = vst [vmem:[%s1806_s6 + $0x38] sm:$0xff] %v634_v34  ;;  %v635_v42 = vmax.f32 %v571_v35, 0.0  ;;  %v239_v43 = vadd.f32 %v1139_v6, %v168_v37  ;;  %v789_v44 = vunpack.c.l.bf16 %v1024_v32  ;;  %v917_v45 = vunpack.c.l.bf16 %v1055_v33 }
  0x18   :  { %v572_v47 = vadd.f32 %v508_v38, %v238_v36  ;;  %v509_v48 = vadd.f32 %v1151_v12, %v438_v39  ;;  %v240_v49 = vadd.f32 %v1139_v6, %v169_v40  ;;  %v439_v50 = vmul.f32 %v914_v41, %v1134_v4  ;;  %v1028_v40 = vld [vmem:[%s1800_s0 + $0x50] sm:$0xff]  }
  0x19   :  { %699 = vst [vmem:[%s1806_s6 + $0x40] sm:$0xff] %v635_v42  ;;  %v170_v51 = vmul.f32 %v789_v44, %v1126_v1  ;;  %v440_v52 = vmul.f32 %v917_v45, %v1134_v4  ;;  %v790_v53 = vunpack.c.h.bf16 %v1024_v32  ;;  %v918_v54 = vunpack.c.h.bf16 %v1055_v33 }
  0x1a   :  { %v636_v56 = vmax.f32 %v572_v47, 0.0  ;;  %v573_v57 = vadd.f32 %v509_v48, %v239_v43  ;;  %v510_v58 = vadd.f32 %v1151_v12, %v439_v50  ;;  %v793_v59 = vunpack.c.l.bf16 %v1025_v46 }
  0x1b   :  { %v241_v60 = vadd.f32 %v1139_v6, %v170_v51  ;;  %v511_v61 = vadd.f32 %v1151_v12, %v440_v52  ;;  %v171_v62 = vmul.f32 %v790_v53, %v1126_v1  ;;  %v441_v63 = vmul.f32 %v918_v54, %v1134_v4 }
  0x1c   :  { %700 = vst [vmem:[%s1806_s6 + $0x48] sm:$0xff] %v636_v56  ;;  %v637_v0 = vmax.f32 %v573_v57, 0.0  ;;  %v574_v2 = vadd.f32 %v510_v58, %v240_v49  ;;  %v172_v3 = vmul.f32 %v793_v59, %v1126_v1  ;;  %v921_v5 = vunpack.c.l.bf16 %v1056_v55  ;;  %v1059_v49 = vld [vmem:[%s1803_s3 + $0x50] sm:$0xff]  }
  0x1d   :  { %v575_v8 = vadd.f32 %v511_v61, %v241_v60  ;;  %v242_v9 = vadd.f32 %v1139_v6, %v171_v62  ;;  %v512_v10 = vadd.f32 %v1151_v12, %v441_v63  ;;  %v794_v11 = vunpack.c.h.bf16 %v1025_v46  ;;  %v1029_v62 = vld [vmem:[%s1800_s0 + $0x58] sm:$0xff]  }
  0x1e   :  { %701 = vst [vmem:[%s1806_s6 + $0x50] sm:$0xff] %v637_v0  ;;  %v638_v14 = vmax.f32 %v574_v2, 0.0  ;;  %v243_v15 = vadd.f32 %v1139_v6, %v172_v3  ;;  %v442_v16 = vmul.f32 %v921_v5, %v1134_v4  ;;  %v922_v17 = vunpack.c.h.bf16 %v1056_v55  ;;  %v1060_v63 = vld [vmem:[%s1803_s3 + $0x58] sm:$0xff]  }
  0x1f   :  { %v639_v18 = vmax.f32 %v575_v8, 0.0  ;;  %v576_v19 = vadd.f32 %v512_v10, %v242_v9  ;;  %v173_v20 = vmul.f32 %v794_v11, %v1126_v1  ;;  %v797_v21 = vunpack.c.l.bf16 %v1026_v7 }
  0x20   :  { %702 = vst [vmem:[%s1806_s6 + $0x58] sm:$0xff] %v638_v14  ;;  %v513_v22 = vadd.f32 %v1151_v12, %v442_v16  ;;  %v443_v23 = vmul.f32 %v922_v17, %v1134_v4  ;;  %v925_v24 = vunpack.c.l.bf16 %v1057_v13  ;;  %v798_v25 = vunpack.c.h.bf16 %v1026_v7 }
  0x21   :  { %703 = vst [vmem:[%s1806_s6 + $0x60] sm:$0xff] %v639_v18  ;;  %v640_v28 = vmax.f32 %v576_v19, 0.0  ;;  %v244_v29 = vadd.f32 %v1139_v6, %v173_v20  ;;  %v174_v30 = vmul.f32 %v797_v21, %v1126_v1  ;;  %v926_v31 = vunpack.c.h.bf16 %v1057_v13  ;;  %v1030_v20 = vld [vmem:[%s1800_s0 + $0x60] sm:$0xff]  }
  0x22   :  { %v577_v32 = vadd.f32 %v513_v22, %v243_v15  ;;  %v514_v33 = vadd.f32 %v1151_v12, %v443_v23  ;;  %v444_v34 = vmul.f32 %v925_v24, %v1134_v4  ;;  %v175_v35 = vmul.f32 %v798_v25, %v1126_v1  ;;  %v1061_v25 = vld [vmem:[%s1803_s3 + $0x60] sm:$0xff]  }
  0x23   :  { %704 = vst [vmem:[%s1806_s6 + $0x68] sm:$0xff] %v640_v28  ;;  %v245_v36 = vadd.f32 %v1139_v6, %v174_v30  ;;  %v445_v37 = vmul.f32 %v926_v31, %v1134_v4  ;;  %v801_v38 = vunpack.c.l.bf16 %v1027_v26  ;;  %v929_v39 = vunpack.c.l.bf16 %v1058_v27 }
  0x24   :  { %v641_v41 = vmax.f32 %v577_v32, 0.0  ;;  %v578_v42 = vadd.f32 %v514_v33, %v244_v29  ;;  %v515_v43 = vadd.f32 %v1151_v12, %v444_v34  ;;  %v246_v44 = vadd.f32 %v1139_v6, %v175_v35  ;;  %v1031_v34 = vld [vmem:[%s1800_s0 + $0x68] sm:$0xff]  }
  0x25   :  { %v516_v45 = vadd.f32 %v1151_v12, %v445_v37  ;;  %v176_v46 = vmul.f32 %v801_v38, %v1126_v1  ;;  %v446_v47 = vmul.f32 %v929_v39, %v1134_v4  ;;  %v802_v48 = vunpack.c.h.bf16 %v1027_v26 }
  0x26   :  { %705 = vst [vmem:[%s1806_s6 + $0x70] sm:$0xff] %v641_v41  ;;  %v642_v50 = vmax.f32 %v578_v42, 0.0  ;;  %v579_v51 = vadd.f32 %v515_v43, %v245_v36  ;;  %v930_v52 = vunpack.c.h.bf16 %v1058_v27  ;;  %v805_v53 = vunpack.c.l.bf16 %v1028_v40  ;;  %v1062_v43 = vld [vmem:[%s1803_s3 + $0x68] sm:$0xff]  }
  0x27   :  { %v580_v54 = vadd.f32 %v516_v45, %v246_v44  ;;  %v247_v55 = vadd.f32 %v1139_v6, %v176_v46  ;;  %v517_v56 = vadd.f32 %v1151_v12, %v446_v47  ;;  %v177_v57 = vmul.f32 %v802_v48, %v1126_v1 }
  0x28   :  { %706 = vst [vmem:[%s1806_s6 + $0x78] sm:$0xff] %v642_v50  ;;  %v643_v58 = vmax.f32 %v579_v51, 0.0  ;;  %v447_v59 = vmul.f32 %v930_v52, %v1134_v4  ;;  %v178_v60 = vmul.f32 %v805_v53, %v1126_v1  ;;  %v933_v61 = vunpack.c.l.bf16 %v1059_v49 }
  0x29   :  { %v644_v0 = vmax.f32 %v580_v54, 0.0  ;;  %v581_v2 = vadd.f32 %v517_v56, %v247_v55  ;;  %v248_v3 = vadd.f32 %v1139_v6, %v177_v57  ;;  %v806_v5 = vunpack.c.h.bf16 %v1028_v40  ;;  %v1032_v56 = vld [vmem:[%s1800_s0 + $0x70] sm:$0xff]  }
  0x2a   :  { %707 = vst [vmem:[%s1806_s6 + $0x80] sm:$0xff] %v643_v58  ;;  %v518_v7 = vadd.f32 %v1151_v12, %v447_v59  ;;  %v249_v8 = vadd.f32 %v1139_v6, %v178_v60  ;;  %v448_v9 = vmul.f32 %v933_v61, %v1134_v4  ;;  %v934_v10 = vunpack.c.h.bf16 %v1059_v49  ;;  %v1063_v57 = vld [vmem:[%s1803_s3 + $0x70] sm:$0xff]  }
  0x2b   :  { %708 = vst [vmem:[%s1806_s6 + $0x88] sm:$0xff] %v644_v0  ;;  %v645_v11 = vmax.f32 %v581_v2, 0.0  ;;  %v179_v13 = vmul.f32 %v806_v5, %v1126_v1  ;;  %v809_v14 = vunpack.c.l.bf16 %v1029_v62  ;;  %v937_v15 = vunpack.c.l.bf16 %v1060_v63 }
  0x2c   :  { %v582_v16 = vadd.f32 %v518_v7, %v248_v3  ;;  %v519_v17 = vadd.f32 %v1151_v12, %v448_v9  ;;  %v449_v18 = vmul.f32 %v934_v10, %v1134_v4  ;;  %v810_v19 = vunpack.c.h.bf16 %v1029_v62 }
  0x2d   :  { %709 = vst [vmem:[%s1806_s6 + $0x90] sm:$0xff] %v645_v11  ;;  %v250_v21 = vadd.f32 %v1139_v6, %v179_v13  ;;  %v180_v22 = vmul.f32 %v809_v14, %v1126_v1  ;;  %v450_v23 = vmul.f32 %v937_v15, %v1134_v4  ;;  %v938_v24 = vunpack.c.h.bf16 %v1060_v63  ;;  %v1033_v14 = vld [vmem:[%s1800_s0 + $0x78] sm:$0xff]  }
  0x2e   :  { %v646_v26 = vmax.f32 %v582_v16, 0.0  ;;  %v583_v27 = vadd.f32 %v519_v17, %v249_v8  ;;  %v520_v28 = vadd.f32 %v1151_v12, %v449_v18  ;;  %v181_v29 = vmul.f32 %v810_v19, %v1126_v1  ;;  %v1064_v19 = vld [vmem:[%s1803_s3 + $0x78] sm:$0xff]  }
  0x2f   :  { %v251_v30 = vadd.f32 %v1139_v6, %v180_v22  ;;  %v521_v31 = vadd.f32 %v1151_v12, %v450_v23  ;;  %v451_v32 = vmul.f32 %v938_v24, %v1134_v4  ;;  %v813_v33 = vunpack.c.l.bf16 %v1030_v20 }
  0x30   :  { %710 = vst [vmem:[%s1806_s6 + $0x98] sm:$0xff] %v646_v26  ;;  %v647_v35 = vmax.f32 %v583_v27, 0.0  ;;  %v584_v36 = vadd.f32 %v520_v28, %v250_v21  ;;  %v252_v37 = vadd.f32 %v1139_v6, %v181_v29  ;;  %v941_v38 = vunpack.c.l.bf16 %v1061_v25  ;;  %v1034_v28 = vld [vmem:[%s1800_s0 + $0x80] sm:$0xff]  }
  0x31   :  { %v585_v39 = vadd.f32 %v521_v31, %v251_v30  ;;  %v522_v40 = vadd.f32 %v1151_v12, %v451_v32  ;;  %v182_v41 = vmul.f32 %v813_v33, %v1126_v1  ;;  %v814_v42 = vunpack.c.h.bf16 %v1030_v20  ;;  %v1065_v33 = vld [vmem:[%s1803_s3 + $0x80] sm:$0xff]  }
  0x32   :  { %711 = vst [vmem:[%s1806_s6 + $0xa0] sm:$0xff] %v647_v35  ;;  %v648_v44 = vmax.f32 %v584_v36, 0.0  ;;  %v452_v45 = vmul.f32 %v941_v38, %v1134_v4  ;;  %v942_v46 = vunpack.c.h.bf16 %v1061_v25  ;;  %v817_v47 = vunpack.c.l.bf16 %v1031_v34 }
  0x33   :  { %v649_v48 = vmax.f32 %v585_v39, 0.0  ;;  %v586_v49 = vadd.f32 %v522_v40, %v252_v37  ;;  %v253_v50 = vadd.f32 %v1139_v6, %v182_v41  ;;  %v183_v51 = vmul.f32 %v814_v42, %v1126_v1 }
  0x34   :  { %712 = vst [vmem:[%s1806_s6 + $0xa8] sm:$0xff] %v648_v44  ;;  %v523_v52 = vadd.f32 %v1151_v12, %v452_v45  ;;  %v453_v53 = vmul.f32 %v942_v46, %v1134_v4  ;;  %v184_v54 = vmul.f32 %v817_v47, %v1126_v1  ;;  %v945_v55 = vunpack.c.l.bf16 %v1062_v43 }
  0x35   :  { %713 = vst [vmem:[%s1806_s6 + $0xb0] sm:$0xff] %v649_v48  ;;  %v650_v58 = vmax.f32 %v586_v49, 0.0  ;;  %v254_v59 = vadd.f32 %v1139_v6, %v183_v51  ;;  %v818_v60 = vunpack.c.h.bf16 %v1031_v34  ;;  %v946_v61 = vunpack.c.h.bf16 %v1062_v43 }
  0x36   :  { %v587_v62 = vadd.f32 %v523_v52, %v253_v50  ;;  %v524_v63 = vadd.f32 %v1151_v12, %v453_v53  ;;  %v255_v0 = vadd.f32 %v1139_v6, %v184_v54  ;;  %v454_v2 = vmul.f32 %v945_v55, %v1134_v4  ;;  %v1035_v50 = vld [vmem:[%s1800_s0 + $0x88] sm:$0xff]  }
  0x37   :  { %714 = vst [vmem:[%s1806_s6 + $0xb8] sm:$0xff] %v650_v58  ;;  %v185_v3 = vmul.f32 %v818_v60, %v1126_v1  ;;  %v455_v5 = vmul.f32 %v946_v61, %v1134_v4  ;;  %v821_v7 = vunpack.c.l.bf16 %v1032_v56  ;;  %v949_v8 = vunpack.c.l.bf16 %v1063_v57  ;;  %v1066_v55 = vld [vmem:[%s1803_s3 + $0x88] sm:$0xff]  }
  0x38   :  { %v651_v9 = vmax.f32 %v587_v62, 0.0  ;;  %v588_v10 = vadd.f32 %v524_v63, %v254_v59  ;;  %v525_v11 = vadd.f32 %v1151_v12, %v454_v2  ;;  %v822_v13 = vunpack.c.h.bf16 %v1032_v56 }
  0x39   :  { %v256_v15 = vadd.f32 %v1139_v6, %v185_v3  ;;  %v526_v16 = vadd.f32 %v1151_v12, %v455_v5  ;;  %v186_v17 = vmul.f32 %v821_v7, %v1126_v1  ;;  %v456_v18 = vmul.f32 %v949_v8, %v1134_v4  ;;  %v1036_v7 = vld [vmem:[%s1800_s0 + $0x90] sm:$0xff]  }
  0x3a   :  { %715 = vst [vmem:[%s1806_s6 + $0xc0] sm:$0xff] %v651_v9  ;;  %v652_v20 = vmax.f32 %v588_v10, 0.0  ;;  %v589_v21 = vadd.f32 %v525_v11, %v255_v0  ;;  %v187_v22 = vmul.f32 %v822_v13, %v1126_v1  ;;  %v950_v23 = vunpack.c.h.bf16 %v1063_v57  ;;  %v1067_v13 = vld [vmem:[%s1803_s3 + $0x90] sm:$0xff]  }
  0x3b   :  { %v590_v24 = vadd.f32 %v526_v16, %v256_v15  ;;  %v257_v25 = vadd.f32 %v1139_v6, %v186_v17  ;;  %v527_v26 = vadd.f32 %v1151_v12, %v456_v18  ;;  %v825_v27 = vunpack.c.l.bf16 %v1033_v14 }
  0x3c   :  { %716 = vst [vmem:[%s1806_s6 + $0xc8] sm:$0xff] %v652_v20  ;;  %v653_v29 = vmax.f32 %v589_v21, 0.0  ;;  %v258_v30 = vadd.f32 %v1139_v6, %v187_v22  ;;  %v457_v31 = vmul.f32 %v950_v23, %v1134_v4  ;;  %v953_v32 = vunpack.c.l.bf16 %v1064_v19  ;;  %v1037_v22 = vld [vmem:[%s1800_s0 + $0x98] sm:$0xff]  }
  0x3d   :  { %v654_v34 = vmax.f32 %v590_v24, 0.0  ;;  %v591_v35 = vadd.f32 %v527_v26, %v257_v25  ;;  %v188_v36 = vmul.f32 %v825_v27, %v1126_v1  ;;  %v826_v37 = vunpack.c.h.bf16 %v1033_v14  ;;  %v1068_v27 = vld [vmem:[%s1803_s3 + $0x98] sm:$0xff]  }
  0x3e   :  { %717 = vst [vmem:[%s1806_s6 + $0xd0] sm:$0xff] %v653_v29  ;;  %v528_v38 = vadd.f32 %v1151_v12, %v457_v31  ;;  %v458_v39 = vmul.f32 %v953_v32, %v1134_v4  ;;  %v954_v40 = vunpack.c.h.bf16 %v1064_v19  ;;  %v829_v41 = vunpack.c.l.bf16 %v1034_v28 }
  0x3f   :  { %718 = vst [vmem:[%s1806_s6 + $0xd8] sm:$0xff] %v654_v34  ;;  %v655_v42 = vmax.f32 %v591_v35, 0.0  ;;  %v259_v43 = vadd.f32 %v1139_v6, %v188_v36  ;;  %v189_v44 = vmul.f32 %v826_v37, %v1126_v1  ;;  %v957_v45 = vunpack.c.l.bf16 %v1065_v33 }
  0x40   :  { %v592_v46 = vadd.f32 %v528_v38, %v258_v30  ;;  %v529_v47 = vadd.f32 %v1151_v12, %v458_v39  ;;  %v459_v48 = vmul.f32 %v954_v40, %v1134_v4  ;;  %v190_v49 = vmul.f32 %v829_v41, %v1126_v1 }
  0x41   :  { %719 = vst [vmem:[%s1806_s6 + $0xe0] sm:$0xff] %v655_v42  ;;  %v260_v51 = vadd.f32 %v1139_v6, %v189_v44  ;;  %v460_v52 = vmul.f32 %v957_v45, %v1134_v4  ;;  %v830_v53 = vunpack.c.h.bf16 %v1034_v28  ;;  %v958_v54 = vunpack.c.h.bf16 %v1065_v33  ;;  %v1038_v44 = vld [vmem:[%s1800_s0 + $0xa0] sm:$0xff]  }
  0x42   :  { %v656_v56 = vmax.f32 %v592_v46, 0.0  ;;  %v593_v57 = vadd.f32 %v529_v47, %v259_v43  ;;  %v530_v58 = vadd.f32 %v1151_v12, %v459_v48  ;;  %v261_v59 = vadd.f32 %v1139_v6, %v190_v49  ;;  %v1069_v49 = vld [vmem:[%s1803_s3 + $0xa0] sm:$0xff]  }
  0x43   :  { %v531_v60 = vadd.f32 %v1151_v12, %v460_v52  ;;  %v191_v61 = vmul.f32 %v830_v53, %v1126_v1  ;;  %v461_v62 = vmul.f32 %v958_v54, %v1134_v4  ;;  %v833_v63 = vunpack.c.l.bf16 %v1035_v50 }
  0x44   :  { %720 = vst [vmem:[%s1806_s6 + $0xe8] sm:$0xff] %v656_v56  ;;  %v657_v0 = vmax.f32 %v593_v57, 0.0  ;;  %v594_v2 = vadd.f32 %v530_v58, %v260_v51  ;;  %v961_v3 = vunpack.c.l.bf16 %v1066_v55  ;;  %v834_v5 = vunpack.c.h.bf16 %v1035_v50 }
  0x45   :  { %v595_v8 = vadd.f32 %v531_v60, %v261_v59  ;;  %v262_v9 = vadd.f32 %v1139_v6, %v191_v61  ;;  %v532_v10 = vadd.f32 %v1151_v12, %v461_v62  ;;  %v192_v11 = vmul.f32 %v833_v63, %v1126_v1  ;;  %v1039_v62 = vld [vmem:[%s1800_s0 + $0xa8] sm:$0xff]  }
  0x46   :  { %721 = vst [vmem:[%s1806_s6 + $0xf0] sm:$0xff] %v657_v0  ;;  %v658_v14 = vmax.f32 %v594_v2, 0.0  ;;  %v462_v15 = vmul.f32 %v961_v3, %v1134_v4  ;;  %v193_v16 = vmul.f32 %v834_v5, %v1126_v1  ;;  %v962_v17 = vunpack.c.h.bf16 %v1066_v55  ;;  %v1070_v63 = vld [vmem:[%s1803_s3 + $0xa8] sm:$0xff]  }
  0x47   :  { %v659_v18 = vmax.f32 %v595_v8, 0.0  ;;  %v596_v19 = vadd.f32 %v532_v10, %v262_v9  ;;  %v263_v20 = vadd.f32 %v1139_v6, %v192_v11  ;;  %v837_v21 = vunpack.c.l.bf16 %v1036_v7 }
  0x48   :  { %722 = vst [vmem:[%s1806_s6 + $0xf8] sm:$0xff] %v658_v14  ;;  %v533_v23 = vadd.f32 %v1151_v12, %v462_v15  ;;  %v264_v24 = vadd.f32 %v1139_v6, %v193_v16  ;;  %v463_v25 = vmul.f32 %v962_v17, %v1134_v4  ;;  %v965_v26 = vunpack.c.l.bf16 %v1067_v13  ;;  %v1040_v16 = vld [vmem:[%s1800_s0 + $0xb0] sm:$0xff]  }
  0x49   :  { %723 = vst [vmem:[%s1806_s6 + $0x100] sm:$0xff] %v659_v18  ;;  %v660_v28 = vmax.f32 %v596_v19, 0.0  ;;  %v194_v29 = vmul.f32 %v837_v21, %v1126_v1  ;;  %v838_v30 = vunpack.c.h.bf16 %v1036_v7  ;;  %v966_v31 = vunpack.c.h.bf16 %v1067_v13 }
  0x4a   :  { %v597_v32 = vadd.f32 %v533_v23, %v263_v20  ;;  %v534_v33 = vadd.f32 %v1151_v12, %v463_v25  ;;  %v464_v34 = vmul.f32 %v965_v26, %v1134_v4  ;;  %v841_v35 = vunpack.c.l.bf16 %v1037_v22  ;;  %v1071_v25 = vld [vmem:[%s1803_s3 + $0xb0] sm:$0xff]  }
  0x4b   :  { %724 = vst [vmem:[%s1806_s6 + $0x108] sm:$0xff] %v660_v28  ;;  %v265_v36 = vadd.f32 %v1139_v6, %v194_v29  ;;  %v195_v37 = vmul.f32 %v838_v30, %v1126_v1  ;;  %v465_v38 = vmul.f32 %v966_v31, %v1134_v4  ;;  %v969_v39 = vunpack.c.l.bf16 %v1068_v27 }
  0x4c   :  { %v661_v40 = vmax.f32 %v597_v32, 0.0  ;;  %v598_v41 = vadd.f32 %v534_v33, %v264_v24  ;;  %v535_v42 = vadd.f32 %v1151_v12, %v464_v34  ;;  %v196_v43 = vmul.f32 %v841_v35, %v1126_v1 }
  0x4d   :  { %v266_v45 = vadd.f32 %v1139_v6, %v195_v37  ;;  %v536_v46 = vadd.f32 %v1151_v12, %v465_v38  ;;  %v466_v47 = vmul.f32 %v969_v39, %v1134_v4  ;;  %v842_v48 = vunpack.c.h.bf16 %v1037_v22  ;;  %v1041_v38 = vld [vmem:[%s1800_s0 + $0xb8] sm:$0xff]  }
  0x4e   :  { %725 = vst [vmem:[%s1806_s6 + $0x110] sm:$0xff] %v661_v40  ;;  %v662_v50 = vmax.f32 %v598_v41, 0.0  ;;  %v599_v51 = vadd.f32 %v535_v42, %v265_v36  ;;  %v267_v52 = vadd.f32 %v1139_v6, %v196_v43  ;;  %v970_v53 = vunpack.c.h.bf16 %v1068_v27  ;;  %v1072_v43 = vld [vmem:[%s1803_s3 + $0xb8] sm:$0xff]  }
  0x4f   :  { %v600_v54 = vadd.f32 %v536_v46, %v266_v45  ;;  %v537_v55 = vadd.f32 %v1151_v12, %v466_v47  ;;  %v197_v56 = vmul.f32 %v842_v48, %v1126_v1  ;;  %v845_v57 = vunpack.c.l.bf16 %v1038_v44 }
  0x50   :  { %726 = vst [vmem:[%s1806_s6 + $0x118] sm:$0xff] %v662_v50  ;;  %v663_v58 = vmax.f32 %v599_v51, 0.0  ;;  %v467_v59 = vmul.f32 %v970_v53, %v1134_v4  ;;  %v973_v60 = vunpack.c.l.bf16 %v1069_v49  ;;  %v846_v61 = vunpack.c.h.bf16 %v1038_v44 }
  0x51   :  { %v664_v0 = vmax.f32 %v600_v54, 0.0  ;;  %v601_v2 = vadd.f32 %v537_v55, %v267_v52  ;;  %v268_v3 = vadd.f32 %v1139_v6, %v197_v56  ;;  %v198_v5 = vmul.f32 %v845_v57, %v1126_v1  ;;  %v1042_v56 = vld [vmem:[%s1800_s0 + $0xc0] sm:$0xff]  }
  0x52   :  { %727 = vst [vmem:[%s1806_s6 + $0x120] sm:$0xff] %v663_v58  ;;  %v538_v7 = vadd.f32 %v1151_v12, %v467_v59  ;;  %v468_v8 = vmul.f32 %v973_v60, %v1134_v4  ;;  %v199_v9 = vmul.f32 %v846_v61, %v1126_v1  ;;  %v974_v10 = vunpack.c.h.bf16 %v1069_v49  ;;  %v1073_v57 = vld [vmem:[%s1803_s3 + $0xc0] sm:$0xff]  }
  0x53   :  { %728 = vst [vmem:[%s1806_s6 + $0x128] sm:$0xff] %v664_v0  ;;  %v665_v11 = vmax.f32 %v601_v2, 0.0  ;;  %v269_v13 = vadd.f32 %v1139_v6, %v198_v5  ;;  %v849_v14 = vunpack.c.l.bf16 %v1039_v62  ;;  %v977_v15 = vunpack.c.l.bf16 %v1070_v63 }
  0x54   :  { %v602_v17 = vadd.f32 %v538_v7, %v268_v3  ;;  %v539_v18 = vadd.f32 %v1151_v12, %v468_v8  ;;  %v270_v19 = vadd.f32 %v1139_v6, %v199_v9  ;;  %v469_v20 = vmul.f32 %v974_v10, %v1134_v4  ;;  %v1043_v9 = vld [vmem:[%s1800_s0 + $0xc8] sm:$0xff]  }
  0x55   :  { %729 = vst [vmem:[%s1806_s6 + $0x130] sm:$0xff] %v665_v11  ;;  %v200_v21 = vmul.f32 %v849_v14, %v1126_v1  ;;  %v470_v22 = vmul.f32 %v977_v15, %v1134_v4  ;;  %v850_v23 = vunpack.c.h.bf16 %v1039_v62  ;;  %v978_v24 = vunpack.c.h.bf16 %v1070_v63 }
  0x56   :  { %v666_v26 = vmax.f32 %v602_v17, 0.0  ;;  %v603_v27 = vadd.f32 %v539_v18, %v269_v13  ;;  %v540_v28 = vadd.f32 %v1151_v12, %v469_v20  ;;  %v853_v29 = vunpack.c.l.bf16 %v1040_v16 }
  0x57   :  { %v271_v30 = vadd.f32 %v1139_v6, %v200_v21  ;;  %v541_v31 = vadd.f32 %v1151_v12, %v470_v22  ;;  %v201_v32 = vmul.f32 %v850_v23, %v1126_v1  ;;  %v471_v33 = vmul.f32 %v978_v24, %v1134_v4 }
  0x58   :  { %730 = vst [vmem:[%s1806_s6 + $0x138] sm:$0xff] %v666_v26  ;;  %v667_v34 = vmax.f32 %v603_v27, 0.0  ;;  %v604_v35 = vadd.f32 %v540_v28, %v270_v19  ;;  %v202_v36 = vmul.f32 %v853_v29, %v1126_v1  ;;  %v981_v37 = vunpack.c.l.bf16 %v1071_v25  ;;  %v1074_v19 = vld [vmem:[%s1803_s3 + $0xc8] sm:$0xff]  }
  0x59   :  { %v605_v39 = vadd.f32 %v541_v31, %v271_v30  ;;  %v272_v40 = vadd.f32 %v1139_v6, %v201_v32  ;;  %v542_v41 = vadd.f32 %v1151_v12, %v471_v33  ;;  %v854_v42 = vunpack.c.h.bf16 %v1040_v16  ;;  %v1044_v32 = vld [vmem:[%s1800_s0 + $0xd0] sm:$0xff]  }
  0x5a   :  { %731 = vst [vmem:[%s1806_s6 + $0x140] sm:$0xff] %v667_v34  ;;  %v668_v44 = vmax.f32 %v604_v35, 0.0  ;;  %v273_v45 = vadd.f32 %v1139_v6, %v202_v36  ;;  %v472_v46 = vmul.f32 %v981_v37, %v1134_v4  ;;  %v982_v47 = vunpack.c.h.bf16 %v1071_v25  ;;  %v1075_v33 = vld [vmem:[%s1803_s3 + $0xd0] sm:$0xff]  }
  0x5b   :  { %v669_v48 = vmax.f32 %v605_v39, 0.0  ;;  %v606_v49 = vadd.f32 %v542_v41, %v272_v40  ;;  %v203_v50 = vmul.f32 %v854_v42, %v1126_v1  ;;  %v857_v51 = vunpack.c.l.bf16 %v1041_v38 }
  0x5c   :  { %732 = vst [vmem:[%s1806_s6 + $0x148] sm:$0xff] %v668_v44  ;;  %v543_v52 = vadd.f32 %v1151_v12, %v472_v46  ;;  %v473_v53 = vmul.f32 %v982_v47, %v1134_v4  ;;  %v985_v54 = vunpack.c.l.bf16 %v1072_v43  ;;  %v858_v55 = vunpack.c.h.bf16 %v1041_v38 }
  0x5d   :  { %733 = vst [vmem:[%s1806_s6 + $0x150] sm:$0xff] %v669_v48  ;;  %v670_v58 = vmax.f32 %v606_v49, 0.0  ;;  %v274_v59 = vadd.f32 %v1139_v6, %v203_v50  ;;  %v204_v60 = vmul.f32 %v857_v51, %v1126_v1  ;;  %v986_v61 = vunpack.c.h.bf16 %v1072_v43  ;;  %v1654_v48 = vld [vmem:[%s1804_s4] ss:$0 sm:$0xff]  ;;  %v1045_v49 = vld [vmem:[%s1800_s0 + $0xd8] sm:$0xff]  }
  0x5e   :  { %v607_v62 = vadd.f32 %v543_v52, %v273_v45  ;;  %v544_v63 = vadd.f32 %v1151_v12, %v473_v53  ;;  %v474_v0 = vmul.f32 %v985_v54, %v1134_v4  ;;  %v205_v2 = vmul.f32 %v858_v55, %v1126_v1  ;;  %v1672_v50 = vld [vmem:[%s1801_s1] ss:$0 sm:$0xff]  ;;  %v1076_v54 = vld [vmem:[%s1803_s3 + $0xd8] sm:$0xff]  }
  0x5f   :  { %734 = vst [vmem:[%s1806_s6 + $0x158] sm:$0xff] %v670_v58  ;;  %v275_v3 = vadd.f32 %v1139_v6, %v204_v60  ;;  %v475_v5 = vmul.f32 %v986_v61, %v1134_v4  ;;  %v861_v7 = vunpack.c.l.bf16 %v1042_v56  ;;  %v989_v8 = vunpack.c.l.bf16 %v1073_v57 }
  0x60   :  { %v671_v10 = vmax.f32 %v607_v62, 0.0  ;;  %v608_v11 = vadd.f32 %v544_v63, %v274_v59  ;;  %v545_v13 = vadd.f32 %v1151_v12, %v474_v0  ;;  %v276_v14 = vadd.f32 %v1139_v6, %v205_v2  ;;  %v1046_v0 = vld [vmem:[%s1800_s0 + $0xe0] sm:$0xff]  }
  0x61   :  { %v546_v15 = vadd.f32 %v1151_v12, %v475_v5  ;;  %v206_v16 = vmul.f32 %v861_v7, %v1126_v1  ;;  %v476_v17 = vmul.f32 %v989_v8, %v1134_v4  ;;  %v862_v18 = vunpack.c.h.bf16 %v1042_v56 }
  0x62   :  { %735 = vst [vmem:[%s1806_s6 + $0x160] sm:$0xff] %v671_v10  ;;  %v672_v20 = vmax.f32 %v608_v11, 0.0  ;;  %v609_v21 = vadd.f32 %v545_v13, %v275_v3  ;;  %v990_v22 = vunpack.c.h.bf16 %v1073_v57  ;;  %v865_v23 = vunpack.c.l.bf16 %v1043_v9  ;;  %v1682_v57 = vld [vmem:[%s1805_s5] ss:$0 sm:$0xff] }
  0x63   :  { %v610_v24 = vadd.f32 %v546_v15, %v276_v14  ;;  %v277_v25 = vadd.f32 %v1139_v6, %v206_v16  ;;  %v547_v26 = vadd.f32 %v1151_v12, %v476_v17  ;;  %v207_v27 = vmul.f32 %v862_v18, %v1126_v1  ;;  %v1077_v13 = vld [vmem:[%s1803_s3 + $0xe0] sm:$0xff]  }
  0x64   :  { %736 = vst [vmem:[%s1806_s6 + $0x168] sm:$0xff] %v672_v20  ;;  %v673_v28 = vmax.f32 %v609_v21, 0.0  ;;  %v477_v29 = vmul.f32 %v990_v22, %v1134_v4  ;;  %v208_v30 = vmul.f32 %v865_v23, %v1126_v1  ;;  %v993_v31 = vunpack.c.l.bf16 %v1074_v19 }
  0x65   :  { %v674_v34 = vmax.f32 %v610_v24, 0.0  ;;  %v611_v35 = vadd.f32 %v547_v26, %v277_v25  ;;  %v278_v36 = vadd.f32 %v1139_v6, %v207_v27  ;;  %v866_v37 = vunpack.c.h.bf16 %v1043_v9  ;;  %v1047_v26 = vld [vmem:[%s1800_s0 + $0xe8] sm:$0xff]  }
  0x66   :  { %737 = vst [vmem:[%s1806_s6 + $0x170] sm:$0xff] %v673_v28  ;;  %v548_v38 = vadd.f32 %v1151_v12, %v477_v29  ;;  %v279_v39 = vadd.f32 %v1139_v6, %v208_v30  ;;  %v478_v40 = vmul.f32 %v993_v31, %v1134_v4  ;;  %v994_v41 = vunpack.c.h.bf16 %v1074_v19  ;;  %v1078_v27 = vld [vmem:[%s1803_s3 + $0xe8] sm:$0xff]  }
  0x67   :  { %738 = vst [vmem:[%s1806_s6 + $0x178] sm:$0xff] %v674_v34  ;;  %v675_v42 = vmax.f32 %v611_v35, 0.0  ;;  %v209_v43 = vmul.f32 %v866_v37, %v1126_v1  ;;  %v869_v44 = vunpack.c.l.bf16 %v1044_v32  ;;  %v997_v45 = vunpack.c.l.bf16 %v1075_v33  ;;  %v1666_v1 = vld [vmem:[%s1802_s2] ss:$0 sm:$0xff] }
  0x68   :  { %v612_v46 = vadd.f32 %v548_v38, %v278_v36  ;;  %v549_v47 = vadd.f32 %v1151_v12, %v478_v40  ;;  %v479_v4 = vmul.f32 %v1654_v48, %v994_v41  ;;  %v870_v6 = vunpack.c.h.bf16 %v1044_v32 }
  0x69   :  { %739 = vst [vmem:[%s1806_s6 + $0x180] sm:$0xff] %v675_v42  ;;  %v280_v12 = vadd.f32 %v1666_v1, %v209_v43  ;;  %v210_v51 = vmul.f32 %v1672_v50, %v869_v44  ;;  %v480_v52 = vmul.f32 %v1654_v48, %v997_v45  ;;  %v998_v53 = vunpack.c.h.bf16 %v1075_v33  ;;  %v1048_v44 = vld [vmem:[%s1800_s0 + $0xf0] sm:$0xff]  }
  0x6a   :  { %v676_v55 = vmax.f32 %v612_v46, 0.0  ;;  %v613_v56 = vadd.f32 %v549_v47, %v279_v39  ;;  %v550_v58 = vadd.f32 %v1682_v57, %v479_v4  ;;  %v211_v59 = vmul.f32 %v1672_v50, %v870_v6  ;;  %v1079_v6 = vld [vmem:[%s1803_s3 + $0xf0] sm:$0xff]  }
  0x6b   :  { %v281_v60 = vadd.f32 %v1666_v1, %v210_v51  ;;  %v551_v61 = vadd.f32 %v1682_v57, %v480_v52  ;;  %v481_v62 = vmul.f32 %v1654_v48, %v998_v53  ;;  %v873_v63 = vunpack.c.l.bf16 %v1045_v49 }
  0x6c   :  { %740 = vst [vmem:[%s1806_s6 + $0x188] sm:$0xff] %v676_v55  ;;  %v677_v2 = vmax.f32 %v613_v56, 0.0  ;;  %v614_v3 = vadd.f32 %v550_v58, %v280_v12  ;;  %v282_v5 = vadd.f32 %v1666_v1, %v211_v59  ;;  %v1001_v7 = vunpack.c.l.bf16 %v1076_v54  ;;  %v1049_v58 = vld [vmem:[%s1800_s0 + $0xf8] sm:$0xff]  }
  0x6d   :  { %v615_v8 = vadd.f32 %v551_v61, %v281_v60  ;;  %v552_v9 = vadd.f32 %v1682_v57, %v481_v62  ;;  %v212_v10 = vmul.f32 %v1672_v50, %v873_v63  ;;  %v874_v11 = vunpack.c.h.bf16 %v1045_v49  ;;  %v1080_v63 = vld [vmem:[%s1803_s3 + $0xf8] sm:$0xff]  }
  0x6e   :  { %741 = vst [vmem:[%s1806_s6 + $0x190] sm:$0xff] %v677_v2  ;;  %v678_v14 = vmax.f32 %v614_v3, 0.0  ;;  %v482_v15 = vmul.f32 %v1654_v48, %v1001_v7  ;;  %v1002_v16 = vunpack.c.h.bf16 %v1076_v54  ;;  %v877_v17 = vunpack.c.l.bf16 %v1046_v0 }
  0x6f   :  { %v679_v18 = vmax.f32 %v615_v8, 0.0  ;;  %v616_v19 = vadd.f32 %v552_v9, %v282_v5  ;;  %v283_v20 = vadd.f32 %v1666_v1, %v212_v10  ;;  %v213_v21 = vmul.f32 %v1672_v50, %v874_v11 }
  0x70   :  { %742 = vst [vmem:[%s1806_s6 + $0x198] sm:$0xff] %v678_v14  ;;  %v553_v22 = vadd.f32 %v1682_v57, %v482_v15  ;;  %v483_v23 = vmul.f32 %v1654_v48, %v1002_v16  ;;  %v214_v24 = vmul.f32 %v1672_v50, %v877_v17  ;;  %v1005_v25 = vunpack.c.l.bf16 %v1077_v13 }
  0x71   :  { %743 = vst [vmem:[%s1806_s6 + $0x1a0] sm:$0xff] %v679_v18  ;;  %v680_v28 = vmax.f32 %v616_v19, 0.0  ;;  %v284_v29 = vadd.f32 %v1666_v1, %v213_v21  ;;  %v878_v30 = vunpack.c.h.bf16 %v1046_v0  ;;  %v1006_v31 = vunpack.c.h.bf16 %v1077_v13 }
  0x72   :  { %v617_v32 = vadd.f32 %v553_v22, %v283_v20  ;;  %v554_v33 = vadd.f32 %v1682_v57, %v483_v23  ;;  %v285_v34 = vadd.f32 %v1666_v1, %v214_v24  ;;  %v484_v35 = vmul.f32 %v1654_v48, %v1005_v25 }
  0x73   :  { %744 = vst [vmem:[%s1806_s6 + $0x1a8] sm:$0xff] %v680_v28  ;;  %v215_v36 = vmul.f32 %v1672_v50, %v878_v30  ;;  %v485_v37 = vmul.f32 %v1654_v48, %v1006_v31  ;;  %v881_v38 = vunpack.c.l.bf16 %v1047_v26  ;;  %v1009_v39 = vunpack.c.l.bf16 %v1078_v27 }
  0x74   :  { %v681_v40 = vmax.f32 %v617_v32, 0.0  ;;  %v618_v41 = vadd.f32 %v554_v33, %v284_v29  ;;  %v555_v42 = vadd.f32 %v1682_v57, %v484_v35  ;;  %v882_v43 = vunpack.c.h.bf16 %v1047_v26 }
  0x75   :  { %v286_v45 = vadd.f32 %v1666_v1, %v215_v36  ;;  %v556_v46 = vadd.f32 %v1682_v57, %v485_v37  ;;  %v216_v47 = vmul.f32 %v1672_v50, %v881_v38  ;;  %v486_v4 = vmul.f32 %v1654_v48, %v1009_v39 }
  0x76   :  { %745 = vst [vmem:[%s1806_s6 + $0x1b0] sm:$0xff] %v681_v40  ;;  %v682_v49 = vmax.f32 %v618_v41, 0.0  ;;  %v619_v12 = vadd.f32 %v555_v42, %v285_v34  ;;  %v217_v51 = vmul.f32 %v1672_v50, %v882_v43  ;;  %v1010_v52 = vunpack.c.h.bf16 %v1078_v27 }
  0x77   :  { %v620_v53 = vadd.f32 %v556_v46, %v286_v45  ;;  %v287_v54 = vadd.f32 %v1666_v1, %v216_v47  ;;  %v557_v55 = vadd.f32 %v1682_v57, %v486_v4  ;;  %v885_v56 = vunpack.c.l.bf16 %v1048_v44 }
  0x78   :  { %746 = vst [vmem:[%s1806_s6 + $0x1b8] sm:$0xff] %v682_v49  ;;  %v683_v59 = vmax.f32 %v619_v12, 0.0  ;;  %v288_v60 = vadd.f32 %v1666_v1, %v217_v51  ;;  %v487_v61 = vmul.f32 %v1654_v48, %v1010_v52  ;;  %v1013_v62 = vunpack.c.l.bf16 %v1079_v6 }
  0x79   :  { %v684_v0 = vmax.f32 %v620_v53, 0.0  ;;  %v621_v2 = vadd.f32 %v557_v55, %v287_v54  ;;  %v218_v3 = vmul.f32 %v1672_v50, %v885_v56  ;;  %v886_v5 = vunpack.c.h.bf16 %v1048_v44 }
  0x7a   :  { %747 = vst [vmem:[%s1806_s6 + $0x1c0] sm:$0xff] %v683_v59  ;;  %v558_v7 = vadd.f32 %v1682_v57, %v487_v61  ;;  %v488_v8 = vmul.f32 %v1654_v48, %v1013_v62  ;;  %v1014_v9 = vunpack.c.h.bf16 %v1079_v6  ;;  %v889_v10 = vunpack.c.l.bf16 %v1049_v58 }
  0x7b   :  { %748 = vst [vmem:[%s1806_s6 + $0x1c8] sm:$0xff] %v684_v0  ;;  %v685_v11 = vmax.f32 %v621_v2, 0.0  ;;  %v289_v13 = vadd.f32 %v1666_v1, %v218_v3  ;;  %v219_v14 = vmul.f32 %v1672_v50, %v886_v5  ;;  %v1017_v15 = vunpack.c.l.bf16 %v1080_v63 }
  0x7c   :  { %v622_v16 = vadd.f32 %v558_v7, %v288_v60  ;;  %v559_v17 = vadd.f32 %v1682_v57, %v488_v8  ;;  %v489_v18 = vmul.f32 %v1654_v48, %v1014_v9  ;;  %v220_v19 = vmul.f32 %v1672_v50, %v889_v10 }
  0x7d   :  { %749 = vst [vmem:[%s1806_s6 + $0x1d0] sm:$0xff] %v685_v11  ;;  %v290_v20 = vadd.f32 %v1666_v1, %v219_v14  ;;  %v490_v21 = vmul.f32 %v1654_v48, %v1017_v15  ;;  %v890_v22 = vunpack.c.h.bf16 %v1049_v58  ;;  %v1018_v23 = vunpack.c.h.bf16 %v1080_v63 }
  0x7e   :  { %v686_v24 = vmax.f32 %v622_v16, 0.0  ;;  %v623_v25 = vadd.f32 %v559_v17, %v289_v13  ;;  %v560_v26 = vadd.f32 %v1682_v57, %v489_v18  ;;  %v291_v27 = vadd.f32 %v1666_v1, %v220_v19 }
  0x7f   :  { %v561_v28 = vadd.f32 %v1682_v57, %v490_v21  ;;  %v221_v29 = vmul.f32 %v1672_v50, %v890_v22  ;;  %v491_v30 = vmul.f32 %v1654_v48, %v1018_v23 }
  0x80   :  { %750 = vst [vmem:[%s1806_s6 + $0x1d8] sm:$0xff] %v686_v24  ;;  %v687_v31 = vmax.f32 %v623_v25, 0.0  ;;  %v624_v32 = vadd.f32 %v560_v26, %v290_v20 }
  0x81   :  { %v625_v33 = vadd.f32 %v561_v28, %v291_v27  ;;  %v292_v34 = vadd.f32 %v1666_v1, %v221_v29  ;;  %v562_v35 = vadd.f32 %v1682_v57, %v491_v30 }
  0x82   :  { %751 = vst [vmem:[%s1806_s6 + $0x1e0] sm:$0xff] %v687_v31  ;;  %v688_v36 = vmax.f32 %v624_v32, 0.0 }
  0x83   :  { %v689_v37 = vmax.f32 %v625_v33, 0.0  ;;  %v626_v50 = vadd.f32 %v562_v35, %v292_v34 }
  0x84   :  { %752 = vst [vmem:[%s1806_s6 + $0x1e8] sm:$0xff] %v688_v36 }
  0x85   :  { %753 = vst [vmem:[%s1806_s6 + $0x1f0] sm:$0xff] %v689_v37  ;;  %v690_v48 = vmax.f32 %v626_v50, 0.0 }
  0x87   :  { %754 = vst [vmem:[%s1806_s6 + $0x1f8] sm:$0xff] %v690_v48 }

// kernel: residual_block_pallas.9
= control target key start
LH: loop header
LB: loop body
LE: loop exit
PB: predicated region body
PF: predicated region fallthrough
CT: control target
= control target key end

     0   :  { %s8154_s15 = smov 0   ;;  %s9288_s0 = inlined_call_operand.vmem [shape: bf16[2,18,18,128], index: 0, kind: input, shape index: {}]   ;;  %s9289_s1 = inlined_call_operand.vmem [shape: bf16[9,128,128], index: 1, kind: input, shape index: {}]   ;;  %s9290_s2 = inlined_call_operand.vmem [shape: bf16[2,256,128], index: 2, kind: output, shape index: {0}]   ;;  %s9291_s3 = inlined_call_operand.vmem [shape: f32[2,1,128], index: 3, kind: output, shape index: {1}]   ;;  %s9292_s4 = inlined_call_operand.vmem [shape: f32[2,1,128], index: 4, kind: output, shape index: {2}]  }
   0x1 LB: > { %s6246_s16 = sadd.s32 4294967295, %s8127_s15   ;;  %p6250_p0 = scmp.ge.s32.totalorder %s8127_s15, 1  ;;  %s8127_s15 = sphi %s8154_s15, %s15_s15  }
   0x2   : > { %p167_p1 = scmp.lt.s32.totalorder %s8127_s15, 3 }
   0x4   : > { %p168_p2 = pnand %p6250_p0, %p167_p1 }
   0x5   : > { %v7993_v0 = vld [vmem:[%s9289_s1] sm:$0xff] (!%p168_p2)   ;;  %v7995_v2 = vld [vmem:[%s9289_s1 + $0x8] sm:$0xff] (!%p168_p2)   ;;  %p199_p3 = scmp.lt.s32.totalorder (!%p168_p2), %s6246_s16, 1  ;;  %v7997_v4 = vld [vmem:[%s9289_s1 + $0x10] sm:$0xff] (!%p168_p2)   ;;  %vm745_vm0 = vsmask.f32 (!%p168_p2), 3328 }
   0x6   : > { %171 = sbr.rel (%p168_p2) target bundleno = 571 (0x23b), region = 28  ;;  %v7994_v1 = vld [vmem:[%s9289_s1 + $0x100] sm:$0xff] (!%p168_p2)   ;;  %7280 = vmatprep.subr.bf16.mxu1 (!%p168_p2), %v7993_v0  ;;  %v7996_v3 = vld [vmem:[%s9289_s1 + $0x108] sm:$0xff] (!%p168_p2)   ;;  %v7998_v5 = vld [vmem:[%s9289_s1 + $0x110] sm:$0xff] (!%p168_p2)   ;;  %vm746_vm1 = vsmask.f32 (!%p168_p2), 7440 }
   0x7   : > { %7472 = vmatprep.subr.bf16.mxu0 (!%p168_p2), %v7994_v1  ;;  %7281 = vmatpush3.bf16.msra.mxu1 (!%p168_p2), %v7993_v0  ;;  %v7999_v6 = vld [vmem:[%s9289_s1 + $0x18] sm:$0xff] (!%p168_p2)   ;;  %v8001_v8 = vld [vmem:[%s9289_s1 + $0x20] sm:$0xff] (!%p168_p2)   ;;  %v8003_v10 = vld [vmem:[%s9289_s1 + $0x28] sm:$0xff] (!%p168_p2)   ;;  %vm1614_vm3 = vcmask (!%p168_p2), 1042432   ;;  %vm1615_vm4 = vcmask (!%p168_p2), 1046532  }
   0x8   : > { %7473 = vmatpush3.bf16.msra.mxu0 (!%p168_p2), %v7994_v1  ;;  %7282 = vmatprep.subr.bf16.mxu1 (!%p168_p2), %v7995_v2  ;;  %v8000_v7 = vld [vmem:[%s9289_s1 + $0x118] sm:$0xff] (!%p168_p2)   ;;  %v8002_v9 = vld [vmem:[%s9289_s1 + $0x120] sm:$0xff] (!%p168_p2)   ;;  %v8004_v11 = vld [vmem:[%s9289_s1 + $0x128] sm:$0xff] (!%p168_p2)  }
   0x9   : > { %7474 = vmatprep.subr.bf16.mxu0 (!%p168_p2), %v7996_v3  ;;  %v8005_v18 = vld [vmem:[%s9289_s1 + $0x30] sm:$0xff] (!%p168_p2)   ;;  %v8007_v32 = vld [vmem:[%s9289_s1 + $0x38] sm:$0xff] (!%p168_p2)   ;;  %vm8224_vm2 = vmor (!%p168_p2), %vm745_vm0, %vm746_vm1 }
   0xa   : > { %v8006_v24 = vld [vmem:[%s9289_s1 + $0x130] sm:$0xff] (!%p168_p2)   ;;  %v8008_v38 = vld [vmem:[%s9289_s1 + $0x138] sm:$0xff] (!%p168_p2)   ;;  %v8011_v47 = vld [vmem:[%s9289_s1 + $0x40] sm:$0xff] (!%p168_p2)  }
   0xb   : > { %7283 = vmatpush3.bf16.msra.mxu1 (!%p168_p2), %v7995_v2  ;;  %v8012_v52 = vld [vmem:[%s9289_s1 + $0x140] sm:$0xff] (!%p168_p2)   ;;  %vm8324_vm5 = vmor (!%p168_p2), %vm1614_vm3, %vm1615_vm4 }
   0xc   : > { %7475 = vmatpush3.bf16.msra.mxu0 (!%p168_p2), %v7996_v3  ;;  %7284 = vmatprep.subr.bf16.mxu1 (!%p168_p2), %v7997_v4 }
   0xd   : > { %s9298_s16 = smov (!%p199_p3, %s6246_s16), 1  ;;  %7476 = vmatprep.subr.bf16.mxu0 %v7998_v5 }
   0xe   : > { %s7984_s7 = smul.u32 216, %s9298_s16  ;;  %s211_s24 = scalar_lea.vmem %s9291_s3, %s9298_s16 }
   0xf   : > { %7285 = vmatpush3.bf16.msra.mxu1 %v7997_v4  ;;  %s214_s27 = scalar_lea.vmem %s9292_s4, %s9298_s16 }
  0x10   : > { %7477 = vmatpush3.bf16.msra.mxu0 %v7998_v5  ;;  %7286 = vmatprep.subr.bf16.mxu1 %v7999_v6  ;;  %s8201_s18 = scalar_lea.vmem %s9288_s0, %s7984_s7 }
  0x11   : > { %7478 = vmatprep.subr.bf16.mxu0 %v8000_v7  ;;  %v8009_v12 = vld [vmem:[%s8201_s18] sm:$0xff]   ;;  %v6446_v13 = vld [vmem:[%s8201_s18 + $0xc] sm:$0xf]  ;;  %v6447_v14 = vld [vmem:[%s8201_s18 + $0x10] sm:$0xf] }
  0x12   : > { %7296 = vmatprep.mubr.bf16.mxu1 %v8009_v12  ;;  %v6448_v15 = vld [vmem:[%s8201_s18 + $0x14] sm:$0x1]  ;;  %v2615_v16 = vshrl.u32 %v6446_v13, 16  ;;  %v2618_v17 = vshll.u32 %v6446_v13, 16  ;;  %v2624_v19 = vshll.u32 %v6447_v14, 16  ;;  %v2628_v20 = vshrl.u32 %v6447_v14, 16 }
  0x13   : > { %7287 = vmatpush3.bf16.msra.mxu1 %v7999_v6  ;;  %v2634_v21 = vshll.u32 %v6448_v15, 16  ;;  %v6449_v29 = vld [vmem:[%s8201_s18 + $0x18] sm:$0xf]  ;;  %v6450_v30 = vld [vmem:[%s8201_s18 + $0x1c] sm:$0xf]  ;;  %v8010_v55 = vld [vmem:[%s8201_s18 + $0xc] sm:$0xff]  }
  0x14   : > { %7479 = vmatpush3.bf16.msra.mxu0 %v8000_v7  ;;  %7288 = vmatprep.subr.bf16.mxu1 %v8001_v8  ;;  %v2617_v22 = vrot.slane %v2615_v16, 4  ;;  %v2620_v23 = vrot.slane %v2618_v17, 5  ;;  %v2626_v25 = vrot.slane %v2624_v19, 5  ;;  %v2630_v26 = vrot.slane %v2628_v20, 4  ;;  %v6451_v31 = vld [vmem:[%s8201_s18 + $0x20] sm:$0x1] }
  0x15   : > { %7480 = vmatprep.subr.bf16.mxu0 %v8002_v9  ;;  %v2636_v27 = vrot.slane %v2634_v21, 5  ;;  %v2639_v35 = vshrl.u32 %v6449_v29, 16  ;;  %v2642_v36 = vshll.u32 %v6449_v29, 16  ;;  %v2648_v37 = vshll.u32 %v6450_v30, 16  ;;  %v6452_v53 = vld [vmem:[%s8201_s18 + $0x24] sm:$0xf] }
  0x16   : > { %v2621_v28 = vor.u32 %v2620_v23, %v2617_v22  ;;  %v2631_v34 = vor.u32 %v2630_v26, %v2626_v25  ;;  %v2652_v40 = vshrl.u32 %v6450_v30, 16  ;;  %v2658_v41 = vshll.u32 %v6451_v31, 16  ;;  %v6453_v57 = vld [vmem:[%s8201_s18 + $0x28] sm:$0xf]  ;;  %v6454_v58 = vld [vmem:[%s8201_s18 + $0x2c] sm:$0x1] }
  0x17   : > { %7289 = vmatpush3.bf16.msra.mxu1 %v8001_v8  ;;  %v2641_v43 = vrot.slane %v2639_v35, 4  ;;  %v2644_v44 = vrot.slane %v2642_v36, 5  ;;  %v2650_v45 = vrot.slane %v2648_v37, 5  ;;  %v2663_v59 = vshrl.u32 %v6452_v53, 16  ;;  %v8014_v2 = vld [vmem:[%s8201_s18 + $0x18] sm:$0xff]   ;;  %v8013_v6 = vld [vmem:[%s9289_s1 + $0x148] sm:$0xff]  }
  0x18   : > { %7481 = vmatpush3.bf16.msra.mxu0 %v8002_v9  ;;  %7290 = vmatprep.subr.bf16.mxu1 %v8003_v10  ;;  %v2622_v39 = vrot.slane %v2621_v28, 4  ;;  %v2632_v42 = vrot.slane %v2631_v34, 4  ;;  %v2654_v48 = vrot.slane %v2652_v40, 4  ;;  %v2660_v51 = vrot.slane %v2658_v41, 5  ;;  %v6455_v13 = vld [vmem:[%s8201_s18 + $0x30] sm:$0xf] }
  0x19   : > { %7482 = vmatprep.subr.bf16.mxu0 %v8004_v11  ;;  %v2645_v50 = vor.u32 %v2644_v44, %v2641_v43  ;;  %v2666_v60 = vshll.u32 %v6452_v53, 16  ;;  %v2672_v62 = vshll.u32 %v6453_v57, 16  ;;  %v2676_v63 = vshrl.u32 %v6453_v57, 16  ;;  %v6456_v14 = vld [vmem:[%s8201_s18 + $0x34] sm:$0xf]  ;;  %v8015_v28 = vld [vmem:[%s8201_s18 + $0x24] sm:$0xff]  }
  0x1a   : > { %v2627_v46 = vsel %vm8224_vm2, %v2622_v39, %v2626_v25  ;;  %v2637_v49 = vsel %vm8224_vm2, %v2632_v42, %v2636_v27  ;;  %v2655_v56 = vor.u32 %v2654_v48, %v2650_v45  ;;  %v2682_v0 = vshll.u32 %v6454_v58, 16  ;;  %v6457_v17 = vld [vmem:[%s8201_s18 + $0x38] sm:$0x1]  ;;  %v8017_v31 = vld [vmem:[%s9289_s1 + $0x150] sm:$0xff]   ;;  %v6458_v39 = vld [vmem:[%s8201_s18 + $0x3c] sm:$0xf] }
  0x1b   : > { %7291 = vmatpush3.bf16.msra.mxu1 %v8003_v10  ;;  %v6510_v54 = vcombine.low %v2627_v46, %v2637_v49  ;;  %v2646_v61 = vrot.slane %v2645_v50, 4  ;;  %v2665_v3 = vrot.slane %v2663_v59, 4  ;;  %v2668_v4 = vrot.slane %v2666_v60, 5  ;;  %v8016_v10 = vld [vmem:[%s9289_s1 + $0x48] sm:$0xff]   ;;  %v8019_v36 = vld [vmem:[%s8201_s18 + $0x30] sm:$0xff]  }
  0x1c   : > { %7483 = vmatpush3.bf16.msra.mxu0 %v8004_v11  ;;  %7292 = vmatprep.subr.bf16.mxu1 %v8005_v18  ;;  %v2656_v1 = vrot.slane %v2655_v56, 4  ;;  %v2674_v7 = vrot.slane %v2672_v62, 5  ;;  %v2678_v8 = vrot.slane %v2676_v63, 4  ;;  %v2684_v9 = vrot.slane %v2682_v0, 5  ;;  %v6459_v40 = vld [vmem:[%s8201_s18 + $0x40] sm:$0xf] }
  0x1d   : > { %7484 = vmatprep.subr.bf16.mxu0 %v8006_v24  ;;  %7488 = vmatprep.mubr.bf16.mxu0 %v6510_v54  ;;  %v2651_v5 = vsel %vm8224_vm2, %v2646_v61, %v2650_v45  ;;  %v2669_v12 = vor.u32 %v2668_v4, %v2665_v3  ;;  %v2690_v19 = vshll.u32 %v6455_v13, 16  ;;  %v2696_v21 = vshll.u32 %v6456_v14, 16  ;;  %v6460_v41 = vld [vmem:[%s8201_s18 + $0x44] sm:$0x1]  ;;  %v8021_v54 = vld [vmem:[%s9289_s1 + $0x50] sm:$0xff]  }
  0x1e   : > { %v2661_v11 = vsel %vm8224_vm2, %v2656_v1, %v2660_v51  ;;  %v2679_v16 = vor.u32 %v2678_v8, %v2674_v7  ;;  %v2700_v22 = vshrl.u32 %v6456_v14, 16  ;;  %v2706_v23 = vshll.u32 %v6457_v17, 16  ;;  %v6461_v58 = vld [vmem:[%s8201_s18 + $0x48] sm:$0xf]  ;;  %v6462_v61 = vld [vmem:[%s8201_s18 + $0x4c] sm:$0xf] }
  0x1f   : > { %7293 = vmatpush3.bf16.msra.mxu1 %v8005_v18  ;;  %v6511_v15 = vcombine.low %v2651_v5, %v2661_v11  ;;  %v2687_v18 = vshrl.u32 %v6455_v13, 16  ;;  %v2670_v20 = vrot.slane %v2669_v12, 4  ;;  %v2692_v26 = vrot.slane %v2690_v19, 5  ;;  %v6463_v62 = vld [vmem:[%s8201_s18 + $0x50] sm:$0x1]  ;;  %v8022_v8 = vld [vmem:[%s9289_s1 + $0x160] sm:$0xff]  }
  0x20   : > { %7485 = vmatpush3.bf16.msra.mxu0 %v8006_v24  ;;  %7294 = vmatprep.subr.bf16.mxu1 %v8007_v32  ;;  %v2680_v24 = vrot.slane %v2679_v16, 4  ;;  %v2698_v29 = vrot.slane %v2696_v21, 5  ;;  %v2702_v30 = vrot.slane %v2700_v22, 4  ;;  %v2708_v35 = vrot.slane %v2706_v23, 5  ;;  %v6464_v19 = vld [vmem:[%s8201_s18 + $0x54] sm:$0xf] }
  0x21   : > { %7486 = vmatprep.subr.bf16.mxu0 %v8008_v38  ;;  %v2689_v25 = vrot.slane %v2687_v18, 4  ;;  %v2675_v27 = vsel %vm8224_vm2, %v2670_v20, %v2674_v7  ;;  %v2711_v43 = vshrl.u32 %v6458_v39, 16  ;;  %v2714_v44 = vshll.u32 %v6458_v39, 16  ;;  %v8024_v18 = vld [vmem:[%s8201_s18 + $0x48] sm:$0xff]   ;;  %v6465_v20 = vld [vmem:[%s8201_s18 + $0x58] sm:$0xf] }
  0x22   : > { %v2720_v45 = vshll.u32 %v6459_v40, 16  ;;  %v2724_v48 = vshrl.u32 %v6459_v40, 16  ;;  %v2730_v49 = vshll.u32 %v6460_v41, 16  ;;  %v2735_v63 = vshrl.u32 %v6461_v58, 16  ;;  %v8023_v23 = vld [vmem:[%s9289_s1 + $0x168] sm:$0xff]   ;;  %v8025_v39 = vld [vmem:[%s8201_s18 + $0x54] sm:$0xff]  }
  0x23   : > { %7295 = vmatpush3.bf16.msra.mxu1 %v8007_v32  ;;  %v2685_v32 = vsel %vm8224_vm2, %v2680_v24, %v2684_v9  ;;  %v2693_v34 = vor.u32 %v2692_v26, %v2689_v25  ;;  %v2713_v51 = vrot.slane %v2711_v43, 4  ;;  %v2738_v0 = vshll.u32 %v6461_v58, 16  ;;  %v6466_v24 = vld [vmem:[%s8201_s18 + $0x5c] sm:$0x1]  ;;  %v6467_v43 = vld [vmem:[%s8201_s18 + $0x60] sm:$0xf] }
  0x24   : > { %7487 = vmatpush3.bf16.msra.mxu0 %v8008_v38  ;;  %7328 = vmatprep.subr.bf16.mxu1 %v8011_v47  ;;  %v6512_v37 = vcombine.low %v2675_v27, %v2685_v32  ;;  %v2703_v38 = vor.u32 %v2702_v30, %v2698_v29  ;;  %v2722_v53 = vrot.slane %v2720_v45, 5  ;;  %v2726_v56 = vrot.slane %v2724_v48, 4  ;;  %v8026_v40 = vld [vmem:[%s9289_s1 + $0x58] sm:$0xff]   ;;  %v6469_v45 = vld [vmem:[%s8201_s18 + $0x68] sm:$0x1] }
  0x25   : > { %7520 = vmatprep.subr.bf16.mxu0 %v8012_v52  ;;  %v2694_v42 = vrot.slane %v2693_v34, 4  ;;  %v2732_v57 = vrot.slane %v2730_v49, 5  ;;  %v2748_v3 = vshrl.u32 %v6462_v61, 16  ;;  %v2754_v4 = vshll.u32 %v6463_v62, 16 }
  0x26   : > { %7297 = vmatmul.mubr.bf16.vlgmr.msra.gmra.mrb[0].mxu1 %v8010_v55  ;;  %v2704_v46 = vrot.slane %v2703_v38, 4  ;;  %v2727_v1 = vor.u32 %v2726_v56, %v2722_v53  ;;  %v2740_v7 = vrot.slane %v2738_v0, 5  ;;  %v2759_v25 = vshrl.u32 %v6464_v19, 16  ;;  %v6534_v0 = vld [vmem:[%s8201_s18 + $0xc] sm:$0xe] }
  0x27   : > { %7489 = vmatmul.mubr.bf16.vlgmr.msra.gmra.mrb[0].mxu0 %v6511_v15  ;;  %7329 = vmatpush3.bf16.msra.mxu1 %v8011_v47  ;;  %v8018_v47 = vld [vmem:[%s9289_s1 + $0x158] sm:$0xff]   ;;  %v2699_v50 = vsel %vm8224_vm2, %v2694_v42, %v2698_v29  ;;  %v2750_v12 = vrot.slane %v2748_v3, 4  ;;  %v2756_v17 = vrot.slane %v2754_v4, 5  ;;  %v2762_v26 = vshll.u32 %v6464_v19, 16 }
  0x28   : > { %7521 = vmatpush3.bf16.msra.mxu0 %v8012_v52  ;;  %7300 = vmatprep.mubr.bf16.mxu1 %v8014_v2  ;;  %v2716_v52 = vrot.slane %v2714_v44, 5  ;;  %v2709_v55 = vsel %vm8224_vm2, %v2704_v46, %v2708_v35  ;;  %v2744_v2 = vshll.u32 %v6462_v61, 16  ;;  %v2728_v9 = vrot.slane %v2727_v1, 4  ;;  %v6468_v44 = vld [vmem:[%s8201_s18 + $0x64] sm:$0xf] }
  0x29   : > { %7522 = vmatprep.subr.bf16.mxu0 %v8013_v6  ;;  %7330 = vmatprep.subr.bf16.mxu1 %v8016_v10  ;;  %v6513_v59 = vcombine.low %v2699_v50, %v2709_v55  ;;  %v2772_v29 = vshrl.u32 %v6465_v20, 16  ;;  %v2778_v30 = vshll.u32 %v6466_v24, 16  ;;  %v2761_v32 = vrot.slane %v2759_v25, 4  ;;  %v8027_v50 = vld [vmem:[%s9289_s1 + $0x170] sm:$0xff]  }
  0x2a   : > { %7492 = vmatprep.mubr.bf16.mxu0 %v6512_v37  ;;  %v2717_v60 = vor.u32 %v2716_v52, %v2713_v51  ;;  %v2746_v11 = vrot.slane %v2744_v2, 5  ;;  %v2733_v15 = vsel %vm8224_vm2, %v2728_v9, %v2732_v57  ;;  %v2764_v34 = vrot.slane %v2762_v26, 5 }
  0x2b   : > { %7331 = vmatpush3.bf16.msra.mxu1 %v8016_v10  ;;  %v8020_v10 = vld [vmem:[%s8201_s18 + $0x3c] sm:$0xff]   ;;  %v2774_v37 = vrot.slane %v2772_v29, 4  ;;  %v2780_v38 = vrot.slane %v2778_v30, 5  ;;  %v2786_v48 = vshll.u32 %v6467_v43, 16  ;;  %v2792_v49 = vshll.u32 %v6468_v44, 16 }
  0x2c   : > { %7523 = vmatpush3.bf16.msra.mxu0 %v8013_v6  ;;  %7332 = vmatprep.subr.bf16.mxu1 %v8021_v54  ;;  %v2718_v5 = vrot.slane %v2717_v60, 4  ;;  %v2737_v6 = vrot.slane %v2735_v63, 4  ;;  %v2751_v16 = vor.u32 %v2750_v12, %v2746_v11  ;;  %v2765_v42 = vor.u32 %v2764_v34, %v2761_v32  ;;  %v8028_v60 = vld [vmem:[%s9289_s1 + $0x178] sm:$0xff]   ;;  %v8029_v63 = vld [vmem:[%s8201_s18 + $0x60] sm:$0xff]   ;;  %v6542_v32 = vld [vmem:[%s8201_s18 + $0x2c] sm:$0x1] }
  0x2d   : > { %7524 = vmatprep.subr.bf16.mxu0 %v8017_v31  ;;  %v2796_v52 = vshrl.u32 %v6468_v44, 16  ;;  %v2788_v56 = vrot.slane %v2786_v48, 5  ;;  %v2794_v57 = vrot.slane %v2792_v49, 5  ;;  %v6540_v29 = vld [vmem:[%s8201_s18 + $0x24] sm:$0xe]  ;;  %v8036_v48 = vld [vmem:[%s9289_s1 + $0x188] sm:$0xff]  }
  0x2e   : > { %7301 = vmatmul.mubr.bf16.gmra.mrb[4].mxu1 %v8015_v28  ;;  %v2723_v13 = vsel %vm8224_vm2, %v2718_v5, %v2722_v53  ;;  %v2741_v14 = vor.u32 %v2740_v7, %v2737_v6  ;;  %v2752_v27 = vrot.slane %v2751_v16, 4  ;;  %v2768_v28 = vshll.u32 %v6465_v20, 16  ;;  %v6535_v5 = vld [vmem:[%s8201_s18 + $0x10] sm:$0xf]  ;;  %v6536_v6 = vld [vmem:[%s8201_s18 + $0x14] sm:$0x1] }
  0x2f   : > { %7304 = vmatprep.mubr.bf16.mxu1 %v8019_v36  ;;  %7333 = vmatpush3.bf16.msra.mxu1 %v8021_v54  ;;  %v6514_v21 = vcombine.low %v2723_v13, %v2733_v15  ;;  %v2766_v51 = vrot.slane %v2765_v42, 4  ;;  %v2802_v53 = vshll.u32 %v6469_v45, 16  ;;  %v6582_v7 = vrot.slane %v6534_v0, 9  ;;  %v8032_v13 = vld [vmem:[%s9289_s1 + $0x180] sm:$0xff]   ;;  %v6538_v20 = vld [vmem:[%s8201_s18 + $0x1c] sm:$0xf] }
  0x30   : > { %7525 = vmatpush3.bf16.msra.mxu0 %v8017_v31  ;;  %v2742_v22 = vrot.slane %v2741_v14, 4  ;;  %v2757_v35 = vsel %vm8224_vm2, %v2752_v27, %v2756_v17  ;;  %v2770_v36 = vrot.slane %v2768_v28, 5  ;;  %7334 = vmatprep.subr.bf16.mxu1 %v8026_v40  ;;  %v3482_v9 = vrot.slane %v6535_v5, 5  ;;  %v8030_v17 = vld [vmem:[%s8201_s18 + $0x6c] sm:$0xff]   ;;  %v8034_v42 = vld [vmem:[%s8201_s18 + $0x84] sm:$0xff]  }
  0x31   : > { %7493 = vmatmul.mubr.bf16.gmra.mrb[4].mxu0 %v6513_v59  ;;  %7526 = vmatprep.subr.bf16.mxu0 %v8018_v47  ;;  %v2798_v59 = vrot.slane %v2796_v52, 4  ;;  %v2804_v3 = vrot.slane %v2802_v53, 5  ;;  %v3489_v26 = vrot.slane %v6538_v20, 5  ;;  %v6584_v34 = vrot.slane %v6540_v29, 9  ;;  %v6544_v44 = vld [vmem:[%s8201_s18 + $0x34] sm:$0xf] }
  0x32   : > { %7496 = vmatprep.mubr.bf16.mxu0 %v6514_v21  ;;  %v2747_v31 = vsel %vm8224_vm2, %v2742_v22, %v2746_v11  ;;  %v2775_v46 = vor.u32 %v2774_v37, %v2770_v36  ;;  %v2771_v58 = vsel %vm8224_vm2, %v2766_v51, %v2770_v36  ;;  %v8031_v11 = vld [vmem:[%s9289_s1 + $0x60] sm:$0xff]   ;;  %v3483_v15 = vsel %vm8324_vm5, %v6582_v7, %v3482_v9  ;;  %v6549_v0 = vld [vmem:[%s8201_s18 + $0x48] sm:$0xe]  ;;  %v6550_v5 = vld [vmem:[%s8201_s18 + $0x4c] sm:$0xf] }
  0x33   : > { %v6515_v41 = vcombine.low %v2747_v31, %v2757_v35  ;;  %7335 = vmatpush3.bf16.msra.mxu1 %v8026_v40  ;;  %v2799_v2 = vor.u32 %v2798_v59, %v2794_v57  ;;  %v3484_v16 = vrot.slane %v3482_v9, 4  ;;  %v6539_v21 = vld [vmem:[%s8201_s18 + $0x20] sm:$0x1]  ;;  %v3491_v30 = vrot.slane %v3489_v26, 4  ;;  %v6541_v31 = vld [vmem:[%s8201_s18 + $0x28] sm:$0xf] }
  0x34   : > { %7527 = vmatpush3.bf16.msra.mxu0 %v8018_v47  ;;  %v2783_v47 = vshrl.u32 %v6467_v43, 16  ;;  %v2776_v54 = vrot.slane %v2775_v46, 4  ;;  %7336 = vmatprep.subr.bf16.mxu1 %v8031_v11  ;;  %v3492_v27 = vrot.slane %v6539_v21, 5  ;;  %v3496_v36 = vrot.slane %v6541_v31, 5  ;;  %v6543_v43 = vld [vmem:[%s8201_s18 + $0x30] sm:$0xe] }
  0x35   : > { %7528 = vmatprep.subr.bf16.mxu0 %v8022_v8  ;;  %v2800_v12 = vrot.slane %v2799_v2, 4  ;;  %v3499_v37 = vrot.slane %v6542_v32, 5  ;;  %v6545_v46 = vld [vmem:[%s8201_s18 + $0x38] sm:$0x1]  ;;  %v8039_v59 = vld [vmem:[%s9289_s1 + $0x70] sm:$0xff]   ;;  %v6587_v7 = vrot.slane %v6549_v0, 9 }
  0x36   : > { %7305 = vmatmul.mubr.bf16.gmra.mrb[8].mxu1 %v8020_v10  ;;  %v2785_v55 = vrot.slane %v2783_v47, 4  ;;  %v2781_v61 = vsel %vm8224_vm2, %v2776_v54, %v2780_v38  ;;  %v3485_v10 = vrot.slane %v6536_v6, 5  ;;  %v3493_v38 = vsel %vm8324_vm5, %v3491_v30, %v3492_v27  ;;  %v8037_v54 = vld [vmem:[%s8201_s18 + $0x90] sm:$0xff]   ;;  %v6555_v27 = vld [vmem:[%s8201_s18 + $0x60] sm:$0xe]  ;;  %v8044_v31 = vld [vmem:[%s9289_s1 + $0x198] sm:$0xff]  }
  0x37   : > { %7308 = vmatprep.mubr.bf16.mxu1 %v8024_v18  ;;  %v6516_v1 = vcombine.low %v2771_v58, %v2781_v61  ;;  %v6537_v18 = vld [vmem:[%s8201_s18 + $0x18] sm:$0xe]  ;;  %v2805_v19 = vsel %vm8224_vm2, %v2800_v12, %v2804_v3  ;;  %7337 = vmatpush3.bf16.msra.mxu1 %v8031_v11  ;;  %v3497_v40 = vsel %vm8324_vm5, %v6584_v34, %v3496_v36  ;;  %v3503_v47 = vrot.slane %v6544_v44, 5  ;;  %v8038_v3 = vld [vmem:[%s8201_s18 + $0x9c] sm:$0xff]   ;;  %v6551_v6 = vld [vmem:[%s8201_s18 + $0x50] sm:$0x1] }
  0x38   : > { %7529 = vmatpush3.bf16.msra.mxu0 %v8022_v8  ;;  %v2789_v62 = vor.u32 %v2788_v56, %v2785_v55  ;;  %v6583_v22 = vrot.slane %v6537_v18, 9  ;;  %v3486_v25 = vsel %vm8324_vm5, %v3484_v16, %v3485_v10  ;;  %v3506_v51 = vrot.slane %v6545_v46, 5  ;;  %v6546_v55 = vld [vmem:[%s8201_s18 + $0x3c] sm:$0xe]  ;;  %v6547_v56 = vld [vmem:[%s8201_s18 + $0x40] sm:$0xf] }
  0x39   : > { %7530 = vmatprep.subr.bf16.mxu0 %v8023_v23  ;;  %7497 = vmatmul.mubr.bf16.gmra.mrb[8].mxu0 %v6515_v41  ;;  %v6614_v28 = vcombine.low %v3483_v15, %v3486_v25  ;;  %v3498_v41 = vrot.slane %v3496_v36, 4  ;;  %v3505_v53 = vrot.slane %v3503_v47, 4  ;;  %v6586_v58 = vrot.slane %v6546_v55, 9  ;;  %v8040_v12 = vld [vmem:[%s9289_s1 + $0x190] sm:$0xff]   ;;  %v8041_v15 = vld [vmem:[%s8201_s18 + $0xa8] sm:$0xff]  }
  0x3a   : > { %v2790_v8 = vrot.slane %v2789_v62, 4  ;;  %7500 = vmatprep.mubr.bf16.mxu0 %v6516_v1  ;;  %v3490_v35 = vsel %vm8324_vm5, %v6583_v22, %v3489_v26  ;;  %v3520_v11 = vrot.slane %v6551_v6, 5  ;;  %v6552_v16 = vld [vmem:[%s8201_s18 + $0x54] sm:$0xe]  ;;  %v6554_v18 = vld [vmem:[%s8201_s18 + $0x5c] sm:$0x1] }
  0x3b   : > { %v6615_v45 = vcombine.low %v3490_v35, %v3493_v38  ;;  %v3500_v49 = vsel %vm8324_vm5, %v3498_v41, %v3499_v37  ;;  %v3527_v21 = vrot.slane %v6554_v18, 5  ;;  %v8043_v26 = vld [vmem:[%s9289_s1 + $0x78] sm:$0xff]   ;;  %v6557_v29 = vld [vmem:[%s8201_s18 + $0x68] sm:$0x1]  ;;  %v6589_v30 = vrot.slane %v6555_v27, 9 }
  0x3c   : > { %7531 = vmatpush3.bf16.msra.mxu0 %v8023_v23  ;;  %v2795_v14 = vsel %vm8224_vm2, %v2790_v8, %v2794_v57  ;;  %v8033_v23 = vld [vmem:[%s8201_s18 + $0x78] sm:$0xff]   ;;  %v6616_v52 = vcombine.low %v3497_v40, %v3500_v49  ;;  %v6548_v57 = vld [vmem:[%s8201_s18 + $0x44] sm:$0x1]  ;;  %v3517_v8 = vrot.slane %v6550_v5, 5  ;;  %v3534_v36 = vrot.slane %v6557_v29, 5 }
  0x3d   : > { %7532 = vmatprep.subr.bf16.mxu0 %v8027_v50  ;;  %v6517_v24 = vcombine.low %v2795_v14, %v2805_v19  ;;  %v3513_v61 = vrot.slane %v6548_v57, 5  ;;  %v6588_v19 = vrot.slane %v6552_v16, 9  ;;  %v8042_v34 = vld [vmem:[%s8201_s18 + $0xb4] sm:$0xff]   ;;  %v698_v40 = vld [vmem:[%s8201_s18 + $0x4] sm:$0xf] }
  0x3e   : > { %7309 = vmatmul.mubr.bf16.gmra.mrb[12].mxu1 %v8025_v39  ;;  %v8035_v39 = vld [vmem:[%s9289_s1 + $0x68] sm:$0xff]   ;;  %v3519_v14 = vrot.slane %v3517_v8, 4  ;;  %v3518_v22 = vsel %vm8324_vm5, %v6587_v7, %v3517_v8  ;;  %v762_v49 = vshrl.u32 %v698_v40, 16  ;;  %v701_v5 = vld [vmem:[%s8201_s18 + $0x10] sm:$0xf] }
  0x3f   : > { %7312 = vmatprep.mubr.bf16.mxu1 %v8029_v63  ;;  %7338 = vmatprep.subr.bf16.mxu1 %v8035_v39  ;;  %v3507_v63 = vsel %vm8324_vm5, %v3505_v53, %v3506_v51  ;;  %v699_v41 = vld [vmem:[%s8201_s18 + $0x8] sm:$0x1]  ;;  %v6558_v46 = vld [vmem:[%s8201_s18 + $0x6c] sm:$0xe]  ;;  %v6559_v51 = vld [vmem:[%s8201_s18 + $0x70] sm:$0xf] }
  0x40   : > { %7533 = vmatpush3.bf16.msra.mxu0 %v8027_v50  ;;  %v6585_v50 = vrot.slane %v6543_v43, 9  ;;  %7339 = vmatpush3.bf16.msra.mxu1 %v8035_v39  ;;  %v697_v39 = vld [vmem:[%s8201_s18] sm:$0xf]  ;;  %v3538_v57 = vrot.slane %v6559_v51, 5  ;;  %v702_v6 = vld [vmem:[%s8201_s18 + $0x14] sm:$0x1] }
  0x41   : > { %7534 = vmatprep.subr.bf16.mxu0 %v8028_v60  ;;  %7501 = vmatmul.mubr.bf16.gmra.mrb[12].mxu0 %v6517_v24  ;;  %v749_v44 = vshrl.u32 %v697_v39, 16  ;;  %v6563_v29 = vld [vmem:[%s8201_s18 + $0x80] sm:$0x1] }
  0x42   : > { %7536 = vmatprep.mubr.bf16.mxu0 %v6614_v28  ;;  %v3504_v62 = vsel %vm8324_vm5, %v6585_v50, %v3503_v47  ;;  %7340 = vmatprep.subr.bf16.mxu1 %v8039_v59  ;;  %v6556_v28 = vld [vmem:[%s8201_s18 + $0x64] sm:$0xf]  ;;  %v768_v50 = vshll.u32 %v699_v41, 16  ;;  %v704_v41 = vld [vmem:[%s8201_s18 + $0x1c] sm:$0xf] }
  0x43   : > { %v6617_v9 = vcombine.low %v3504_v62, %v3507_v63  ;;  %v3531_v35 = vrot.slane %v6556_v28, 5  ;;  %v8425_v47 = vld [vmem:[%s9289_s1 + $0x80] sm:$0xff]   ;;  %v700_v63 = vld [vmem:[%s8201_s18 + $0xc] sm:$0xf]  ;;  %v810_v51 = vshrl.u32 %v704_v41, 16 }
  0x44   : > { %7535 = vmatpush3.bf16.msra.mxu0 %v8028_v60  ;;  %v3510_v60 = vrot.slane %v6547_v56, 5  ;;  %7341 = vmatpush3.bf16.msra.mxu1 %v8039_v59  ;;  %v6560_v56 = vld [vmem:[%s8201_s18 + $0x74] sm:$0x1]  ;;  %v770_v62 = vrot.slane %v768_v50, 5  ;;  %v773_v8 = vshrl.u32 %v700_v63, 16 }
  0x45   : > { %7568 = vmatprep.subr.bf16.mxu0 %v8032_v13  ;;  %7342 = vmatprep.subr.bf16.mxu1 %v8043_v26  ;;  %v3533_v43 = vrot.slane %v3531_v35, 4 }
  0x46   : > { %7313 = vmatmul.mubr.bf16.gmra.mrb[16].mxu1 %v8030_v17  ;;  %v3511_v1 = vsel %vm8324_vm5, %v6586_v58, %v3510_v60  ;;  %v3512_v2 = vrot.slane %v3510_v60, 4  ;;  %v6553_v17 = vld [vmem:[%s8201_s18 + $0x58] sm:$0xf]  ;;  %v8046_v58 = vld [vmem:[%s9289_s1 + $0x1a0] sm:$0xff]   ;;  %v775_v18 = vrot.slane %v773_v8, 4 }
  0x47   : > { %7316 = vmatprep.mubr.bf16.mxu1 %v8033_v23  ;;  %v3524_v20 = vrot.slane %v6553_v17, 5  ;;  %v3521_v23 = vsel %vm8324_vm5, %v3519_v14, %v3520_v11  ;;  %v3535_v53 = vsel %vm8324_vm5, %v3533_v43, %v3534_v36  ;;  %v8048_v11 = vld [vmem:[%s9289_s1 + $0x1a8] sm:$0xff]   ;;  %v786_v14 = vshrl.u32 %v701_v5, 16  ;;  %v703_v36 = vld [vmem:[%s8201_s18 + $0x18] sm:$0xf] }
  0x48   : > { %v3514_v10 = vsel %vm8324_vm5, %v3512_v2, %v3513_v61  ;;  %v6619_v37 = vcombine.low %v3518_v22, %v3521_v23  ;;  %7343 = vmatpush3.bf16.msra.mxu1 %v8043_v26  ;;  %v764_v61 = vrot.slane %v762_v49, 4  ;;  %v3540_v2 = vrot.slane %v3538_v57, 4  ;;  %v6562_v26 = vld [vmem:[%s8201_s18 + $0x7c] sm:$0xf] }
  0x49   : > { %7537 = vmatmul.mubr.bf16.vlgmr.msra.gmra.mrb[0].mxu0 %v6615_v45  ;;  %v3525_v24 = vsel %vm8324_vm5, %v6588_v19, %v3524_v20  ;;  %v3526_v25 = vrot.slane %v3524_v20, 4  ;;  %v752_v45 = vshll.u32 %v697_v39, 16  ;;  %7376 = vmatprep.subr.bf16.mxu1 %v8425_v47  ;;  %v6561_v20 = vld [vmem:[%s8201_s18 + $0x78] sm:$0xe] }
  0x4a   : > { %7569 = vmatpush3.bf16.msra.mxu0 %v8032_v13  ;;  %7540 = vmatprep.mubr.bf16.mxu0 %v6616_v52  ;;  %v6618_v13 = vcombine.low %v3511_v1, %v3514_v10  ;;  %v6590_v52 = vrot.slane %v6558_v46, 9  ;;  %v782_v10 = vshll.u32 %v701_v5, 16  ;;  %v806_v46 = vshll.u32 %v704_v41, 16 }
  0x4b   : > { %7570 = vmatprep.subr.bf16.mxu0 %v8036_v48  ;;  %v3528_v32 = vsel %vm8324_vm5, %v3526_v25, %v3527_v21  ;;  %v754_v55 = vrot.slane %v752_v45, 5  ;;  %v8050_v21 = vld [vmem:[%s9289_s1 + $0x1b0] sm:$0xff]   ;;  %v800_v45 = vshll.u32 %v703_v36, 16 }
  0x4c   : > { %v6620_v38 = vcombine.low %v3525_v24, %v3528_v32  ;;  %v3539_v1 = vsel %vm8324_vm5, %v6590_v52, %v3538_v57  ;;  %v784_v23 = vrot.slane %v782_v10, 5  ;;  %v788_v24 = vrot.slane %v786_v14, 4 }
  0x4e   : > { %7317 = vmatmul.mubr.bf16.gmra.mrb[20].mxu1 %v8034_v42  ;;  %7571 = vmatpush3.bf16.msra.mxu0 %v8036_v48  ;;  %v8419_v42 = vsel %vm8324_vm5, %v6589_v30, %v3531_v35  ;;  %v758_v48 = vshll.u32 %v698_v40, 16  ;;  %v6591_v30 = vrot.slane %v6561_v20, 9  ;;  %v3548_v35 = vrot.slane %v6563_v29, 5 }
  0x4f   : > { %7320 = vmatprep.mubr.bf16.mxu1 %v8037_v54  ;;  %7572 = vmatprep.subr.bf16.mxu0 %v8040_v12  ;;  %v751_v54 = vrot.slane %v749_v44, 4  ;;  %v6621_v59 = vcombine.low %v8419_v42, %v3535_v53  ;;  %v705_v42 = vld [vmem:[%s8201_s18 + $0x20] sm:$0x1]  ;;  %v797_v44 = vshrl.u32 %v703_v36, 16  ;;  %v6565_v53 = vld [vmem:[%s8201_s18 + $0x88] sm:$0xf] }
  0x50   : > { %v760_v60 = vrot.slane %v758_v48, 5  ;;  %v6564_v48 = vld [vmem:[%s8201_s18 + $0x84] sm:$0xe]  ;;  %v816_v52 = vshll.u32 %v705_v42, 16 }
  0x51   : > { %7541 = vmatmul.mubr.bf16.gmra.mrb[4].mxu0 %v6617_v9  ;;  %v755_v0 = vor.u32 %v754_v55, %v751_v54  ;;  %v776_v9 = vshll.u32 %v700_v63, 16  ;;  %v6566_v54 = vld [vmem:[%s8201_s18 + $0x8c] sm:$0x1]  ;;  %v799_v57 = vrot.slane %v797_v44, 4  ;;  %v812_v63 = vrot.slane %v810_v51, 4 }
  0x52   : > { %7544 = vmatprep.mubr.bf16.mxu0 %v6618_v13  ;;  %7573 = vmatpush3.bf16.msra.mxu0 %v8040_v12  ;;  %v765_v7 = vor.u32 %v764_v61, %v760_v60  ;;  %v6592_v5 = vrot.slane %v6564_v48, 9  ;;  %v6571_v51 = vld [vmem:[%s8201_s18 + $0xa0] sm:$0xf] }
  0x53   : > { %7574 = vmatprep.subr.bf16.mxu0 %v8044_v31  ;;  %v756_v12 = vrot.slane %v755_v0, 4  ;;  %v778_v19 = vrot.slane %v776_v9, 5  ;;  %v818_v0 = vrot.slane %v816_v52, 5 }
  0x54   : > { %v766_v16 = vrot.slane %v765_v7, 4  ;;  %v3555_v7 = vrot.slane %v6566_v54, 5 }
  0x55   : > { %v761_v22 = vsel %vm8224_vm2, %v756_v12, %v760_v60  ;;  %v779_v28 = vor.u32 %v778_v19, %v775_v18  ;;  %v707_v60 = vld [vmem:[%s8201_s18 + $0x28] sm:$0xf]  ;;  %v8049_v12 = vld [vmem:[%s9289_s1 + $0x90] sm:$0xff]   ;;  %v8489_v18 = vld [vmem:[%s9289_s1 + $0x1c0] sm:$0xff]  }
  0x56   : > { %7321 = vmatmul.mubr.bf16.gmra.mrb[24].mxu1 %v8038_v3  ;;  %7575 = vmatpush3.bf16.msra.mxu0 %v8044_v31  ;;  %v3541_v3 = vrot.slane %v6560_v56, 5  ;;  %v771_v27 = vsel %vm8224_vm2, %v766_v16, %v770_v62  ;;  %v3545_v31 = vrot.slane %v6562_v26, 5  ;;  %v808_v62 = vrot.slane %v806_v46, 5 }
  0x57   : > { %7324 = vmatprep.mubr.bf16.mxu1 %v8041_v15  ;;  %7576 = vmatprep.subr.bf16.mxu0 %v8046_v58  ;;  %v792_v15 = vshll.u32 %v702_v6, 16  ;;  %v6294_v32 = vcombine.low %v761_v22, %v771_v27  ;;  %v3552_v6 = vrot.slane %v6565_v53, 5  ;;  %v834_v16 = vshrl.u32 %v707_v60, 16  ;;  %v6569_v27 = vld [vmem:[%s8201_s18 + $0x98] sm:$0x1] }
  0x58   : > { %v3542_v13 = vsel %vm8324_vm5, %v3540_v2, %v3541_v3  ;;  %v3546_v39 = vsel %vm8324_vm5, %v6591_v30, %v3545_v31  ;;  %v3547_v40 = vrot.slane %v3545_v31, 4  ;;  %v8047_v2 = vld [vmem:[%s9289_s1 + $0x88] sm:$0xff]   ;;  %v813_v8 = vor.u32 %v812_v63, %v808_v62 }
  0x59   : > { %7545 = vmatmul.mubr.bf16.gmra.mrb[8].mxu0 %v6619_v37  ;;  %v6622_v17 = vcombine.low %v3539_v1, %v3542_v13  ;;  %v794_v25 = vrot.slane %v792_v15, 5  ;;  %v8052_v37 = vld [vmem:[%s9289_s1 + $0x1b8] sm:$0xff]   ;;  %v708_v1 = vld [vmem:[%s8201_s18 + $0x2c] sm:$0x1]  ;;  %v3553_v14 = vsel %vm8324_vm5, %v6592_v5, %v3552_v6  ;;  %v3554_v15 = vrot.slane %v3552_v6, 4  ;;  %v8054_v5 = vld [vmem:[%s9289_s1 + $0xa0] sm:$0xff]  }
  0x5a   : > { %7548 = vmatprep.mubr.bf16.mxu0 %v6620_v38  ;;  %7577 = vmatpush3.bf16.msra.mxu0 %v8046_v58  ;;  %v780_v38 = vrot.slane %v779_v28, 4  ;;  %v3549_v50 = vsel %vm8324_vm5, %v3547_v40, %v3548_v35  ;;  %v802_v58 = vrot.slane %v800_v45, 5  ;;  %v814_v19 = vrot.slane %v813_v8, 4  ;;  %v711_v40 = vld [vmem:[%s8201_s18 + $0x38] sm:$0x1] }
  0x5b   : > { %7578 = vmatprep.subr.bf16.mxu0 %v8048_v11  ;;  %v6623_v56 = vcombine.low %v3546_v39, %v3549_v50  ;;  %v840_v26 = vshll.u32 %v708_v1, 16  ;;  %v710_v39 = vld [vmem:[%s8201_s18 + $0x34] sm:$0xf]  ;;  %v3562_v42 = vrot.slane %v6569_v27, 5  ;;  %v6570_v45 = vld [vmem:[%s8201_s18 + $0x9c] sm:$0xe] }
  0x5c   : > { %v785_v49 = vsel %vm8224_vm2, %v780_v38, %v784_v23  ;;  %v803_v3 = vor.u32 %v802_v58, %v799_v57  ;;  %v819_v28 = vsel %vm8224_vm2, %v814_v19, %v818_v0  ;;  %v854_v50 = vshll.u32 %v710_v39, 16 }
  0x5d   : > { %v3566_v8 = vrot.slane %v6571_v51, 5 }
  0x5e   : > { %7325 = vmatmul.mubr.bf16.gmra.mrb[28].mxu1 %v8042_v34  ;;  %v789_v34 = vor.u32 %v788_v24, %v784_v23  ;;  %7579 = vmatpush3.bf16.msra.mxu0 %v8048_v11  ;;  %v830_v11 = vshll.u32 %v707_v60, 16  ;;  %v804_v13 = vrot.slane %v803_v3, 4  ;;  %v3556_v24 = vsel %vm8324_vm5, %v3554_v15, %v3555_v7  ;;  %v714_v3 = vld [vmem:[%s8201_s18 + $0x44] sm:$0x1] }
  0x5f   : > { %7580 = vmatprep.subr.bf16.mxu0 %v8050_v21  ;;  %7344 = vmatprep.mubr.bf16.mxu1 %v6294_v32  ;;  %v6624_v29 = vcombine.low %v3553_v14, %v3556_v24  ;;  %v709_v32 = vld [vmem:[%s8201_s18 + $0x30] sm:$0xf]  ;;  %v864_v60 = vshll.u32 %v711_v40, 16  ;;  %v6594_v7 = vrot.slane %v6570_v45, 9  ;;  %v6573_v14 = vld [vmem:[%s8201_s18 + $0xa8] sm:$0xe] }
  0x60   : > { %v790_v43 = vrot.slane %v789_v34, 4  ;;  %v832_v22 = vrot.slane %v830_v11, 5  ;;  %v809_v23 = vsel %vm8224_vm2, %v804_v13, %v808_v62  ;;  %v8051_v34 = vld [vmem:[%s9289_s1 + $0x98] sm:$0xff]   ;;  %v848_v44 = vshll.u32 %v709_v32, 16  ;;  %v713_v62 = vld [vmem:[%s8201_s18 + $0x40] sm:$0xf] }
  0x61   : > { %7549 = vmatmul.mubr.bf16.gmra.mrb[12].mxu0 %v6621_v59  ;;  %v706_v59 = vld [vmem:[%s8201_s18 + $0x24] sm:$0xf]  ;;  %v6296_v35 = vcombine.low %v809_v23, %v819_v28  ;;  %v866_v6 = vrot.slane %v864_v60, 5  ;;  %v3567_v15 = vsel %vm8324_vm5, %v6594_v7, %v3566_v8  ;;  %v882_v19 = vshrl.u32 %v713_v62, 16  ;;  %v6575_v24 = vld [vmem:[%s8201_s18 + $0xb0] sm:$0x1] }
  0x62   : > { %7552 = vmatprep.mubr.bf16.mxu0 %v6622_v17  ;;  %v795_v55 = vsel %vm8224_vm2, %v790_v43, %v794_v25  ;;  %7581 = vmatpush3.bf16.msra.mxu0 %v8050_v21  ;;  %v821_v9 = vshrl.u32 %v706_v59, 16  ;;  %v824_v10 = vshll.u32 %v706_v59, 16  ;;  %v6567_v17 = vld [vmem:[%s8201_s18 + $0x90] sm:$0xe]  ;;  %v836_v25 = vrot.slane %v834_v16, 4  ;;  %v8066_v7 = vld [vmem:[%s9289_s1 + $0xb8] sm:$0xff]  }
  0x63   : > { %v6295_v61 = vcombine.low %v785_v49, %v795_v55  ;;  %7582 = vmatprep.subr.bf16.mxu0 %v8052_v37  ;;  %v6593_v31 = vrot.slane %v6567_v17, 9  ;;  %v845_v43 = vshrl.u32 %v709_v32, 16  ;;  %v850_v54 = vrot.slane %v848_v44, 5 }
  0x64   : > { %v823_v20 = vrot.slane %v821_v9, 4  ;;  %v826_v21 = vrot.slane %v824_v10, 5  ;;  %v837_v36 = vor.u32 %v836_v25, %v832_v22  ;;  %v858_v55 = vshrl.u32 %v710_v39, 16  ;;  %v8058_v25 = vld [vmem:[%s9289_s1 + $0xa8] sm:$0xff]  }
  0x65   : > { %v847_v53 = vrot.slane %v845_v43, 4  ;;  %v856_v59 = vrot.slane %v854_v50, 5  ;;  %v3568_v16 = vrot.slane %v3566_v8, 4  ;;  %v878_v17 = vshll.u32 %v713_v62, 16 }
  0x66   : > { %7345 = vmatmul.mubr.bf16.vlgmr.msra.gmra.mrb[0].mxu1 %v6295_v61  ;;  %7583 = vmatpush3.bf16.msra.mxu0 %v8052_v37  ;;  %v827_v30 = vor.u32 %v826_v21, %v823_v20  ;;  %v842_v37 = vrot.slane %v840_v26, 5  ;;  %v838_v46 = vrot.slane %v837_v36, 4  ;;  %v712_v61 = vld [vmem:[%s8201_s18 + $0x3c] sm:$0xf]  ;;  %v6574_v20 = vld [vmem:[%s8201_s18 + $0xac] sm:$0xf] }
  0x67   : > { %7377 = vmatpush3.bf16.msra.mxu1 %v8425_v47  ;;  %v6568_v47 = vld [vmem:[%s8201_s18 + $0x94] sm:$0xf]  ;;  %7616 = vmatprep.subr.bf16.mxu0 %v8489_v18  ;;  %v851_v1 = vor.u32 %v850_v54, %v847_v53  ;;  %v872_v13 = vshll.u32 %v712_v61, 16  ;;  %v880_v27 = vrot.slane %v878_v17, 5  ;;  %v884_v28 = vrot.slane %v882_v19, 4 }
  0x68   : > { %7378 = vmatprep.subr.bf16.mxu1 %v8047_v2  ;;  %v3559_v38 = vrot.slane %v6568_v47, 5  ;;  %v828_v41 = vrot.slane %v827_v30, 4  ;;  %7348 = vmatprep.mubr.bf16.mxu1 %v6296_v35  ;;  %v843_v57 = vsel %vm8224_vm2, %v838_v46, %v842_v37  ;;  %v715_v35 = vld [vmem:[%s8201_s18 + $0x48] sm:$0xf]  ;;  %v8062_v36 = vld [vmem:[%s9289_s1 + $0xb0] sm:$0xff]   ;;  %v3573_v40 = vrot.slane %v6574_v20, 5 }
  0x69   : > { %7553 = vmatmul.mubr.bf16.gmra.mrb[16].mxu0 %v6623_v56  ;;  %v6572_v56 = vld [vmem:[%s8201_s18 + $0xa4] sm:$0x1]  ;;  %v852_v10 = vrot.slane %v851_v1, 4  ;;  %v874_v23 = vrot.slane %v872_v13, 5  ;;  %v3576_v44 = vrot.slane %v6575_v24, 5  ;;  %v893_v45 = vshrl.u32 %v715_v35, 16 }
  0x6a   : > { %7556 = vmatprep.mubr.bf16.mxu0 %v6624_v29  ;;  %v3560_v48 = vsel %vm8324_vm5, %v6593_v31, %v3559_v38  ;;  %v3561_v49 = vrot.slane %v3559_v38, 4  ;;  %v833_v52 = vsel %vm8224_vm2, %v828_v41, %v832_v22  ;;  %v3569_v9 = vrot.slane %v6572_v56, 5  ;;  %v716_v41 = vld [vmem:[%s8201_s18 + $0x4c] sm:$0xf]  ;;  %v6577_v53 = vld [vmem:[%s8201_s18 + $0xb8] sm:$0xf] }
  0x6b   : > { %7379 = vmatpush3.bf16.msra.mxu1 %v8047_v2  ;;  %v6297_v63 = vcombine.low %v833_v52, %v843_v57  ;;  %v860_v2 = vrot.slane %v858_v55, 4  ;;  %v857_v21 = vsel %vm8224_vm2, %v852_v10, %v856_v59  ;;  %v888_v29 = vshll.u32 %v714_v3, 16 }
  0x6c   : > { %7380 = vmatprep.subr.bf16.mxu1 %v8049_v12  ;;  %v3563_v58 = vsel %vm8324_vm5, %v3561_v49, %v3562_v42  ;;  %v3570_v26 = vsel %vm8324_vm5, %v3568_v16, %v3569_v9  ;;  %v885_v38 = vor.u32 %v884_v28, %v880_v27  ;;  %v717_v42 = vld [vmem:[%s8201_s18 + $0x50] sm:$0x1]  ;;  %v896_v46 = vshll.u32 %v715_v35, 16  ;;  %v6579_v16 = vld [vmem:[%s8201_s18 + $0xc0] sm:$0xe] }
  0x6d   : > { %v6625_v0 = vcombine.low %v3560_v48, %v3563_v58  ;;  %v861_v11 = vor.u32 %v860_v2, %v856_v59  ;;  %v6626_v31 = vcombine.low %v3567_v15, %v3570_v26  ;;  %v890_v39 = vrot.slane %v888_v29, 5  ;;  %v6576_v48 = vld [vmem:[%s8201_s18 + $0xb4] sm:$0xe]  ;;  %v6578_v58 = vld [vmem:[%s8201_s18 + $0xbc] sm:$0x1] }
  0x6e   : > { %7349 = vmatmul.mubr.bf16.gmra.mrb[4].mxu1 %v6297_v63  ;;  %v886_v49 = vrot.slane %v885_v38, 4  ;;  %v3575_v51 = vrot.slane %v3573_v40, 4  ;;  %v902_v52 = vshll.u32 %v716_v41, 16  ;;  %v895_v55 = vrot.slane %v893_v45, 4  ;;  %v718_v63 = vld [vmem:[%s8201_s18 + $0x54] sm:$0xf] }
  0x6f   : > { %7381 = vmatpush3.bf16.msra.mxu1 %v8049_v12  ;;  %v869_v12 = vshrl.u32 %v712_v61, 16  ;;  %v862_v22 = vrot.slane %v861_v11, 4  ;;  %v898_v56 = vrot.slane %v896_v46, 5  ;;  %v906_v57 = vshrl.u32 %v716_v41, 16  ;;  %v6581_v26 = vld [vmem:[%s8201_s18 + $0xc8] sm:$0x1] }
  0x70   : > { %7382 = vmatprep.subr.bf16.mxu1 %v8051_v34  ;;  %v891_v59 = vsel %vm8224_vm2, %v886_v49, %v890_v39  ;;  %v3577_v60 = vsel %vm8324_vm5, %v3575_v51, %v3576_v44  ;;  %v904_v61 = vrot.slane %v902_v52, 5  ;;  %v912_v62 = vshll.u32 %v717_v42, 16  ;;  %v722_v42 = vld [vmem:[%s8201_s18 + $0x64] sm:$0xf] }
  0x71   : > { %7557 = vmatmul.mubr.bf16.gmra.mrb[20].mxu0 %v6625_v0  ;;  %v871_v47 = vrot.slane %v869_v12, 4  ;;  %v867_v30 = vsel %vm8224_vm2, %v862_v22, %v866_v6  ;;  %v719_v0 = vld [vmem:[%s8201_s18 + $0x58] sm:$0xf]  ;;  %v899_v3 = vor.u32 %v898_v56, %v895_v55  ;;  %v720_v6 = vld [vmem:[%s8201_s18 + $0x5c] sm:$0x1]  ;;  %v6596_v9 = vrot.slane %v6576_v48, 9 }
  0x72   : > { %v6298_v37 = vcombine.low %v857_v21, %v867_v30  ;;  %7560 = vmatprep.mubr.bf16.mxu0 %v6626_v31  ;;  %v914_v8 = vrot.slane %v912_v62, 5  ;;  %v3580_v10 = vrot.slane %v6577_v53, 5  ;;  %v3583_v11 = vrot.slane %v6578_v58, 5  ;;  %v6580_v22 = vld [vmem:[%s8201_s18 + $0xc4] sm:$0xf] }
  0x73   : > { %7383 = vmatpush3.bf16.msra.mxu1 %v8051_v34  ;;  %v875_v32 = vor.u32 %v874_v23, %v871_v47  ;;  %v6595_v34 = vrot.slane %v6573_v14, 9  ;;  %v900_v12 = vrot.slane %v899_v3, 4  ;;  %v917_v14 = vshrl.u32 %v718_v63, 16  ;;  %v724_v58 = vld [vmem:[%s8201_s18 + $0x6c] sm:$0xf] }
  0x74   : > { %7384 = vmatprep.subr.bf16.mxu1 %v8054_v5  ;;  %7352 = vmatprep.mubr.bf16.mxu1 %v6298_v37  ;;  %v920_v15 = vshll.u32 %v718_v63, 16  ;;  %v3581_v17 = vsel %vm8324_vm5, %v6596_v9, %v3580_v10  ;;  %v3582_v19 = vrot.slane %v3580_v10, 4  ;;  %v926_v20 = vshll.u32 %v719_v0, 16  ;;  %v721_v37 = vld [vmem:[%s8201_s18 + $0x60] sm:$0xf] }
  0x75   : > { %v876_v43 = vrot.slane %v875_v32, 4  ;;  %v3574_v50 = vsel %vm8324_vm5, %v6595_v34, %v3573_v40  ;;  %v930_v21 = vshrl.u32 %v719_v0, 16  ;;  %v905_v47 = vsel %vm8224_vm2, %v900_v12, %v904_v61  ;;  %v725_v63 = vld [vmem:[%s8201_s18 + $0x70] sm:$0xf]  ;;  %v726_v0 = vld [vmem:[%s8201_s18 + $0x74] sm:$0x1] }
  0x76   : > { %v6627_v2 = vcombine.low %v3574_v50, %v3577_v60  ;;  %v919_v24 = vrot.slane %v917_v14, 4  ;;  %v3584_v28 = vsel %vm8324_vm5, %v3582_v19, %v3583_v11  ;;  %v928_v29 = vrot.slane %v926_v20, 5 }
  0x77   : > { %7385 = vmatpush3.bf16.msra.mxu1 %v8054_v5  ;;  %v881_v54 = vsel %vm8224_vm2, %v876_v43, %v880_v27  ;;  %v908_v5 = vrot.slane %v906_v57, 4  ;;  %v8570_v27 = vld [vmem:[%s9289_s1 + $0xc0] sm:$0xff]   ;;  %v932_v30 = vrot.slane %v930_v21, 4  ;;  %v936_v31 = vshll.u32 %v720_v6, 16  ;;  %v723_v43 = vld [vmem:[%s8201_s18 + $0x68] sm:$0x1] }
  0x78   : > { %7386 = vmatprep.subr.bf16.mxu1 %v8058_v25  ;;  %v6299_v1 = vcombine.low %v881_v54, %v891_v59  ;;  %v6628_v34 = vcombine.low %v3581_v17, %v3584_v28  ;;  %v3587_v41 = vrot.slane %v6580_v22, 5  ;;  %v3590_v45 = vrot.slane %v6581_v26, 5  ;;  %v8053_v57 = vld [vmem:[%s8201_s18 + $0x18] sm:$0xff]   ;;  %v8055_v22 = vld [vmem:[%s8201_s18 + $0x24] sm:$0xff]   ;;  %v8057_v26 = vld [vmem:[%s8201_s18 + $0x30] sm:$0xff]  }
  0x79   : > { %7561 = vmatmul.mubr.bf16.gmra.mrb[24].mxu0 %v6627_v2  ;;  %v909_v13 = vor.u32 %v908_v5, %v904_v61  ;;  %v933_v39 = vor.u32 %v932_v30, %v928_v29  ;;  %v938_v40 = vrot.slane %v936_v31, 5  ;;  %v941_v46 = vshrl.u32 %v721_v37, 16 }
  0x7a   : > { %7353 = vmatmul.mubr.bf16.gmra.mrb[8].mxu1 %v6299_v1  ;;  %7564 = vmatprep.mubr.bf16.mxu0 %v6628_v34  ;;  %v944_v48 = vshll.u32 %v721_v37, 16  ;;  %v3589_v51 = vrot.slane %v3587_v41, 4  ;;  %v950_v52 = vshll.u32 %v722_v42, 16  ;;  %v954_v56 = vshrl.u32 %v722_v42, 16  ;;  %v730_v37 = vld [vmem:[%s8201_s18 + $0x84] sm:$0xf] }
  0x7b   : > { %7387 = vmatpush3.bf16.msra.mxu1 %v8058_v25  ;;  %v910_v23 = vrot.slane %v909_v13, 4  ;;  %v922_v25 = vrot.slane %v920_v15, 5  ;;  %v934_v49 = vrot.slane %v933_v39, 4  ;;  %v943_v54 = vrot.slane %v941_v46, 4 }
  0x7c   : > { %7388 = vmatprep.subr.bf16.mxu1 %v8062_v36  ;;  %v946_v55 = vrot.slane %v944_v48, 5  ;;  %v3591_v60 = vsel %vm8324_vm5, %v3589_v51, %v3590_v45  ;;  %v952_v61 = vrot.slane %v950_v52, 5  ;;  %v960_v62 = vshll.u32 %v723_v43, 16  ;;  %v731_v43 = vld [vmem:[%s8201_s18 + $0x88] sm:$0xf] }
  0x7d   : > { %v915_v32 = vsel %vm8224_vm2, %v910_v23, %v914_v8  ;;  %v923_v35 = vor.u32 %v922_v25, %v919_v24  ;;  %v939_v59 = vsel %vm8224_vm2, %v934_v49, %v938_v40  ;;  %v956_v5 = vrot.slane %v954_v56, 4  ;;  %v727_v23 = vld [vmem:[%s8201_s18 + $0x78] sm:$0xf]  ;;  %v728_v24 = vld [vmem:[%s8201_s18 + $0x7c] sm:$0xf] }
  0x7e   : > { %v6300_v38 = vcombine.low %v905_v47, %v915_v32  ;;  %v947_v3 = vor.u32 %v946_v55, %v943_v54  ;;  %v962_v6 = vrot.slane %v960_v62, 5  ;;  %v968_v8 = vshll.u32 %v724_v58, 16  ;;  %v729_v25 = vld [vmem:[%s8201_s18 + $0x80] sm:$0x1]  ;;  %v732_v48 = vld [vmem:[%s8201_s18 + $0x8c] sm:$0x1] }
  0x7f   : > { %7389 = vmatpush3.bf16.msra.mxu1 %v8062_v36  ;;  %v6597_v36 = vrot.slane %v6579_v16, 9  ;;  %v924_v44 = vrot.slane %v923_v35, 4  ;;  %v974_v9 = vshll.u32 %v725_v63, 16  ;;  %v957_v11 = vor.u32 %v956_v5, %v952_v61  ;;  %v8064_v54 = vld [vmem:[%s9289_s1 + $0x1d0] sm:$0xff]  }
  0x80   : > { %7390 = vmatprep.subr.bf16.mxu1 %v8066_v7  ;;  %7356 = vmatprep.mubr.bf16.mxu1 %v6300_v38  ;;  %v948_v10 = vrot.slane %v947_v3, 4  ;;  %v978_v12 = vshrl.u32 %v725_v63, 16  ;;  %v984_v13 = vshll.u32 %v726_v0, 16  ;;  %v970_v15 = vrot.slane %v968_v8, 5  ;;  %v8060_v38 = vld [vmem:[%s9289_s1 + $0x1c8] sm:$0xff]   ;;  %v8059_v63 = vld [vmem:[%s8201_s18 + $0x3c] sm:$0xff]  }
  0x81   : > { %v3588_v50 = vsel %vm8324_vm5, %v6597_v36, %v3587_v41  ;;  %v929_v53 = vsel %vm8224_vm2, %v924_v44, %v928_v29  ;;  %v976_v16 = vrot.slane %v974_v9, 5  ;;  %v958_v19 = vrot.slane %v957_v11, 4  ;;  %v8061_v3 = vld [vmem:[%s8201_s18 + $0x48] sm:$0xff]   ;;  %v734_v8 = vld [vmem:[%s8201_s18 + $0x94] sm:$0xf] }
  0x82   : > { %v6301_v1 = vcombine.low %v929_v53, %v939_v59  ;;  %v6629_v2 = vcombine.low %v3588_v50, %v3591_v60  ;;  %v953_v17 = vsel %vm8224_vm2, %v948_v10, %v952_v61  ;;  %v980_v20 = vrot.slane %v978_v12, 4  ;;  %v735_v9 = vld [vmem:[%s8201_s18 + $0x98] sm:$0x1] }
  0x83   : > { %7391 = vmatpush3.bf16.msra.mxu1 %v8066_v7  ;;  %v965_v7 = vshrl.u32 %v724_v58, 16  ;;  %v986_v21 = vrot.slane %v984_v13, 5  ;;  %v963_v28 = vsel %vm8224_vm2, %v958_v19, %v962_v6  ;;  %v989_v30 = vshrl.u32 %v727_v23, 16 }
  0x84   : > { %7424 = vmatprep.subr.bf16.mxu1 %v8570_v27  ;;  %7357 = vmatmul.mubr.bf16.gmra.mrb[12].mxu1 %v6301_v1  ;;  %v981_v29 = vor.u32 %v980_v20, %v976_v16  ;;  %v992_v31 = vshll.u32 %v727_v23, 16  ;;  %v6302_v32 = vcombine.low %v953_v17, %v963_v28  ;;  %v998_v35 = vshll.u32 %v728_v24, 16  ;;  %v736_v20 = vld [vmem:[%s8201_s18 + $0x9c] sm:$0xf] }
  0x85   : > { %7565 = vmatmul.mubr.bf16.gmra.mrb[28].mxu0 %v6629_v2  ;;  %v967_v14 = vrot.slane %v965_v7, 4  ;;  %v1002_v36 = vshrl.u32 %v728_v24, 16  ;;  %v991_v40 = vrot.slane %v989_v30, 4  ;;  %v1008_v42 = vshll.u32 %v729_v25, 16  ;;  %v733_v2 = vld [vmem:[%s8201_s18 + $0x90] sm:$0xf] }
  0x86   : > { %7584 = vmatprep.mubr.bf16.mxu0 %v8053_v57  ;;  %v982_v39 = vrot.slane %v981_v29, 4  ;;  %v994_v41 = vrot.slane %v992_v31, 5  ;;  %7360 = vmatprep.mubr.bf16.mxu1 %v6302_v32  ;;  %v1000_v45 = vrot.slane %v998_v35, 5  ;;  %v1013_v49 = vshrl.u32 %v730_v37, 16  ;;  %v737_v24 = vld [vmem:[%s8201_s18 + $0xa0] sm:$0xf] }
  0x87   : > { %v971_v47 = vor.u32 %v970_v15, %v967_v14  ;;  %v1004_v46 = vrot.slane %v1002_v36, 4  ;;  %v1010_v52 = vrot.slane %v1008_v42, 5  ;;  %v1016_v53 = vshll.u32 %v730_v37, 16  ;;  %v8068_v14 = vld [vmem:[%s9289_s1 + $0x1d8] sm:$0xff]   ;;  %v738_v29 = vld [vmem:[%s8201_s18 + $0xa4] sm:$0x1] }
  0x88   : > { %v987_v50 = vsel %vm8224_vm2, %v982_v39, %v986_v21  ;;  %v995_v51 = vor.u32 %v994_v41, %v991_v40  ;;  %v1015_v57 = vrot.slane %v1013_v49, 4  ;;  %v1022_v58 = vshll.u32 %v731_v43, 16  ;;  %v8072_v36 = vld [vmem:[%s9289_s1 + $0x1e0] sm:$0xff]  }
  0x89   : > { %v972_v34 = vrot.slane %v971_v47, 4  ;;  %v1005_v56 = vor.u32 %v1004_v46, %v1000_v45  ;;  %v1018_v60 = vrot.slane %v1016_v53, 5  ;;  %v1026_v61 = vshrl.u32 %v731_v43, 16  ;;  %v739_v53 = vld [vmem:[%s8201_s18 + $0xa8] sm:$0xf] }
  0x8a   : > { %v996_v59 = vrot.slane %v995_v51, 4  ;;  %v1032_v62 = vshll.u32 %v732_v48, 16  ;;  %v1024_v1 = vrot.slane %v1022_v58, 5  ;;  %v1037_v11 = vshrl.u32 %v733_v2, 16  ;;  %v741_v58 = vld [vmem:[%s8201_s18 + $0xb0] sm:$0x1] }
  0x8b   : > { %v977_v44 = vsel %vm8224_vm2, %v972_v34, %v976_v16  ;;  %v1006_v0 = vrot.slane %v1005_v56, 4  ;;  %v1019_v5 = vor.u32 %v1018_v60, %v1015_v57  ;;  %v1028_v6 = vrot.slane %v1026_v61, 4 }
  0x8c   : > { %v6303_v55 = vcombine.low %v977_v44, %v987_v50  ;;  %v1034_v7 = vrot.slane %v1032_v62, 5  ;;  %v1040_v12 = vshll.u32 %v733_v2, 16  ;;  %v1046_v13 = vshll.u32 %v734_v8, 16  ;;  %v8065_v50 = vld [vmem:[%s8201_s18 + $0x60] sm:$0xff]  }
  0x8d   : > { %7585 = vmatmul.mubr.bf16.vlgmr.msra.gmra.mrb[0].mxu0 %v8055_v22  ;;  %v1011_v10 = vsel %vm8224_vm2, %v1006_v0, %v1010_v52  ;;  %v1020_v16 = vrot.slane %v1019_v5, 4  ;;  %v1029_v17 = vor.u32 %v1028_v6, %v1024_v1  ;;  %v1050_v19 = vshrl.u32 %v734_v8, 16  ;;  %v8076_v0 = vld [vmem:[%s9289_s1 + $0x1e8] sm:$0xff]   ;;  %v742_v5 = vld [vmem:[%s8201_s18 + $0xb4] sm:$0xf] }
  0x8e   : > { %7617 = vmatpush3.bf16.msra.mxu0 %v8489_v18  ;;  %7588 = vmatprep.mubr.bf16.mxu0 %v8057_v26  ;;  %v1001_v18 = vsel %vm8224_vm2, %v996_v59, %v1000_v45  ;;  %v1039_v21 = vrot.slane %v1037_v11, 4  ;;  %v1042_v22 = vrot.slane %v1040_v12, 5  ;;  %v1048_v47 = vrot.slane %v1046_v13, 5  ;;  %v8063_v45 = vld [vmem:[%s8201_s18 + $0x54] sm:$0xff]  }
  0x8f   : > { %7618 = vmatprep.subr.bf16.mxu0 %v8060_v38  ;;  %7361 = vmatmul.mubr.bf16.gmra.mrb[16].mxu1 %v6303_v55  ;;  %v6304_v15 = vcombine.low %v1001_v18, %v1011_v10  ;;  %v1056_v23 = vshll.u32 %v735_v9, 16  ;;  %v1025_v25 = vsel %vm8224_vm2, %v1020_v16, %v1024_v1  ;;  %v1030_v26 = vrot.slane %v1029_v17, 4  ;;  %v743_v9 = vld [vmem:[%s8201_s18 + $0xb8] sm:$0xf]  ;;  %v744_v10 = vld [vmem:[%s8201_s18 + $0xbc] sm:$0x1] }
  0x90   : > { %v1052_v28 = vrot.slane %v1050_v19, 4  ;;  %v1061_v30 = vshrl.u32 %v736_v20, 16  ;;  %v1043_v31 = vor.u32 %v1042_v22, %v1039_v21  ;;  %v1064_v34 = vshll.u32 %v736_v20, 16 }
  0x91   : > { %7364 = vmatprep.mubr.bf16.mxu1 %v6304_v15  ;;  %v1058_v32 = vrot.slane %v1056_v23, 5  ;;  %v1070_v35 = vshll.u32 %v737_v24, 16  ;;  %v1035_v37 = vsel %vm8224_vm2, %v1030_v26, %v1034_v7  ;;  %v1074_v40 = vshrl.u32 %v737_v24, 16  ;;  %v8080_v15 = vld [vmem:[%s9289_s1 + $0x1f0] sm:$0xff]  }
  0x92   : > { %7619 = vmatpush3.bf16.msra.mxu0 %v8060_v38  ;;  %v1053_v38 = vor.u32 %v1052_v28, %v1048_v47  ;;  %v1063_v39 = vrot.slane %v1061_v30, 4  ;;  %v6305_v41 = vcombine.low %v1025_v25, %v1035_v37  ;;  %v1044_v42 = vrot.slane %v1043_v31, 4  ;;  %v8067_v24 = vld [vmem:[%s8201_s18 + $0x6c] sm:$0xff]   ;;  %v1518_v37 = vld [vmem:[%s8201_s18] sm:$0xe] }
  0x93   : > { %7620 = vmatprep.subr.bf16.mxu0 %v8064_v54  ;;  %v1066_v43 = vrot.slane %v1064_v34, 5  ;;  %v1072_v44 = vrot.slane %v1070_v35, 5  ;;  %v1076_v48 = vrot.slane %v1074_v40, 4  ;;  %v1080_v49 = vshll.u32 %v738_v29, 16  ;;  %v8069_v29 = vld [vmem:[%s8201_s18 + $0x78] sm:$0xff]  }
  0x94   : > { %v1054_v46 = vrot.slane %v1053_v38, 4  ;;  %v1049_v51 = vsel %vm8224_vm2, %v1044_v42, %v1048_v47  ;;  %v1085_v59 = vshrl.u32 %v739_v53, 16  ;;  %v1088_v62 = vshll.u32 %v739_v53, 16  ;;  %v8084_v34 = vld [vmem:[%s9289_s1 + $0x1f8] sm:$0xff]   ;;  %v1519_v38 = vld [vmem:[%s8201_s18 + $0x4] sm:$0xf] }
  0x95   : > { %7589 = vmatmul.mubr.bf16.gmra.mrb[4].mxu0 %v8059_v63  ;;  %v1067_v52 = vor.u32 %v1066_v43, %v1063_v39  ;;  %v1077_v56 = vor.u32 %v1076_v48, %v1072_v44  ;;  %v1082_v57 = vrot.slane %v1080_v49, 5  ;;  %v1104_v18 = vshll.u32 %v741_v58, 16  ;;  %v1520_v39 = vld [vmem:[%s8201_s18 + $0x8] sm:$0x1]  ;;  %v1521_v48 = vld [vmem:[%s8201_s18 + $0xc] sm:$0xe] }
  0x96   : > { %7592 = vmatprep.mubr.bf16.mxu0 %v8061_v3  ;;  %7621 = vmatpush3.bf16.msra.mxu0 %v8064_v54  ;;  %v740_v54 = vld [vmem:[%s8201_s18 + $0xac] sm:$0xf]  ;;  %v1059_v55 = vsel %vm8224_vm2, %v1054_v46, %v1058_v32  ;;  %v1087_v2 = vrot.slane %v1085_v59, 4  ;;  %v1090_v7 = vrot.slane %v1088_v62, 5  ;;  %v1112_v19 = vshll.u32 %v742_v5, 16 }
  0x97   : > { %7622 = vmatprep.subr.bf16.mxu0 %v8068_v14  ;;  %7365 = vmatmul.mubr.bf16.gmra.mrb[20].mxu1 %v6305_v41  ;;  %v6306_v60 = vcombine.low %v1049_v51, %v1059_v55  ;;  %v1068_v61 = vrot.slane %v1067_v52, 4  ;;  %v1094_v63 = vshll.u32 %v740_v54, 16  ;;  %v1078_v1 = vrot.slane %v1077_v56, 4  ;;  %v1522_v49 = vld [vmem:[%s8201_s18 + $0x10] sm:$0xf]  ;;  %v8071_v55 = vld [vmem:[%s8201_s18 + $0x84] sm:$0xff]  }
  0x98   : > { %v1098_v3 = vshrl.u32 %v740_v54, 16  ;;  %v1106_v13 = vrot.slane %v1104_v18, 5  ;;  %v1091_v17 = vor.u32 %v1090_v7, %v1087_v2  ;;  %v1118_v20 = vshll.u32 %v743_v9, 16  ;;  %v1523_v53 = vld [vmem:[%s8201_s18 + $0x14] sm:$0x1]  ;;  %v8680_v56 = vld [vmem:[%s9289_s1 + $0x200] sm:$0xff]  }
  0x99   : > { %7368 = vmatprep.mubr.bf16.mxu1 %v6306_v60  ;;  %v1073_v6 = vsel %vm8224_vm2, %v1068_v61, %v1072_v44  ;;  %v1096_v8 = vrot.slane %v1094_v63, 5  ;;  %v1083_v11 = vsel %vm8224_vm2, %v1078_v1, %v1082_v57  ;;  %v1122_v47 = vshrl.u32 %v743_v9, 16  ;;  %v1524_v1 = vld [vmem:[%s8201_s18 + $0x18] sm:$0xe]  ;;  %v8073_v2 = vld [vmem:[%s8201_s18 + $0x90] sm:$0xff]  }
  0x9a   : > { %7623 = vmatpush3.bf16.msra.mxu0 %v8068_v14  ;;  %v1100_v12 = vrot.slane %v1098_v3, 4  ;;  %v1109_v14 = vshrl.u32 %v742_v5, 16  ;;  %v6307_v16 = vcombine.low %v1073_v6, %v1083_v11  ;;  %v1128_v23 = vshll.u32 %v744_v10, 16  ;;  %v1525_v3 = vld [vmem:[%s8201_s18 + $0x1c] sm:$0xf] }
  0x9b   : > { %7624 = vmatprep.subr.bf16.mxu0 %v8072_v36  ;;  %v1092_v25 = vrot.slane %v1091_v17, 4  ;;  %v1114_v26 = vrot.slane %v1112_v19, 5  ;;  %v1120_v28 = vrot.slane %v1118_v20, 5  ;;  %v1124_v31 = vrot.slane %v1122_v47, 4  ;;  %v1526_v18 = vld [vmem:[%s8201_s18 + $0x20] sm:$0x1] }
  0x9c   : > { %v1101_v21 = vor.u32 %v1100_v12, %v1096_v8  ;;  %v1111_v22 = vrot.slane %v1109_v14, 4  ;;  %v1130_v32 = vrot.slane %v1128_v23, 5  ;;  %v6318_v42 = vrot.slane %v1518_v37, 9  ;;  %v1527_v10 = vld [vmem:[%s8201_s18 + $0x24] sm:$0xe]  ;;  %v8075_v47 = vld [vmem:[%s8201_s18 + $0x9c] sm:$0xff]  }
  0x9d   : > { %7593 = vmatmul.mubr.bf16.gmra.mrb[8].mxu0 %v8063_v45  ;;  %v1097_v35 = vsel %vm8224_vm2, %v1092_v25, %v1096_v8  ;;  %v1125_v41 = vor.u32 %v1124_v31, %v1120_v28  ;;  %v1619_v43 = vrot.slane %v1519_v38, 5  ;;  %v1622_v46 = vrot.slane %v1520_v39, 5  ;;  %v1528_v11 = vld [vmem:[%s8201_s18 + $0x28] sm:$0xf]  ;;  %v1529_v12 = vld [vmem:[%s8201_s18 + $0x2c] sm:$0x1] }
  0x9e   : > { %7596 = vmatprep.mubr.bf16.mxu0 %v8065_v50  ;;  %7625 = vmatpush3.bf16.msra.mxu0 %v8072_v36  ;;  %v1102_v30 = vrot.slane %v1101_v21, 4  ;;  %v1115_v36 = vor.u32 %v1114_v26, %v1111_v22  ;;  %v6319_v54 = vrot.slane %v1521_v48, 9  ;;  %v1626_v58 = vrot.slane %v1522_v49, 5  ;;  %v8074_v22 = vld [vmem:[%s9289_s1 + $0xc8] sm:$0xff]   ;;  %v1531_v25 = vld [vmem:[%s8201_s18 + $0x34] sm:$0xf] }
  0x9f   : > { %7626 = vmatprep.subr.bf16.mxu0 %v8076_v0  ;;  %7369 = vmatmul.mubr.bf16.gmra.mrb[24].mxu1 %v6307_v16  ;;  %v1126_v50 = vrot.slane %v1125_v41, 4  ;;  %v1620_v51 = vsel %vm8324_vm5, %v6318_v42, %v1619_v43  ;;  %v1621_v52 = vrot.slane %v1619_v43, 4  ;;  %v1629_v59 = vrot.slane %v1523_v53, 5  ;;  %v1532_v26 = vld [vmem:[%s8201_s18 + $0x38] sm:$0x1]  ;;  %v8077_v31 = vld [vmem:[%s8201_s18 + $0xa8] sm:$0xff]  }
  0xa0   : > { %v1107_v40 = vsel %vm8224_vm2, %v1102_v30, %v1106_v13  ;;  %v1116_v45 = vrot.slane %v1115_v36, 4  ;;  %v6320_v5 = vrot.slane %v1524_v1, 9  ;;  %v1633_v6 = vrot.slane %v1525_v3, 5  ;;  %v1535_v36 = vld [vmem:[%s8201_s18 + $0x44] sm:$0x1]  ;;  %v8079_v48 = vld [vmem:[%s8201_s18 + $0xb4] sm:$0xff]  }
  0xa1   : > { %v6308_v44 = vcombine.low %v1097_v35, %v1107_v40  ;;  %v1131_v60 = vsel %vm8224_vm2, %v1126_v50, %v1130_v32  ;;  %v1623_v61 = vsel %vm8324_vm5, %v1621_v52, %v1622_v46  ;;  %v1636_v7 = vrot.slane %v1526_v18, 5  ;;  %v1533_v32 = vld [vmem:[%s8201_s18 + $0x3c] sm:$0xe]  ;;  %v1534_v35 = vld [vmem:[%s8201_s18 + $0x40] sm:$0xf]  ;;  %v8078_v40 = vld [vmem:[%s9289_s1 + $0xd0] sm:$0xff]  }
  0xa2   : > { %7627 = vmatpush3.bf16.msra.mxu0 %v8076_v0  ;;  %v1121_v57 = vsel %vm8224_vm2, %v1116_v45, %v1120_v28  ;;  %v6350_v63 = vcombine.low %v1620_v51, %v1623_v61  ;;  %v1628_v0 = vrot.slane %v1626_v58, 4  ;;  %v1627_v8 = vsel %vm8324_vm5, %v6319_v54, %v1626_v58  ;;  %v1537_v49 = vld [vmem:[%s8201_s18 + $0x4c] sm:$0xf]  ;;  %v1538_v50 = vld [vmem:[%s8201_s18 + $0x50] sm:$0x1]  ;;  %v8082_v52 = vld [vmem:[%s9289_s1 + $0xd8] sm:$0xff]  }
  0xa3   : > { %7628 = vmatprep.subr.bf16.mxu0 %v8080_v15  ;;  %7372 = vmatprep.mubr.bf16.mxu1 %v6308_v44  ;;  %v6309_v62 = vcombine.low %v1121_v57, %v1131_v60  ;;  %v1634_v13 = vsel %vm8324_vm5, %v6320_v5, %v1633_v6  ;;  %v1635_v14 = vrot.slane %v1633_v6, 4  ;;  %v6321_v16 = vrot.slane %v1527_v10, 9  ;;  %v1536_v44 = vld [vmem:[%s8201_s18 + $0x48] sm:$0xe]  ;;  %v1539_v57 = vld [vmem:[%s8201_s18 + $0x54] sm:$0xe] }
  0xa4   : > { %v1630_v9 = vsel %vm8324_vm5, %v1628_v0, %v1629_v59  ;;  %v1643_v21 = vrot.slane %v1529_v12, 5  ;;  %v1650_v30 = vrot.slane %v1532_v26, 5  ;;  %v1654_v39 = vrot.slane %v1534_v35, 5  ;;  %v1540_v58 = vld [vmem:[%s8201_s18 + $0x58] sm:$0xf]  ;;  %v8081_v61 = vld [vmem:[%s8201_s18 + $0xc0] sm:$0xff]  }
  0xa5   : > { %7597 = vmatmul.mubr.bf16.gmra.mrb[12].mxu0 %v8067_v24  ;;  %v6351_v17 = vcombine.low %v1627_v8, %v1630_v9  ;;  %v1637_v19 = vsel %vm8324_vm5, %v1635_v14, %v1636_v7  ;;  %v1530_v24 = vld [vmem:[%s8201_s18 + $0x30] sm:$0xe]  ;;  %v6323_v42 = vrot.slane %v1533_v32, 9  ;;  %v1657_v43 = vrot.slane %v1535_v36, 5  ;;  %v1541_v59 = vld [vmem:[%s8201_s18 + $0x5c] sm:$0x1] }
  0xa6   : > { %7600 = vmatprep.mubr.bf16.mxu0 %v8069_v29  ;;  %7629 = vmatpush3.bf16.msra.mxu0 %v8080_v15  ;;  %v1640_v15 = vrot.slane %v1528_v11, 5  ;;  %v6352_v23 = vcombine.low %v1634_v13, %v1637_v19  ;;  %v6322_v28 = vrot.slane %v1530_v24, 9  ;;  %v1647_v29 = vrot.slane %v1531_v25, 5  ;;  %v8085_v6 = vld [vmem:[%s9289_s1 + $0xe0] sm:$0xff]   ;;  %v1544_v11 = vld [vmem:[%s8201_s18 + $0x68] sm:$0x1] }
  0xa7   : > { %7630 = vmatprep.subr.bf16.mxu0 %v8084_v34  ;;  %7373 = vmatmul.mubr.bf16.gmra.mrb[28].mxu1 %v6309_v62  ;;  %v1656_v46 = vrot.slane %v1654_v39, 4  ;;  %v6324_v51 = vrot.slane %v1536_v44, 9  ;;  %v1661_v54 = vrot.slane %v1537_v49, 5  ;;  %v6325_v62 = vrot.slane %v1539_v57, 9  ;;  %v1542_v7 = vld [vmem:[%s8201_s18 + $0x60] sm:$0xe] }
  0xa8   : > { %7392 = vmatprep.mubr.bf16.mxu1 %v6350_v63  ;;  %v1642_v20 = vrot.slane %v1640_v15, 4  ;;  %v1641_v37 = vsel %vm8324_vm5, %v6321_v16, %v1640_v15  ;;  %v1668_v63 = vrot.slane %v1540_v58, 5  ;;  %v1655_v0 = vsel %vm8324_vm5, %v6323_v42, %v1654_v39  ;;  %v1543_v8 = vld [vmem:[%s8201_s18 + $0x64] sm:$0xf]  ;;  %v6710_v13 = vld [vmem:[%s8201_s18 + $0x18] sm:$0xf] }
  0xa9   : > { %v1663_v60 = vrot.slane %v1661_v54, 4  ;;  %v1658_v1 = vsel %vm8324_vm5, %v1656_v46, %v1657_v43  ;;  %v1662_v3 = vsel %vm8324_vm5, %v6324_v51, %v1661_v54  ;;  %v1675_v12 = vrot.slane %v1543_v8, 5  ;;  %v8083_v16 = vld [vmem:[%s8201_s18 + $0xcc] sm:$0xff]   ;;  %v6711_v19 = vld [vmem:[%s8201_s18 + $0x1c] sm:$0xf] }
  0xaa   : > { %7631 = vmatpush3.bf16.msra.mxu0 %v8084_v34  ;;  %v1649_v34 = vrot.slane %v1647_v29, 4  ;;  %v1644_v38 = vsel %vm8324_vm5, %v1642_v20, %v1643_v21  ;;  %v1670_v5 = vrot.slane %v1668_v63, 4  ;;  %v6355_v9 = vcombine.low %v1655_v0, %v1658_v1  ;;  %v6712_v20 = vld [vmem:[%s8201_s18 + $0x20] sm:$0x1]  ;;  %v1545_v26 = vld [vmem:[%s8201_s18 + $0x6c] sm:$0xe] }
  0xab   : > { %7664 = vmatprep.subr.bf16.mxu0 %v8680_v56  ;;  %v6353_v45 = vcombine.low %v1641_v37, %v1644_v38  ;;  %v8753_v10 = vsel %vm8324_vm5, %v6325_v62, %v1668_v63  ;;  %v4478_v21 = vshrl.u32 %v6710_v13, 16  ;;  %v4481_v24 = vshll.u32 %v6710_v13, 16  ;;  %v1547_v36 = vld [vmem:[%s8201_s18 + $0x74] sm:$0x1]  ;;  %v6713_v46 = vld [vmem:[%s8201_s18 + $0x24] sm:$0xf] }
  0xac   : > { %v1651_v41 = vsel %vm8324_vm5, %v1649_v34, %v1650_v30  ;;  %v4487_v25 = vshll.u32 %v6711_v19, 16  ;;  %v4497_v30 = vshll.u32 %v6712_v20, 16  ;;  %v6327_v32 = vrot.slane %v1545_v26, 9  ;;  %v6715_v51 = vld [vmem:[%s8201_s18 + $0x2c] sm:$0x1] }
  0xad   : > { %7601 = vmatmul.mubr.bf16.gmra.mrb[16].mxu0 %v8071_v55  ;;  %v1664_v55 = vrot.slane %v1538_v50, 5  ;;  %v4483_v34 = vrot.slane %v4481_v24, 5  ;;  %v6714_v50 = vld [vmem:[%s8201_s18 + $0x28] sm:$0xf]  ;;  %v1550_v8 = vld [vmem:[%s8201_s18 + $0x80] sm:$0x1] }
  0xae   : > { %7604 = vmatprep.mubr.bf16.mxu0 %v8073_v2  ;;  %v1671_v2 = vrot.slane %v1541_v59, 5  ;;  %v4489_v35 = vrot.slane %v4487_v25, 5  ;;  %v4499_v44 = vrot.slane %v4497_v30, 5  ;;  %v4511_v57 = vshll.u32 %v6714_v50, 16  ;;  %v6718_v20 = vld [vmem:[%s8201_s18 + $0x38] sm:$0x1] }
  0xaf   : > { %7393 = vmatmul.mubr.bf16.vlgmr.msra.gmra.mrb[0].mxu1 %v6351_v17  ;;  %v1665_v18 = vsel %vm8324_vm5, %v1663_v60, %v1664_v55  ;;  %v6326_v17 = vrot.slane %v1542_v7, 9  ;;  %v4515_v58 = vshrl.u32 %v6714_v50, 16  ;;  %v1549_v7 = vld [vmem:[%s8201_s18 + $0x7c] sm:$0xf]  ;;  %v1551_v26 = vld [vmem:[%s8201_s18 + $0x84] sm:$0xe] }
  0xb0   : > { %7425 = vmatpush3.bf16.msra.mxu1 %v8570_v27  ;;  %7396 = vmatprep.mubr.bf16.mxu1 %v6352_v23  ;;  %v1648_v27 = vsel %vm8324_vm5, %v6322_v28, %v1647_v29  ;;  %v6356_v14 = vcombine.low %v1662_v3, %v1665_v18  ;;  %v8759_v15 = vsel %vm8324_vm5, %v1670_v5, %v1671_v2  ;;  %v1678_v23 = vrot.slane %v1544_v11, 5  ;;  %v1548_v3 = vld [vmem:[%s8201_s18 + $0x78] sm:$0xe] }
  0xb1   : > { %7426 = vmatprep.subr.bf16.mxu1 %v8074_v22  ;;  %v6354_v53 = vcombine.low %v1648_v27, %v1651_v41  ;;  %v4480_v28 = vrot.slane %v4478_v21, 4  ;;  %v4491_v29 = vshrl.u32 %v6711_v19, 16  ;;  %v6357_v38 = vcombine.low %v8753_v10, %v8759_v15  ;;  %v8089_v41 = vld [vmem:[%s9289_s1 + $0xf0] sm:$0xff]   ;;  %v8091_v10 = vld [vmem:[%s9289_s1 + $0xf8] sm:$0xff]  }
  0xb2   : > { %v1676_v39 = vsel %vm8324_vm5, %v6326_v17, %v1675_v12  ;;  %v1685_v27 = vrot.slane %v1547_v36, 5  ;;  %v4513_v0 = vrot.slane %v4511_v57, 5  ;;  %v4517_v1 = vrot.slane %v4515_v58, 4  ;;  %v6716_v15 = vld [vmem:[%s8201_s18 + $0x30] sm:$0xf] }
  0xb3   : > { %v4484_v43 = vor.u32 %v4483_v34, %v4480_v28  ;;  %v4521_v2 = vshll.u32 %v6715_v51, 16  ;;  %v1692_v19 = vrot.slane %v1550_v8, 5  ;;  %v4526_v21 = vshrl.u32 %v6716_v15, 16 }
  0xb4   : > { %7427 = vmatpush3.bf16.msra.mxu1 %v8074_v22  ;;  %v8087_v22 = vld [vmem:[%s9289_s1 + $0xe8] sm:$0xff]  }
  0xb5   : > { %7605 = vmatmul.mubr.bf16.gmra.mrb[20].mxu0 %v8075_v47  ;;  %7428 = vmatprep.subr.bf16.mxu1 %v8078_v40  ;;  %v1677_v47 = vrot.slane %v1675_v12, 4  ;;  %v4485_v54 = vrot.slane %v4484_v43, 4  ;;  %v4518_v12 = vor.u32 %v4517_v1, %v4513_v0  ;;  %v4523_v13 = vrot.slane %v4521_v2, 5  ;;  %v6719_v43 = vld [vmem:[%s8201_s18 + $0x3c] sm:$0xf] }
  0xb6   : > { %7608 = vmatprep.mubr.bf16.mxu0 %v8077_v31  ;;  %v1546_v31 = vld [vmem:[%s8201_s18 + $0x70] sm:$0xf] }
  0xb7   : > { %7397 = vmatmul.mubr.bf16.gmra.mrb[4].mxu1 %v6353_v45  ;;  %v1682_v37 = vrot.slane %v1546_v31, 5  ;;  %v1679_v42 = vsel %vm8324_vm5, %v1677_v47, %v1678_v23  ;;  %v4490_v63 = vsel %vm8224_vm2, %v4485_v54, %v4489_v35  ;;  %v4519_v47 = vrot.slane %v4518_v12, 4  ;;  %v8092_v12 = vld [vmem:[%s9289_s1 + $0x218] sm:$0xff]  }
  0xb8   : > { %7400 = vmatprep.mubr.bf16.mxu1 %v6354_v53  ;;  %7429 = vmatpush3.bf16.msra.mxu1 %v8078_v40  ;;  %v4493_v40 = vrot.slane %v4491_v29, 4  ;;  %v4505_v53 = vshll.u32 %v6713_v46, 16  ;;  %v6358_v59 = vcombine.low %v1676_v39, %v1679_v42  ;;  %v4528_v29 = vrot.slane %v4526_v21, 4 }
  0xb9   : > { %7430 = vmatprep.subr.bf16.mxu1 %v8082_v52  ;;  %v1684_v45 = vrot.slane %v1682_v37, 4  ;;  %v8782_v49 = vsel %vm8324_vm5, %v6327_v32, %v1682_v37  ;;  %v1552_v32 = vld [vmem:[%s8201_s18 + $0x88] sm:$0xf]  ;;  %v4524_v34 = vsel %vm8224_vm2, %v4519_v47, %v4523_v13  ;;  %v4545_v37 = vshll.u32 %v6718_v20, 16 }
  0xba   : > { %v4507_v62 = vrot.slane %v4505_v53, 5  ;;  %v4550_v53 = vshrl.u32 %v6719_v43, 16  ;;  %v4553_v54 = vshll.u32 %v6719_v43, 16 }
  0xbb   : > { %v8788_v55 = vsel %vm8324_vm5, %v1684_v45, %v1685_v27  ;;  %v6329_v45 = vrot.slane %v1551_v26, 9 }
  0xbc   : > { %7431 = vmatpush3.bf16.msra.mxu1 %v8082_v52  ;;  %v4502_v52 = vshrl.u32 %v6713_v46, 16  ;;  %v6359_v5 = vcombine.low %v8782_v49, %v8788_v55  ;;  %v1696_v46 = vrot.slane %v1552_v32, 5  ;;  %v6720_v49 = vld [vmem:[%s8201_s18 + $0x40] sm:$0xf] }
  0xbd   : > { %7609 = vmatmul.mubr.bf16.gmra.mrb[24].mxu0 %v8079_v48  ;;  %7432 = vmatprep.subr.bf16.mxu1 %v8085_v6  ;;  %v4494_v48 = vor.u32 %v4493_v40, %v4489_v35  ;;  %v4559_v58 = vshll.u32 %v6720_v49, 16 }
  0xbe   : > { %7612 = vmatprep.mubr.bf16.mxu0 %v8081_v61  ;;  %v4504_v61 = vrot.slane %v4502_v52, 4  ;;  %v6721_v52 = vld [vmem:[%s8201_s18 + $0x44] sm:$0x1]  ;;  %v1697_v55 = vsel %vm8324_vm5, %v6329_v45, %v1696_v46  ;;  %v1698_v57 = vrot.slane %v1696_v46, 4 }
  0xbf   : > { %7401 = vmatmul.mubr.bf16.gmra.mrb[8].mxu1 %v6355_v9  ;;  %v4495_v60 = vrot.slane %v4494_v48, 4  ;;  %v6328_v9 = vrot.slane %v1548_v3, 9  ;;  %v4561_v2 = vrot.slane %v4559_v58, 5  ;;  %v8095_v45 = vld [vmem:[%s9289_s1 + $0x220] sm:$0xff]  }
  0xc0   : > { %7404 = vmatprep.mubr.bf16.mxu1 %v6356_v14  ;;  %7433 = vmatpush3.bf16.msra.mxu1 %v8085_v6  ;;  %v4508_v6 = vor.u32 %v4507_v62, %v4504_v61  ;;  %v1689_v14 = vrot.slane %v1549_v7, 5  ;;  %v4552_v62 = vrot.slane %v4550_v53, 4 }
  0xc1   : > { %7434 = vmatprep.subr.bf16.mxu1 %v8087_v22  ;;  %v4500_v18 = vsel %vm8224_vm2, %v4495_v60, %v4499_v44  ;;  %v4547_v44 = vrot.slane %v4545_v37, 5  ;;  %v8828_v60 = vld [vmem:[%s9289_s1 + $0x100] sm:$0xff]  }
  0xc2   : > { %v6774_v11 = vcombine.low %v4490_v63, %v4500_v18  ;;  %v4509_v17 = vrot.slane %v4508_v6, 4  ;;  %v1690_v23 = vsel %vm8324_vm5, %v6328_v9, %v1689_v14  ;;  %v1691_v24 = vrot.slane %v1689_v14, 4  ;;  %v1555_v9 = vld [vmem:[%s8201_s18 + $0x94] sm:$0xf] }
  0xc3   : > { %v4555_v63 = vrot.slane %v4553_v54, 5  ;;  %v4569_v18 = vshll.u32 %v6721_v52, 16  ;;  %v6727_v54 = vld [vmem:[%s8201_s18 + $0x5c] sm:$0x1] }
  0xc4   : > { %7435 = vmatpush3.bf16.msra.mxu1 %v8087_v22  ;;  %v4529_v22 = vshll.u32 %v6716_v15, 16  ;;  %v4514_v28 = vsel %vm8224_vm2, %v4509_v17, %v4513_v0  ;;  %v1693_v35 = vsel %vm8324_vm5, %v1691_v24, %v1692_v19  ;;  %v8090_v0 = vld [vmem:[%s9289_s1 + $0x210] sm:$0xff]   ;;  %v6722_v17 = vld [vmem:[%s8201_s18 + $0x48] sm:$0xf]  ;;  %v6723_v19 = vld [vmem:[%s8201_s18 + $0x4c] sm:$0xf] }
  0xc5   : > { %7613 = vmatmul.mubr.bf16.gmra.mrb[28].mxu0 %v8083_v16  ;;  %7436 = vmatprep.subr.bf16.mxu1 %v8089_v41  ;;  %v6717_v16 = vld [vmem:[%s8201_s18 + $0x34] sm:$0xf]  ;;  %v6775_v39 = vcombine.low %v4514_v28, %v4524_v34  ;;  %v6360_v40 = vcombine.low %v1690_v23, %v1693_v35  ;;  %v4556_v8 = vor.u32 %v4555_v63, %v4552_v62  ;;  %v4571_v15 = vrot.slane %v4569_v18, 5  ;;  %v1558_v35 = vld [vmem:[%s8201_s18 + $0xa0] sm:$0xf] }
  0xc6   : > { %7632 = vmatprep.mubr.bf16.mxu0 %v6774_v11  ;;  %v4535_v25 = vshll.u32 %v6717_v16, 16  ;;  %v4531_v30 = vrot.slane %v4529_v22, 5  ;;  %v4539_v31 = vshrl.u32 %v6717_v16, 16  ;;  %v1703_v16 = vrot.slane %v1555_v9, 5  ;;  %v6724_v22 = vld [vmem:[%s8201_s18 + $0x50] sm:$0x1] }
  0xc7   : > { %7405 = vmatmul.mubr.bf16.gmra.mrb[12].mxu1 %v6357_v38  ;;  %v1553_v38 = vld [vmem:[%s8201_s18 + $0x8c] sm:$0x1]  ;;  %v4557_v20 = vrot.slane %v4556_v8, 4  ;;  %v4574_v47 = vshrl.u32 %v6722_v17, 16  ;;  %v4577_v23 = vshll.u32 %v6722_v17, 16  ;;  %v4583_v28 = vshll.u32 %v6723_v19, 16 }
  0xc8   : > { %7408 = vmatprep.mubr.bf16.mxu1 %v6358_v59  ;;  %7437 = vmatpush3.bf16.msra.mxu1 %v8089_v41  ;;  %v4537_v36 = vrot.slane %v4535_v25, 5  ;;  %v4532_v27 = vor.u32 %v4531_v30, %v4528_v29  ;;  %v4541_v42 = vrot.slane %v4539_v31, 4  ;;  %v8088_v41 = vld [vmem:[%s9289_s1 + $0x208] sm:$0xff]   ;;  %v1699_v48 = vrot.slane %v1553_v38, 5  ;;  %v1557_v29 = vld [vmem:[%s8201_s18 + $0x9c] sm:$0xe] }
  0xc9   : > { %7438 = vmatprep.subr.bf16.mxu1 %v8091_v10  ;;  %v4563_v59 = vshrl.u32 %v6720_v49, 16  ;;  %v1705_v26 = vrot.slane %v1703_v16, 4  ;;  %v4562_v30 = vsel %vm8224_vm2, %v4557_v20, %v4561_v2  ;;  %v4576_v31 = vrot.slane %v4574_v47, 4  ;;  %v6728_v20 = vld [vmem:[%s8201_s18 + $0x60] sm:$0xf] }
  0xca   : > { %v4533_v50 = vrot.slane %v4532_v27, 4  ;;  %v4542_v51 = vor.u32 %v4541_v42, %v4537_v36  ;;  %v1700_v1 = vsel %vm8324_vm5, %v1698_v57, %v1699_v48  ;;  %v4579_v32 = vrot.slane %v4577_v23, 5  ;;  %v6730_v23 = vld [vmem:[%s8201_s18 + $0x68] sm:$0x1] }
  0xcb   : > { %v4565_v3 = vrot.slane %v4563_v59, 4  ;;  %v6361_v7 = vcombine.low %v1697_v55, %v1700_v1  ;;  %v4587_v34 = vshrl.u32 %v6723_v19, 16  ;;  %v4585_v38 = vrot.slane %v4583_v28, 5 }
  0xcc   : > { %7439 = vmatpush3.bf16.msra.mxu1 %v8091_v10  ;;  %v4538_v61 = vsel %vm8224_vm2, %v4533_v50, %v4537_v36  ;;  %v1556_v10 = vld [vmem:[%s8201_s18 + $0x98] sm:$0x1]  ;;  %v4580_v43 = vor.u32 %v4579_v32, %v4576_v31  ;;  %v6331_v48 = vrot.slane %v1557_v29, 9  ;;  %v1710_v49 = vrot.slane %v1558_v35, 5  ;;  %v1563_v31 = vld [vmem:[%s8201_s18 + $0xb4] sm:$0xe] }
  0xcd   : > { %7633 = vmatmul.mubr.bf16.vlgmr.msra.gmra.mrb[0].mxu0 %v6775_v39  ;;  %7712 = vmatprep.subr.bf16.mxu1 %v8828_v60  ;;  %v4566_v14 = vor.u32 %v4565_v3, %v4561_v2  ;;  %v1706_v21 = vrot.slane %v1556_v10, 5  ;;  %v4593_v39 = vshll.u32 %v6724_v22, 16  ;;  %v8098_v2 = vld [vmem:[%s9289_s1 + $0x228] sm:$0xff]  }
  0xce   : > { %7665 = vmatpush3.bf16.msra.mxu0 %v8680_v56  ;;  %v4543_v56 = vrot.slane %v4542_v51, 4  ;;  %v6726_v51 = vld [vmem:[%s8201_s18 + $0x58] sm:$0xf]  ;;  %v4581_v52 = vrot.slane %v4580_v43, 4  ;;  %v1711_v58 = vsel %vm8324_vm5, %v6331_v48, %v1710_v49  ;;  %v1712_v59 = vrot.slane %v1710_v49, 4 }
  0xcf   : > { %7409 = vmatmul.mubr.bf16.gmra.mrb[16].mxu1 %v6359_v5  ;;  %7666 = vmatprep.subr.bf16.mxu0 %v8088_v41  ;;  %v1554_v5 = vld [vmem:[%s8201_s18 + $0x90] sm:$0xe]  ;;  %v4567_v24 = vrot.slane %v4566_v14, 4  ;;  %v1707_v37 = vsel %vm8324_vm5, %v1705_v26, %v1706_v21  ;;  %v4595_v46 = vrot.slane %v4593_v39, 5  ;;  %v6729_v21 = vld [vmem:[%s8201_s18 + $0x64] sm:$0xf] }
  0xd0   : > { %7412 = vmatprep.mubr.bf16.mxu1 %v6360_v40  ;;  %v4548_v6 = vsel %vm8224_vm2, %v4543_v56, %v4547_v44  ;;  %v6330_v11 = vrot.slane %v1554_v5, 9  ;;  %v1559_v40 = vld [vmem:[%s8201_s18 + $0xa4] sm:$0x1]  ;;  %v6725_v44 = vld [vmem:[%s8201_s18 + $0x54] sm:$0xf]  ;;  %v4611_v56 = vshrl.u32 %v6726_v51, 16  ;;  %v4586_v62 = vsel %vm8224_vm2, %v4581_v52, %v4585_v38 }
  0xd1   : > { %v6776_v13 = vcombine.low %v4538_v61, %v4548_v6  ;;  %v4572_v36 = vsel %vm8224_vm2, %v4567_v24, %v4571_v15  ;;  %v1713_v50 = vrot.slane %v1559_v40, 5  ;;  %v4598_v55 = vshrl.u32 %v6725_v44, 16  ;;  %v8101_v14 = vld [vmem:[%s9289_s1 + $0x230] sm:$0xff]   ;;  %v8104_v48 = vld [vmem:[%s9289_s1 + $0x238] sm:$0xff]  }
  0xd2   : > { %7667 = vmatpush3.bf16.msra.mxu0 %v8088_v41  ;;  %v1704_v25 = vsel %vm8324_vm5, %v6330_v11, %v1703_v16  ;;  %v6777_v27 = vcombine.low %v4562_v30, %v4572_v36  ;;  %v4589_v41 = vrot.slane %v4587_v34, 4  ;;  %v4601_v57 = vshll.u32 %v6725_v44, 16  ;;  %v1561_v11 = vld [vmem:[%s8201_s18 + $0xac] sm:$0xf] }
  0xd3   : > { %7668 = vmatprep.subr.bf16.mxu0 %v8090_v0  ;;  %7636 = vmatprep.mubr.bf16.mxu0 %v6776_v13  ;;  %v6362_v42 = vcombine.low %v1704_v25, %v1707_v37  ;;  %v4607_v61 = vshll.u32 %v6726_v51, 16  ;;  %v1714_v3 = vsel %vm8324_vm5, %v1712_v59, %v1713_v50  ;;  %v4613_v5 = vrot.slane %v4611_v56, 4  ;;  %v1564_v37 = vld [vmem:[%s8201_s18 + $0xb8] sm:$0xf] }
  0xd4   : > { %v4590_v53 = vor.u32 %v4589_v41, %v4585_v38  ;;  %v4603_v1 = vrot.slane %v4601_v57, 5  ;;  %v4617_v6 = vshll.u32 %v6727_v54, 16  ;;  %v6363_v9 = vcombine.low %v1711_v58, %v1714_v3  ;;  %v6733_v57 = vld [vmem:[%s8201_s18 + $0x74] sm:$0x1] }
  0xd5   : > { %7637 = vmatmul.mubr.bf16.gmra.mrb[4].mxu0 %v6777_v27  ;;  %v4609_v18 = vrot.slane %v4607_v61, 5  ;;  %v1717_v19 = vrot.slane %v1561_v11, 5  ;;  %v4622_v24 = vshrl.u32 %v6728_v20, 16  ;;  %v4625_v25 = vshll.u32 %v6728_v20, 16 }
  0xd6   : > { %7669 = vmatpush3.bf16.msra.mxu0 %v8090_v0  ;;  %v4591_v63 = vrot.slane %v4590_v53, 4  ;;  %v4600_v0 = vrot.slane %v4598_v55, 4  ;;  %v4619_v17 = vrot.slane %v4617_v6, 5  ;;  %v4631_v30 = vshll.u32 %v6729_v21, 16  ;;  %v6732_v53 = vld [vmem:[%s8201_s18 + $0x70] sm:$0xf] }
  0xd7   : > { %7413 = vmatmul.mubr.bf16.gmra.mrb[20].mxu1 %v6361_v7  ;;  %7670 = vmatprep.subr.bf16.mxu0 %v8092_v12  ;;  %v1560_v7 = vld [vmem:[%s8201_s18 + $0xa8] sm:$0xe]  ;;  %v4614_v16 = vor.u32 %v4613_v5, %v4609_v18  ;;  %v1719_v29 = vrot.slane %v1717_v19, 4  ;;  %v4624_v34 = vrot.slane %v4622_v24, 4  ;;  %v4627_v35 = vrot.slane %v4625_v25, 5 }
  0xd8   : > { %7416 = vmatprep.mubr.bf16.mxu1 %v6362_v42  ;;  %v4596_v8 = vsel %vm8224_vm2, %v4591_v63, %v4595_v46  ;;  %v4604_v10 = vor.u32 %v4603_v1, %v4600_v0  ;;  %v6332_v13 = vrot.slane %v1560_v7, 9  ;;  %v4635_v36 = vshrl.u32 %v6729_v21, 16  ;;  %v1565_v42 = vld [vmem:[%s8201_s18 + $0xbc] sm:$0x1]  ;;  %v6731_v46 = vld [vmem:[%s8201_s18 + $0x6c] sm:$0xf] }
  0xd9   : > { %v6778_v15 = vcombine.low %v4586_v62, %v4596_v8  ;;  %v4615_v26 = vrot.slane %v4614_v16, 4  ;;  %v4633_v40 = vrot.slane %v4631_v30, 5  ;;  %v4641_v27 = vshll.u32 %v6730_v23, 16  ;;  %v8093_v8 = vld [vmem:[%s8201_s18 + $0xc] sm:$0xff]  }
  0xda   : > { %7671 = vmatpush3.bf16.msra.mxu0 %v8092_v12  ;;  %v1562_v12 = vld [vmem:[%s8201_s18 + $0xb0] sm:$0x1]  ;;  %v4605_v22 = vrot.slane %v4604_v10, 4  ;;  %v1718_v28 = vsel %vm8324_vm5, %v6332_v13, %v1717_v19  ;;  %v4628_v44 = vor.u32 %v4627_v35, %v4624_v34  ;;  %v6333_v50 = vrot.slane %v1563_v31, 9  ;;  %v6735_v13 = vld [vmem:[%s8201_s18 + $0x7c] sm:$0xf] }
  0xdb   : > { %7672 = vmatprep.subr.bf16.mxu0 %v8095_v45  ;;  %v1720_v47 = vrot.slane %v1562_v12, 5  ;;  %7640 = vmatprep.mubr.bf16.mxu0 %v6778_v15  ;;  %v4620_v38 = vsel %vm8224_vm2, %v4615_v26, %v4619_v17  ;;  %v4643_v49 = vrot.slane %v4641_v27, 5  ;;  %v1724_v51 = vrot.slane %v1564_v37, 5  ;;  %v6734_v12 = vld [vmem:[%s8201_s18 + $0x78] sm:$0xf] }
  0xdc   : > { %v4610_v32 = vsel %vm8224_vm2, %v4605_v22, %v4609_v18  ;;  %v1727_v52 = vrot.slane %v1565_v42, 5  ;;  %v4629_v54 = vrot.slane %v4628_v44, 4  ;;  %v4646_v58 = vshrl.u32 %v6731_v46, 16  ;;  %v6736_v17 = vld [vmem:[%s8201_s18 + $0x80] sm:$0x1] }
  0xdd   : > { %v1721_v39 = vsel %vm8324_vm5, %v1719_v29, %v1720_v47  ;;  %v6779_v43 = vcombine.low %v4610_v32, %v4620_v38  ;;  %v4649_v59 = vshll.u32 %v6731_v46, 16  ;;  %v1725_v61 = vsel %vm8324_vm5, %v6333_v50, %v1724_v51  ;;  %v6737_v26 = vld [vmem:[%s8201_s18 + $0x84] sm:$0xf]  ;;  %v6738_v32 = vld [vmem:[%s8201_s18 + $0x88] sm:$0xf] }
  0xde   : > { %7673 = vmatpush3.bf16.msra.mxu0 %v8095_v45  ;;  %v6364_v41 = vcombine.low %v1718_v28, %v1721_v39  ;;  %v4637_v45 = vrot.slane %v4635_v36, 4  ;;  %v1726_v56 = vrot.slane %v1724_v51, 4  ;;  %v4655_v62 = vshll.u32 %v6732_v53, 16  ;;  %v8094_v36 = vld [vmem:[%s8201_s18 + $0x18] sm:$0xff]   ;;  %v6739_v37 = vld [vmem:[%s8201_s18 + $0x8c] sm:$0x1] }
  0xdf   : > { %7417 = vmatmul.mubr.bf16.gmra.mrb[24].mxu1 %v6363_v9  ;;  %7674 = vmatprep.subr.bf16.mxu0 %v8098_v2  ;;  %v4659_v63 = vshrl.u32 %v6732_v53, 16  ;;  %v4634_v0 = vsel %vm8224_vm2, %v4629_v54, %v4633_v40  ;;  %v4651_v3 = vrot.slane %v4649_v59, 5  ;;  %v4665_v7 = vshll.u32 %v6733_v57, 16  ;;  %v6741_v57 = vld [vmem:[%s8201_s18 + $0x94] sm:$0xf] }
  0xe0   : > { %7641 = vmatmul.mubr.bf16.gmra.mrb[8].mxu0 %v6779_v43  ;;  %7420 = vmatprep.mubr.bf16.mxu1 %v6364_v41  ;;  %v4638_v55 = vor.u32 %v4637_v45, %v4633_v40  ;;  %v1728_v18 = vsel %vm8324_vm5, %v1726_v56, %v1727_v52  ;;  %v4657_v5 = vrot.slane %v4655_v62, 5  ;;  %v4670_v19 = vshrl.u32 %v6734_v12, 16  ;;  %v8096_v41 = vld [vmem:[%s8201_s18 + $0x24] sm:$0xff]  }
  0xe1   : > { %v4661_v6 = vrot.slane %v4659_v63, 4  ;;  %v6365_v10 = vcombine.low %v1725_v61, %v1728_v18  ;;  %v4667_v16 = vrot.slane %v4665_v7, 5  ;;  %v4673_v21 = vshll.u32 %v6734_v12, 16  ;;  %v6742_v61 = vld [vmem:[%s8201_s18 + $0x98] sm:$0x1] }
  0xe2   : > { %7675 = vmatpush3.bf16.msra.mxu0 %v8098_v2  ;;  %v4639_v1 = vrot.slane %v4638_v55, 4  ;;  %v4648_v2 = vrot.slane %v4646_v58, 4  ;;  %v4679_v22 = vshll.u32 %v6735_v13, 16  ;;  %v4683_v47 = vshrl.u32 %v6735_v13, 16  ;;  %v6740_v55 = vld [vmem:[%s8201_s18 + $0x90] sm:$0xf] }
  0xe3   : > { %7676 = vmatprep.subr.bf16.mxu0 %v8101_v14  ;;  %v4662_v15 = vor.u32 %v4661_v6, %v4657_v5  ;;  %v4672_v24 = vrot.slane %v4670_v19, 4  ;;  %v4689_v25 = vshll.u32 %v6736_v17, 16  ;;  %v4675_v29 = vrot.slane %v4673_v21, 5  ;;  %v6745_v12 = vld [vmem:[%s8201_s18 + $0xa4] sm:$0x1]  ;;  %v8097_v17 = vld [vmem:[%s8201_s18 + $0x30] sm:$0xff]  }
  0xe4   : > { %v4644_v9 = vsel %vm8224_vm2, %v4639_v1, %v4643_v49  ;;  %v4652_v11 = vor.u32 %v4651_v3, %v4648_v2  ;;  %v4681_v30 = vrot.slane %v4679_v22, 5  ;;  %v4685_v31 = vrot.slane %v4683_v47, 4  ;;  %v6743_v3 = vld [vmem:[%s8201_s18 + $0x9c] sm:$0xf] }
  0xe5   : > { %v4663_v23 = vrot.slane %v4662_v15, 4  ;;  %v4691_v35 = vrot.slane %v4689_v25, 5  ;;  %v4694_v38 = vshrl.u32 %v6737_v26, 16  ;;  %v4697_v39 = vshll.u32 %v6737_v26, 16 }
  0xe6   : > { %7677 = vmatpush3.bf16.msra.mxu0 %v8101_v14  ;;  %v6780_v14 = vcombine.low %v4634_v0, %v4644_v9  ;;  %v4653_v20 = vrot.slane %v4652_v11, 4  ;;  %v4676_v27 = vor.u32 %v4675_v29, %v4672_v24  ;;  %v4686_v42 = vor.u32 %v4685_v31, %v4681_v30  ;;  %v6744_v9 = vld [vmem:[%s8201_s18 + $0xa0] sm:$0xf]  ;;  %v8115_v29 = vld [vmem:[%s9289_s1 + $0x110] sm:$0xff]  }
  0xe7   : > { %7678 = vmatprep.subr.bf16.mxu0 %v8104_v48  ;;  %7421 = vmatmul.mubr.bf16.gmra.mrb[28].mxu1 %v6365_v10  ;;  %v4668_v34 = vsel %vm8224_vm2, %v4663_v23, %v4667_v16  ;;  %v4703_v43 = vshll.u32 %v6738_v32, 16  ;;  %v4696_v44 = vrot.slane %v4694_v38, 4  ;;  %v4699_v45 = vrot.slane %v4697_v39, 5  ;;  %v8099_v23 = vld [vmem:[%s8201_s18 + $0x3c] sm:$0xff]   ;;  %v6747_v38 = vld [vmem:[%s8201_s18 + $0xac] sm:$0xf] }
  0xe8   : > { %7644 = vmatprep.mubr.bf16.mxu0 %v6780_v14  ;;  %7440 = vmatprep.mubr.bf16.mxu1 %v8093_v8  ;;  %v4658_v28 = vsel %vm8224_vm2, %v4653_v20, %v4657_v5  ;;  %v4707_v46 = vshrl.u32 %v6738_v32, 16  ;;  %v4677_v49 = vrot.slane %v4676_v27, 4  ;;  %v4687_v50 = vrot.slane %v4686_v42, 4  ;;  %v8114_v8 = vld [vmem:[%s9289_s1 + $0x108] sm:$0xff]   ;;  %v6748_v39 = vld [vmem:[%s8201_s18 + $0xb0] sm:$0x1] }
  0xe9   : > { %v6781_v40 = vcombine.low %v4658_v28, %v4668_v34  ;;  %v4705_v51 = vrot.slane %v4703_v43, 5  ;;  %v4700_v52 = vor.u32 %v4699_v45, %v4696_v44  ;;  %v4718_v56 = vshrl.u32 %v6740_v55, 16  ;;  %v6746_v34 = vld [vmem:[%s8201_s18 + $0xa8] sm:$0xf] }
  0xea   : > { %7679 = vmatpush3.bf16.msra.mxu0 %v8104_v48  ;;  %v4713_v48 = vshll.u32 %v6739_v37, 16  ;;  %v4709_v53 = vrot.slane %v4707_v46, 4  ;;  %v4682_v58 = vsel %vm8224_vm2, %v4677_v49, %v4681_v30  ;;  %v4692_v59 = vsel %vm8224_vm2, %v4687_v50, %v4691_v35  ;;  %v8100_v49 = vld [vmem:[%s8201_s18 + $0x48] sm:$0xff]   ;;  %v8116_v50 = vld [vmem:[%s9289_s1 + $0x118] sm:$0xff]  }
  0xeb   : > { %7645 = vmatmul.mubr.bf16.gmra.mrb[12].mxu0 %v6781_v40  ;;  %v4721_v62 = vshll.u32 %v6740_v55, 16  ;;  %v6782_v63 = vcombine.low %v4682_v58, %v4692_v59  ;;  %v4701_v0 = vrot.slane %v4700_v52, 4  ;;  %v4727_v2 = vshll.u32 %v6741_v57, 16  ;;  %v6749_v55 = vld [vmem:[%s8201_s18 + $0xb4] sm:$0xf] }
  0xec   : > { %v4715_v54 = vrot.slane %v4713_v48, 5  ;;  %v4710_v1 = vor.u32 %v4709_v53, %v4705_v51  ;;  %v4720_v18 = vrot.slane %v4718_v56, 4  ;;  %v4731_v6 = vshrl.u32 %v6741_v57, 16  ;;  %v8102_v57 = vld [vmem:[%s8201_s18 + $0x54] sm:$0xff]  }
  0xed   : > { %v4723_v5 = vrot.slane %v4721_v62, 5  ;;  %v4737_v7 = vshll.u32 %v6742_v61, 16  ;;  %7648 = vmatprep.mubr.bf16.mxu0 %v6782_v63  ;;  %v4706_v10 = vsel %vm8224_vm2, %v4701_v0, %v4705_v51  ;;  %v4729_v11 = vrot.slane %v4727_v2, 5  ;;  %v6750_v56 = vld [vmem:[%s8201_s18 + $0xb8] sm:$0xf] }
  0xee   : > { %v4742_v13 = vshrl.u32 %v6743_v3, 16  ;;  %v4733_v15 = vrot.slane %v4731_v6, 4  ;;  %v4745_v19 = vshll.u32 %v6743_v3, 16  ;;  %v4751_v22 = vshll.u32 %v6744_v9, 16  ;;  %v6751_v62 = vld [vmem:[%s8201_s18 + $0xbc] sm:$0x1] }
  0xef   : > { %7441 = vmatmul.mubr.bf16.vlgmr.msra.gmra.mrb[0].mxu1 %v8094_v36  ;;  %v4724_v14 = vor.u32 %v4723_v5, %v4720_v18  ;;  %v4739_v16 = vrot.slane %v4737_v7, 5  ;;  %v4755_v47 = vshrl.u32 %v6744_v9, 16  ;;  %v4761_v32 = vshll.u32 %v6745_v12, 16  ;;  %v8117_v7 = vld [vmem:[%s9289_s1 + $0x120] sm:$0xff]  }
  0xf0   : > { %7720 = vmatpush3.bf16.msra.mxu1 %v8828_v60  ;;  %7444 = vmatprep.mubr.bf16.mxu1 %v8096_v41  ;;  %v4711_v60 = vrot.slane %v4710_v1, 4  ;;  %v4744_v21 = vrot.slane %v4742_v13, 4  ;;  %v4734_v26 = vor.u32 %v4733_v15, %v4729_v11  ;;  %v4747_v28 = vrot.slane %v4745_v19, 5  ;;  %v6753_v15 = vld [vmem:[%s8201_s18 + $0xc4] sm:$0xf] }
  0xf1   : > { %7713 = vmatprep.subr.bf16.mxu1 %v8114_v8  ;;  %v4725_v25 = vrot.slane %v4724_v14, 4  ;;  %v4753_v30 = vrot.slane %v4751_v22, 5  ;;  %v4757_v31 = vrot.slane %v4755_v47, 4  ;;  %v4766_v40 = vshrl.u32 %v6746_v34, 16 }
  0xf2   : > { %v4716_v20 = vsel %vm8224_vm2, %v4711_v60, %v4715_v54  ;;  %v4735_v36 = vrot.slane %v4734_v26, 4  ;;  %v4748_v37 = vor.u32 %v4747_v28, %v4744_v21  ;;  %v4763_v42 = vrot.slane %v4761_v32, 5  ;;  %v6754_v21 = vld [vmem:[%s8201_s18 + $0xc8] sm:$0x1]  ;;  %v8103_v26 = vld [vmem:[%s8201_s18 + $0x60] sm:$0xff]  }
  0xf3   : > { %v6783_v24 = vcombine.low %v4706_v10, %v4716_v20  ;;  %v4730_v35 = vsel %vm8224_vm2, %v4725_v25, %v4729_v11  ;;  %v4758_v27 = vor.u32 %v4757_v31, %v4753_v30  ;;  %v4769_v43 = vshll.u32 %v6746_v34, 16  ;;  %v6752_v11 = vld [vmem:[%s8201_s18 + $0xc0] sm:$0xf]  ;;  %v8118_v28 = vld [vmem:[%s9289_s1 + $0x128] sm:$0xff]  }
  0xf4   : > { %7721 = vmatpush3.bf16.msra.mxu1 %v8114_v8  ;;  %v4775_v41 = vshll.u32 %v6747_v38, 16  ;;  %v4740_v44 = vsel %vm8224_vm2, %v4735_v36, %v4739_v16  ;;  %v4749_v45 = vrot.slane %v4748_v37, 4  ;;  %v4768_v46 = vrot.slane %v4766_v40, 4  ;;  %v6755_v34 = vld [vmem:[%s8201_s18 + $0xcc] sm:$0xf] }
  0xf5   : > { %7714 = vmatprep.subr.bf16.mxu1 %v8115_v29  ;;  %7649 = vmatmul.mubr.bf16.gmra.mrb[16].mxu0 %v6783_v24  ;;  %v4779_v48 = vshrl.u32 %v6747_v38, 16  ;;  %v6784_v51 = vcombine.low %v4730_v35, %v4740_v44  ;;  %v4759_v52 = vrot.slane %v4758_v27, 4  ;;  %v4771_v53 = vrot.slane %v4769_v43, 5  ;;  %v6756_v35 = vld [vmem:[%s8201_s18 + $0xd0] sm:$0xf] }
  0xf6   : > { %v4777_v54 = vrot.slane %v4775_v41, 5  ;;  %v4754_v58 = vsel %vm8224_vm2, %v4749_v45, %v4753_v30  ;;  %v4785_v61 = vshll.u32 %v6748_v39, 16  ;;  %v4790_v1 = vshrl.u32 %v6749_v55, 16  ;;  %v8105_v36 = vld [vmem:[%s8201_s18 + $0x6c] sm:$0xff]   ;;  %v6757_v40 = vld [vmem:[%s8201_s18 + $0xd4] sm:$0x1] }
  0xf7   : > { %7445 = vmatmul.mubr.bf16.gmra.mrb[4].mxu1 %v8097_v17  ;;  %v4781_v59 = vrot.slane %v4779_v48, 4  ;;  %7652 = vmatprep.mubr.bf16.mxu0 %v6784_v51  ;;  %v4764_v63 = vsel %vm8224_vm2, %v4759_v52, %v4763_v42  ;;  %v4772_v0 = vor.u32 %v4771_v53, %v4768_v46  ;;  %v4793_v2 = vshll.u32 %v6749_v55, 16 }
  0xf8   : > { %7448 = vmatprep.mubr.bf16.mxu1 %v8099_v23  ;;  %7722 = vmatpush3.bf16.msra.mxu1 %v8115_v29  ;;  %v6785_v3 = vcombine.low %v4754_v58, %v4764_v63  ;;  %v4787_v5 = vrot.slane %v4785_v61, 5  ;;  %v4799_v6 = vshll.u32 %v6750_v56, 16  ;;  %v4792_v9 = vrot.slane %v4790_v1, 4  ;;  %v6798_v61 = vld [vmem:[%s8201_s18 + $0x18] sm:$0xe] }
  0xf9   : > { %7715 = vmatprep.subr.bf16.mxu1 %v8116_v50  ;;  %v4782_v18 = vor.u32 %v4781_v59, %v4777_v54  ;;  %v4773_v8 = vrot.slane %v4772_v0, 4  ;;  %v4795_v10 = vrot.slane %v4793_v2, 5  ;;  %v4803_v60 = vshrl.u32 %v6750_v56, 16  ;;  %v6799_v56 = vld [vmem:[%s8201_s18 + $0x1c] sm:$0xf] }
  0xfa   : > { %v4801_v13 = vrot.slane %v4799_v6, 5  ;;  %v4809_v14 = vshll.u32 %v6751_v62, 16  ;;  %v4814_v16 = vshrl.u32 %v6752_v11, 16  ;;  %v4817_v22 = vshll.u32 %v6752_v11, 16  ;;  %v6800_v0 = vld [vmem:[%s8201_s18 + $0x20] sm:$0x1] }
  0xfb   : > { %v4783_v12 = vrot.slane %v4782_v18, 4  ;;  %v4778_v17 = vsel %vm8224_vm2, %v4773_v8, %v4777_v54  ;;  %v4796_v19 = vor.u32 %v4795_v10, %v4792_v9  ;;  %v4805_v20 = vrot.slane %v4803_v60, 4  ;;  %v8106_v6 = vld [vmem:[%s8201_s18 + $0x78] sm:$0xff]   ;;  %v6801_v60 = vld [vmem:[%s8201_s18 + $0x24] sm:$0xe] }
  0xfc   : > { %7723 = vmatpush3.bf16.msra.mxu1 %v8116_v50  ;;  %v4811_v23 = vrot.slane %v4809_v14, 5  ;;  %v4816_v24 = vrot.slane %v4814_v16, 4  ;;  %v4823_v25 = vshll.u32 %v6753_v15, 16  ;;  %v4819_v32 = vrot.slane %v4817_v22, 5  ;;  %v8119_v50 = vld [vmem:[%s9289_s1 + $0x130] sm:$0xff]   ;;  %v8107_v16 = vld [vmem:[%s8201_s18 + $0x84] sm:$0xff]  }
  0xfd   : > { %7716 = vmatprep.subr.bf16.mxu1 %v8117_v7  ;;  %7653 = vmatmul.mubr.bf16.gmra.mrb[20].mxu0 %v6785_v3  ;;  %v4788_v47 = vsel %vm8224_vm2, %v4783_v12, %v4787_v5  ;;  %v4797_v30 = vrot.slane %v4796_v19, 4  ;;  %v4806_v31 = vor.u32 %v4805_v20, %v4801_v13  ;;  %v4827_v38 = vshrl.u32 %v6753_v15, 16  ;;  %v6802_v11 = vld [vmem:[%s8201_s18 + $0x28] sm:$0xf]  ;;  %v6803_v15 = vld [vmem:[%s8201_s18 + $0x2c] sm:$0x1] }
  0xfe   : > { %v6786_v29 = vcombine.low %v4778_v17, %v4788_v47  ;;  %v4825_v37 = vrot.slane %v4823_v25, 5  ;;  %v4833_v39 = vshll.u32 %v6754_v21, 16  ;;  %v4838_v27 = vshrl.u32 %v6755_v34, 16  ;;  %v6804_v22 = vld [vmem:[%s8201_s18 + $0x30] sm:$0xe] }
  0xff   : > { %7449 = vmatmul.mubr.bf16.gmra.mrb[8].mxu1 %v8100_v49  ;;  %v4802_v42 = vsel %vm8224_vm2, %v4797_v30, %v4801_v13  ;;  %v4807_v43 = vrot.slane %v4806_v31, 4  ;;  %v4820_v41 = vor.u32 %v4819_v32, %v4816_v24  ;;  %v4841_v44 = vshll.u32 %v6755_v34, 16  ;;  %v6805_v25 = vld [vmem:[%s8201_s18 + $0x34] sm:$0xf] }
 0x100   : > { %7452 = vmatprep.mubr.bf16.mxu1 %v8102_v57  ;;  %7724 = vmatpush3.bf16.msra.mxu1 %v8117_v7  ;;  %v4829_v45 = vrot.slane %v4827_v38, 4  ;;  %v4835_v46 = vrot.slane %v4833_v39, 5  ;;  %v4840_v48 = vrot.slane %v4838_v27, 4  ;;  %v4847_v49 = vshll.u32 %v6756_v35, 16  ;;  %v8120_v7 = vld [vmem:[%s9289_s1 + $0x138] sm:$0xff]  }
 0x101   : > { %7717 = vmatprep.subr.bf16.mxu1 %v8118_v28  ;;  %7656 = vmatprep.mubr.bf16.mxu0 %v6786_v29  ;;  %v4812_v51 = vsel %vm8224_vm2, %v4807_v43, %v4811_v23  ;;  %v4821_v52 = vrot.slane %v4820_v41, 4  ;;  %v4843_v53 = vrot.slane %v4841_v44, 5  ;;  %v4851_v54 = vshrl.u32 %v6756_v35, 16  ;;  %v6809_v38 = vld [vmem:[%s8201_s18 + $0x44] sm:$0x1] }
 0x102   : > { %v6787_v55 = vcombine.low %v4802_v42, %v4812_v51  ;;  %v4830_v57 = vor.u32 %v4829_v45, %v4825_v37  ;;  %v4849_v58 = vrot.slane %v4847_v49, 5  ;;  %v4857_v59 = vshll.u32 %v6757_v40, 16  ;;  %v8108_v42 = vld [vmem:[%s8201_s18 + $0x90] sm:$0xff]   ;;  %v6810_v41 = vld [vmem:[%s8201_s18 + $0x48] sm:$0xe] }
 0x103   : > { %v4844_v62 = vor.u32 %v4843_v53, %v4840_v48  ;;  %v4853_v63 = vrot.slane %v4851_v54, 4  ;;  %v6846_v1 = vrot.slane %v6798_v61, 9  ;;  %v4826_v2 = vsel %vm8224_vm2, %v4821_v52, %v4825_v37  ;;  %v6808_v37 = vld [vmem:[%s8201_s18 + $0x40] sm:$0xf]  ;;  %v6811_v49 = vld [vmem:[%s8201_s18 + $0x4c] sm:$0xf] }
 0x104   : > { %7725 = vmatpush3.bf16.msra.mxu1 %v8118_v28  ;;  %v4831_v3 = vrot.slane %v4830_v57, 4  ;;  %v5345_v18 = vrot.slane %v6799_v56, 5  ;;  %v5348_v5 = vrot.slane %v6800_v0, 5  ;;  %v4859_v10 = vrot.slane %v4857_v59, 5  ;;  %v8109_v48 = vld [vmem:[%s8201_s18 + $0x9c] sm:$0xff]  }
 0x105   : > { %7718 = vmatprep.subr.bf16.mxu1 %v8119_v50  ;;  %7657 = vmatmul.mubr.bf16.gmra.mrb[24].mxu0 %v6787_v55  ;;  %v4845_v8 = vrot.slane %v4844_v62, 4  ;;  %v4854_v9 = vor.u32 %v4853_v63, %v4849_v58  ;;  %v5352_v21 = vrot.slane %v6802_v11, 5  ;;  %v6847_v23 = vrot.slane %v6801_v60, 9  ;;  %v6813_v57 = vld [vmem:[%s8201_s18 + $0x54] sm:$0xe] }
 0x106   : > { %v4836_v12 = vsel %vm8224_vm2, %v4831_v3, %v4835_v46  ;;  %v5346_v13 = vsel %vm8324_vm5, %v6846_v1, %v5345_v18  ;;  %v5347_v14 = vrot.slane %v5345_v18, 4  ;;  %v5355_v24 = vrot.slane %v6803_v15, 5  ;;  %v6815_v59 = vld [vmem:[%s8201_s18 + $0x5c] sm:$0x1]  ;;  %v6816_v18 = vld [vmem:[%s8201_s18 + $0x60] sm:$0xe] }
 0x107   : > { %7453 = vmatmul.mubr.bf16.gmra.mrb[12].mxu1 %v8103_v26  ;;  %v6788_v17 = vcombine.low %v4826_v2, %v4836_v12  ;;  %v4850_v19 = vsel %vm8224_vm2, %v4845_v8, %v4849_v58  ;;  %v4855_v20 = vrot.slane %v4854_v9, 4  ;;  %v6806_v26 = vld [vmem:[%s8201_s18 + $0x38] sm:$0x1]  ;;  %v5354_v30 = vrot.slane %v5352_v21, 4  ;;  %v6818_v8 = vld [vmem:[%s8201_s18 + $0x68] sm:$0x1] }
 0x108   : > { %7456 = vmatprep.mubr.bf16.mxu1 %v8105_v36  ;;  %7726 = vmatpush3.bf16.msra.mxu1 %v8119_v50  ;;  %v5349_v47 = vsel %vm8324_vm5, %v5347_v14, %v5348_v5  ;;  %v6848_v31 = vrot.slane %v6804_v22, 9  ;;  %v5359_v34 = vrot.slane %v6805_v25, 5  ;;  %v5362_v35 = vrot.slane %v6806_v26, 5  ;;  %v6807_v36 = vld [vmem:[%s8201_s18 + $0x3c] sm:$0xe]  ;;  %v8110_v15 = vld [vmem:[%s8201_s18 + $0xa8] sm:$0xff]  }
 0x109   : > { %7719 = vmatprep.subr.bf16.mxu1 %v8120_v7  ;;  %7660 = vmatprep.mubr.bf16.mxu0 %v6788_v17  ;;  %v4860_v28 = vsel %vm8224_vm2, %v4855_v20, %v4859_v10  ;;  %v6878_v29 = vcombine.low %v5346_v13, %v5349_v47  ;;  %v6849_v39 = vrot.slane %v6807_v36, 9  ;;  %v5366_v40 = vrot.slane %v6808_v37, 5  ;;  %v6812_v50 = vld [vmem:[%s8201_s18 + $0x50] sm:$0x1]  ;;  %v6814_v58 = vld [vmem:[%s8201_s18 + $0x58] sm:$0xf] }
 0x10a   : > { %v6789_v32 = vcombine.low %v4850_v19, %v4860_v28  ;;  %v5361_v27 = vrot.slane %v5359_v34, 4  ;;  %v5369_v43 = vrot.slane %v6809_v38, 5  ;;  %v5353_v44 = vsel %vm8324_vm5, %v6847_v23, %v5352_v21  ;;  %v6817_v5 = vld [vmem:[%s8201_s18 + $0x64] sm:$0xf]  ;;  %v6819_v13 = vld [vmem:[%s8201_s18 + $0x6c] sm:$0xe] }
 0x10b   : > { %v5356_v45 = vsel %vm8324_vm5, %v5354_v30, %v5355_v24  ;;  %v5368_v46 = vrot.slane %v5366_v40, 4  ;;  %v6850_v51 = vrot.slane %v6810_v41, 9  ;;  %v5360_v52 = vsel %vm8324_vm5, %v6848_v31, %v5359_v34  ;;  %v6820_v19 = vld [vmem:[%s8201_s18 + $0x70] sm:$0xf]  ;;  %v6821_v20 = vld [vmem:[%s8201_s18 + $0x74] sm:$0x1] }
 0x10c   : > { %7727 = vmatpush3.bf16.msra.mxu1 %v8120_v7  ;;  %v5363_v53 = vsel %vm8324_vm5, %v5361_v27, %v5362_v35  ;;  %v5373_v54 = vrot.slane %v6811_v49, 5  ;;  %v5376_v55 = vrot.slane %v6812_v50, 5  ;;  %v6879_v61 = vcombine.low %v5353_v44, %v5356_v45  ;;  %v8111_v23 = vld [vmem:[%s8201_s18 + $0xb4] sm:$0xff]   ;;  %v6470_v26 = vld [vmem:[%s8201_s18 + $0x6c] sm:$0xf] }
 0x10d   : > { %7661 = vmatmul.mubr.bf16.gmra.mrb[28].mxu0 %v6789_v32  ;;  %v9038_v56 = vsel %vm8324_vm5, %v6849_v39, %v5366_v40  ;;  %v6851_v63 = vrot.slane %v6813_v57, 9  ;;  %v6880_v0 = vcombine.low %v5360_v52, %v5363_v53  ;;  %v9042_v1 = vsel %vm8324_vm5, %v5368_v46, %v5369_v43  ;;  %v6471_v28 = vld [vmem:[%s8201_s18 + $0x70] sm:$0xf]  ;;  %v6472_v31 = vld [vmem:[%s8201_s18 + $0x74] sm:$0x1] }
 0x10e   : > { %7680 = vmatprep.mubr.bf16.mxu0 %v6878_v29  ;;  %v5375_v62 = vrot.slane %v5373_v54, 4  ;;  %v5380_v2 = vrot.slane %v6814_v58, 5  ;;  %v5383_v3 = vrot.slane %v6815_v59, 5  ;;  %v6852_v9 = vrot.slane %v6816_v18, 9  ;;  %v6822_v35 = vld [vmem:[%s8201_s18 + $0x78] sm:$0xe] }
 0x10f   : > { %7457 = vmatmul.mubr.bf16.gmra.mrb[16].mxu1 %v8106_v6  ;;  %v9048_v6 = vsel %vm8324_vm5, %v6850_v51, %v5373_v54  ;;  %v5387_v10 = vrot.slane %v6817_v5, 5  ;;  %v5390_v12 = vrot.slane %v6818_v8, 5  ;;  %v6881_v14 = vcombine.low %v9038_v56, %v9042_v1  ;;  %v6823_v40 = vld [vmem:[%s8201_s18 + $0x7c] sm:$0xf]  ;;  %v6824_v27 = vld [vmem:[%s8201_s18 + $0x80] sm:$0x1] }
 0x110   : > { %7460 = vmatprep.mubr.bf16.mxu1 %v8107_v16  ;;  %v9052_v7 = vsel %vm8324_vm5, %v5375_v62, %v5376_v55  ;;  %v9057_v60 = vsel %vm8324_vm5, %v6851_v63, %v5380_v2  ;;  %v5382_v11 = vrot.slane %v5380_v2, 4  ;;  %v6853_v21 = vrot.slane %v6819_v13, 9  ;;  %v6473_v45 = vld [vmem:[%s8201_s18 + $0x78] sm:$0xf]  ;;  %v6474_v51 = vld [vmem:[%s8201_s18 + $0x7c] sm:$0xf] }
 0x111   : > { %v9065_v16 = vsel %vm8324_vm5, %v6852_v9, %v5387_v10  ;;  %v5389_v17 = vrot.slane %v5387_v10, 4  ;;  %v6882_v22 = vcombine.low %v9048_v6, %v9052_v7  ;;  %v5394_v24 = vrot.slane %v6820_v19, 5  ;;  %v6475_v57 = vld [vmem:[%s8201_s18 + $0x80] sm:$0x1]  ;;  %v6825_v62 = vld [vmem:[%s8201_s18 + $0x84] sm:$0xe] }
 0x112   : > { %v9073_v47 = vsel %vm8324_vm5, %v5382_v11, %v5383_v3  ;;  %v5397_v25 = vrot.slane %v6821_v20, 5  ;;  %v2807_v32 = vshrl.u32 %v6470_v26, 16  ;;  %v2810_v34 = vshll.u32 %v6470_v26, 16  ;;  %v6826_v3 = vld [vmem:[%s8201_s18 + $0x88] sm:$0xf]  ;;  %v8112_v9 = vld [vmem:[%s8201_s18 + $0xc0] sm:$0xff]  }
 0x113   : > { %v6883_v29 = vcombine.low %v9057_v60, %v9073_v47  ;;  %v9082_v30 = vsel %vm8324_vm5, %v5389_v17, %v5390_v12  ;;  %v9090_v37 = vsel %vm8324_vm5, %v6853_v21, %v5394_v24  ;;  %v5396_v38 = vrot.slane %v5394_v24, 4  ;;  %v6827_v8 = vld [vmem:[%s8201_s18 + $0x8c] sm:$0x1]  ;;  %v6477_v21 = vld [vmem:[%s8201_s18 + $0x88] sm:$0xf] }
 0x114   : > { %v6884_v36 = vcombine.low %v9065_v16, %v9082_v30  ;;  %v2816_v39 = vshll.u32 %v6471_v28, 16  ;;  %v2812_v43 = vrot.slane %v2810_v34, 5  ;;  %v2820_v41 = vshrl.u32 %v6471_v28, 16 }
 0x115   : > { %7681 = vmatmul.mubr.bf16.vlgmr.msra.gmra.mrb[0].mxu0 %v6879_v61  ;;  %v2826_v44 = vshll.u32 %v6472_v31, 16  ;;  %v9097_v46 = vsel %vm8324_vm5, %v5396_v38, %v5397_v25  ;;  %v6854_v49 = vrot.slane %v6822_v35, 9  ;;  %v5401_v50 = vrot.slane %v6823_v40, 5  ;;  %v6478_v31 = vld [vmem:[%s8201_s18 + $0x8c] sm:$0x1] }
 0x116   : > { %7684 = vmatprep.mubr.bf16.mxu0 %v6880_v0  ;;  %v6885_v52 = vcombine.low %v9090_v37, %v9097_v46  ;;  %v2822_v54 = vrot.slane %v2820_v41, 4  ;;  %v5404_v61 = vrot.slane %v6824_v27, 5  ;;  %v2831_v56 = vshrl.u32 %v6473_v45, 16  ;;  %v6828_v27 = vld [vmem:[%s8201_s18 + $0x90] sm:$0xe] }
 0x117   : > { %7461 = vmatmul.mubr.bf16.gmra.mrb[20].mxu1 %v8108_v42  ;;  %v2809_v42 = vrot.slane %v2807_v32, 4  ;;  %v2828_v55 = vrot.slane %v2826_v44, 5  ;;  %v9105_v58 = vsel %vm8324_vm5, %v6854_v49, %v5401_v50  ;;  %v5403_v59 = vrot.slane %v5401_v50, 4 }
 0x118   : > { %7464 = vmatprep.mubr.bf16.mxu1 %v8109_v48  ;;  %v2818_v48 = vrot.slane %v2816_v39, 5  ;;  %v2834_v1 = vshll.u32 %v6473_v45, 16  ;;  %v2840_v2 = vshll.u32 %v6474_v51, 16  ;;  %v2833_v5 = vrot.slane %v2831_v56, 4  ;;  %v6829_v45 = vld [vmem:[%s8201_s18 + $0x94] sm:$0xf] }
 0x119   : > { %v2813_v53 = vor.u32 %v2812_v43, %v2809_v42  ;;  %v9111_v18 = vsel %vm8324_vm5, %v5403_v59, %v5404_v61  ;;  %v2844_v6 = vshrl.u32 %v6474_v51, 16  ;;  %v2850_v7 = vshll.u32 %v6475_v57, 16  ;;  %v6480_v57 = vld [vmem:[%s8201_s18 + $0x94] sm:$0xf] }
 0x11a   : > { %v2823_v0 = vor.u32 %v2822_v54, %v2818_v48  ;;  %v6886_v12 = vcombine.low %v9105_v58, %v9111_v18  ;;  %v2836_v13 = vrot.slane %v2834_v1, 5  ;;  %v6855_v20 = vrot.slane %v6825_v62, 9  ;;  %v6479_v54 = vld [vmem:[%s8201_s18 + $0x90] sm:$0xf]  ;;  %v6831_v1 = vld [vmem:[%s8201_s18 + $0x9c] sm:$0xe] }
 0x11b   : > { %v2814_v63 = vrot.slane %v2813_v53, 4  ;;  %v2846_v17 = vrot.slane %v2844_v6, 4  ;;  %v2852_v19 = vrot.slane %v2850_v7, 5  ;;  %v5408_v24 = vrot.slane %v6826_v3, 5  ;;  %v6830_v53 = vld [vmem:[%s8201_s18 + $0x98] sm:$0x1] }
 0x11c   : > { %v2824_v11 = vrot.slane %v2823_v0, 4  ;;  %v5411_v25 = vrot.slane %v6827_v8, 5  ;;  %v2864_v40 = vshll.u32 %v6477_v21, 16  ;;  %v2868_v44 = vshrl.u32 %v6477_v21, 16  ;;  %v6832_v7 = vld [vmem:[%s8201_s18 + $0xa0] sm:$0xf] }
 0x11d   : > { %7685 = vmatmul.mubr.bf16.gmra.mrb[4].mxu0 %v6881_v14  ;;  %v2819_v10 = vsel %vm8224_vm2, %v2814_v63, %v2818_v48  ;;  %v6476_v14 = vld [vmem:[%s8201_s18 + $0x84] sm:$0xf]  ;;  %v9126_v38 = vsel %vm8324_vm5, %v6855_v20, %v5408_v24  ;;  %v5410_v39 = vrot.slane %v5408_v24, 4  ;;  %v2874_v51 = vshll.u32 %v6478_v31, 16  ;;  %v6481_v63 = vld [vmem:[%s8201_s18 + $0x98] sm:$0x1] }
 0x11e   : > { %7688 = vmatprep.mubr.bf16.mxu0 %v6882_v22  ;;  %v2829_v22 = vsel %vm8224_vm2, %v2824_v11, %v2828_v55  ;;  %v2855_v32 = vshrl.u32 %v6476_v14, 16  ;;  %v2858_v34 = vshll.u32 %v6476_v14, 16  ;;  %v2866_v50 = vrot.slane %v2864_v40, 5  ;;  %v6482_v20 = vld [vmem:[%s8201_s18 + $0x9c] sm:$0xf] }
 0x11f   : > { %7465 = vmatmul.mubr.bf16.gmra.mrb[24].mxu1 %v8110_v15  ;;  %v2842_v15 = vrot.slane %v2840_v2, 5  ;;  %v6518_v26 = vcombine.low %v2819_v10, %v2829_v22  ;;  %v9137_v49 = vsel %vm8324_vm5, %v5410_v39, %v5411_v25  ;;  %v2870_v55 = vrot.slane %v2868_v44, 4  ;;  %v6483_v25 = vld [vmem:[%s8201_s18 + $0xa0] sm:$0xf]  ;;  %v6484_v39 = vld [vmem:[%s8201_s18 + $0xa4] sm:$0x1] }
 0x120   : > { %7468 = vmatprep.mubr.bf16.mxu1 %v8111_v23  ;;  %v2837_v23 = vor.u32 %v2836_v13, %v2833_v5  ;;  %v2857_v43 = vrot.slane %v2855_v32, 4  ;;  %v2860_v41 = vrot.slane %v2858_v34, 5  ;;  %v6887_v47 = vcombine.low %v9126_v38, %v9137_v49  ;;  %v6833_v13 = vld [vmem:[%s8201_s18 + $0xa4] sm:$0x1]  ;;  %v6835_v44 = vld [vmem:[%s8201_s18 + $0xac] sm:$0xf] }
 0x121   : > { %v2847_v28 = vor.u32 %v2846_v17, %v2842_v15  ;;  %v2876_v61 = vrot.slane %v2874_v51, 5  ;;  %v6856_v56 = vrot.slane %v6828_v27, 9  ;;  %v5415_v62 = vrot.slane %v6829_v45, 5 }
 0x122   : > { %v2838_v35 = vrot.slane %v2837_v23, 4  ;;  %v2871_v16 = vor.u32 %v2870_v55, %v2866_v50  ;;  %v5418_v30 = vrot.slane %v6830_v53, 5  ;;  %v2882_v5 = vshll.u32 %v6479_v54, 16  ;;  %v6836_v53 = vld [vmem:[%s8201_s18 + $0xb0] sm:$0x1] }
 0x123   : > { %v2848_v42 = vrot.slane %v2847_v28, 4  ;;  %v9153_v2 = vsel %vm8324_vm5, %v6856_v56, %v5415_v62  ;;  %v5417_v3 = vrot.slane %v5415_v62, 4  ;;  %v2888_v6 = vshll.u32 %v6480_v57, 16 }
 0x124   : > { %v2843_v48 = vsel %vm8224_vm2, %v2838_v35, %v2842_v15  ;;  %v2892_v11 = vshrl.u32 %v6480_v57, 16  ;;  %v2884_v15 = vrot.slane %v2882_v5, 5  ;;  %v6857_v24 = vrot.slane %v6831_v1, 9 }
 0x125   : > { %7689 = vmatmul.mubr.bf16.gmra.mrb[8].mxu0 %v6883_v29  ;;  %v2853_v60 = vsel %vm8224_vm2, %v2848_v42, %v2852_v19  ;;  %v2861_v29 = vor.u32 %v2860_v41, %v2857_v43  ;;  %v5419_v14 = vsel %vm8324_vm5, %v5417_v3, %v5418_v30  ;;  %v2890_v17 = vrot.slane %v2888_v6, 5  ;;  %v6834_v43 = vld [vmem:[%s8201_s18 + $0xa8] sm:$0xe] }
 0x126   : > { %7692 = vmatprep.mubr.bf16.mxu0 %v6884_v36  ;;  %v6519_v59 = vcombine.low %v2843_v48, %v2853_v60  ;;  %v2879_v36 = vshrl.u32 %v6479_v54, 16  ;;  %v2898_v19 = vshll.u32 %v6481_v63, 16  ;;  %v6888_v22 = vcombine.low %v9153_v2, %v5419_v14  ;;  %v6485_v54 = vld [vmem:[%s8201_s18 + $0xa8] sm:$0xf]  ;;  %v6837_v2 = vld [vmem:[%s8201_s18 + $0xb4] sm:$0xe] }
 0x127   : > { %7469 = vmatmul.mubr.bf16.gmra.mrb[28].mxu1 %v8112_v9  ;;  %v2862_v0 = vrot.slane %v2861_v29, 4  ;;  %v2872_v9 = vrot.slane %v2871_v16, 4  ;;  %v2894_v23 = vrot.slane %v2892_v11, 4  ;;  %v5422_v32 = vrot.slane %v6832_v7, 5  ;;  %v6839_v14 = vld [vmem:[%s8201_s18 + $0xbc] sm:$0x1] }
 0x128   : > { %7504 = vmatprep.mubr.bf16.mxu1 %v6518_v26  ;;  %v2881_v10 = vrot.slane %v2879_v36, 4  ;;  %v2900_v31 = vrot.slane %v2898_v19, 5  ;;  %v5425_v35 = vrot.slane %v6833_v13, 5  ;;  %v2903_v40 = vshrl.u32 %v6482_v20, 16 }
 0x129   : > { %v2867_v8 = vsel %vm8224_vm2, %v2862_v0, %v2866_v50  ;;  %v2877_v21 = vsel %vm8224_vm2, %v2872_v9, %v2876_v61  ;;  %v2895_v34 = vor.u32 %v2894_v23, %v2890_v17  ;;  %v2906_v27 = vshll.u32 %v6482_v20, 16  ;;  %v6487_v0 = vld [vmem:[%s8201_s18 + $0xb0] sm:$0x1]  ;;  %v6489_v23 = vld [vmem:[%s8201_s18 + $0xb8] sm:$0xf] }
 0x12a   : > { %v6520_v26 = vcombine.low %v2867_v8, %v2877_v21  ;;  %v2885_v28 = vor.u32 %v2884_v15, %v2881_v10  ;;  %v9175_v46 = vsel %vm8324_vm5, %v6857_v24, %v5422_v32  ;;  %v2912_v42 = vshll.u32 %v6483_v25, 16  ;;  %v6838_v8 = vld [vmem:[%s8201_s18 + $0xb8] sm:$0xf] }
 0x12b   : > { %v2896_v58 = vrot.slane %v2895_v34, 4  ;;  %v2905_v18 = vrot.slane %v2903_v40, 4  ;;  %v2916_v41 = vshrl.u32 %v6483_v25, 16  ;;  %v2922_v51 = vshll.u32 %v6484_v39, 16  ;;  %v6490_v34 = vld [vmem:[%s8201_s18 + $0xbc] sm:$0x1] }
 0x12c   : > { %v2886_v37 = vrot.slane %v2885_v28, 4  ;;  %v2914_v50 = vrot.slane %v2912_v42, 5  ;;  %v6858_v62 = vrot.slane %v6834_v43, 9  ;;  %v5429_v63 = vrot.slane %v6835_v44, 5 }
 0x12d   : > { %7693 = vmatmul.mubr.bf16.gmra.mrb[12].mxu0 %v6885_v52  ;;  %v5424_v52 = vrot.slane %v5422_v32, 4  ;;  %v2901_v60 = vsel %vm8224_vm2, %v2896_v58, %v2900_v31  ;;  %v2918_v57 = vrot.slane %v2916_v41, 4  ;;  %v2924_v56 = vrot.slane %v2922_v51, 5  ;;  %v6491_v51 = vld [vmem:[%s8201_s18 + $0xc0] sm:$0xf] }
 0x12e   : > { %7696 = vmatprep.mubr.bf16.mxu0 %v6886_v12  ;;  %v2908_v12 = vrot.slane %v2906_v27, 5  ;;  %v2891_v45 = vsel %vm8224_vm2, %v2886_v37, %v2890_v17  ;;  %v5432_v36 = vrot.slane %v6836_v53, 5  ;;  %v2927_v1 = vshrl.u32 %v6485_v54, 16  ;;  %v6488_v17 = vld [vmem:[%s8201_s18 + $0xb4] sm:$0xf] }
 0x12f   : > { %7505 = vmatmul.mubr.bf16.vlgmr.msra.gmra.mrb[16].mxu1 %v6519_v59  ;;  %v9183_v48 = vsel %vm8324_vm5, %v5424_v52, %v5425_v35  ;;  %v6486_v59 = vld [vmem:[%s8201_s18 + $0xac] sm:$0xf]  ;;  %v6521_v61 = vcombine.low %v2891_v45, %v2901_v60  ;;  %v2919_v30 = vor.u32 %v2918_v57, %v2914_v50  ;;  %v5430_v3 = vsel %vm8324_vm5, %v6858_v62, %v5429_v63  ;;  %v6840_v52 = vld [vmem:[%s8201_s18 + $0xc0] sm:$0xe] }
 0x130   : > { %7508 = vmatprep.mubr.bf16.mxu1 %v6520_v26  ;;  %v6889_v29 = vcombine.low %v9175_v46, %v9183_v48  ;;  %v2909_v55 = vor.u32 %v2908_v12, %v2905_v18  ;;  %v5431_v5 = vrot.slane %v5429_v63, 4  ;;  %v2930_v6 = vshll.u32 %v6485_v54, 16  ;;  %v6841_v12 = vld [vmem:[%s8201_s18 + $0xc4] sm:$0xf] }
 0x131   : > { %v2936_v7 = vshll.u32 %v6486_v59, 16  ;;  %v2920_v10 = vrot.slane %v2919_v30, 4  ;;  %v2929_v11 = vrot.slane %v2927_v1, 4  ;;  %v2940_v13 = vshrl.u32 %v6486_v59, 16 }
 0x132   : > { %v2910_v16 = vrot.slane %v2909_v55, 4  ;;  %v5433_v38 = vsel %vm8324_vm5, %v5431_v5, %v5432_v36  ;;  %v2932_v49 = vrot.slane %v2930_v6, 5  ;;  %v2946_v15 = vshll.u32 %v6487_v0, 16  ;;  %v6843_v5 = vld [vmem:[%s8201_s18 + $0xcc] sm:$0xe] }
 0x133   : > { %v2925_v19 = vsel %vm8224_vm2, %v2920_v10, %v2924_v56  ;;  %v6890_v20 = vcombine.low %v5430_v3, %v5433_v38  ;;  %v2942_v21 = vrot.slane %v2940_v13, 4  ;;  %v5436_v28 = vrot.slane %v6838_v8, 5  ;;  %v6844_v10 = vld [vmem:[%s8201_s18 + $0xd0] sm:$0xf] }
 0x134   : > { %v2915_v9 = vsel %vm8224_vm2, %v2910_v16, %v2914_v50  ;;  %v2933_v25 = vor.u32 %v2932_v49, %v2929_v11  ;;  %v2948_v26 = vrot.slane %v2946_v15, 5  ;;  %v5439_v32 = vrot.slane %v6839_v14, 5  ;;  %v6842_v50 = vld [vmem:[%s8201_s18 + $0xc8] sm:$0x1]  ;;  %v6845_v49 = vld [vmem:[%s8201_s18 + $0xd4] sm:$0x1] }
 0x135   : > { %7697 = vmatmul.mubr.bf16.gmra.mrb[16].mxu0 %v6887_v47  ;;  %v2938_v47 = vrot.slane %v2936_v7, 5  ;;  %v6522_v24 = vcombine.low %v2915_v9, %v2925_v19  ;;  %v2951_v35 = vshrl.u32 %v6488_v17, 16  ;;  %v2954_v39 = vshll.u32 %v6488_v17, 16  ;;  %v6493_v16 = vld [vmem:[%s8201_s18 + $0xc8] sm:$0x1] }
 0x136   : > { %7700 = vmatprep.mubr.bf16.mxu0 %v6888_v22  ;;  %v6859_v22 = vrot.slane %v6837_v2, 9  ;;  %v2934_v40 = vrot.slane %v2933_v25, 4  ;;  %v5438_v37 = vrot.slane %v5436_v28, 4  ;;  %v2960_v46 = vshll.u32 %v6489_v23, 16 }
 0x137   : > { %7509 = vmatmul.mubr.bf16.gmra.mrb[20].mxu1 %v6521_v61  ;;  %v2943_v31 = vor.u32 %v2942_v21, %v2938_v47  ;;  %v2953_v43 = vrot.slane %v2951_v35, 4  ;;  %v2956_v58 = vrot.slane %v2954_v39, 5  ;;  %v2964_v18 = vshrl.u32 %v6489_v23, 16 }
 0x138   : > { %7512 = vmatprep.mubr.bf16.mxu1 %v6522_v24  ;;  %v5437_v27 = vsel %vm8324_vm5, %v6859_v22, %v5436_v28  ;;  %v2939_v41 = vsel %vm8224_vm2, %v2934_v40, %v2938_v47  ;;  %v5440_v44 = vsel %vm8324_vm5, %v5438_v37, %v5439_v32  ;;  %v2962_v45 = vrot.slane %v2960_v46, 5 }
 0x139   : > { %v2944_v42 = vrot.slane %v2943_v31, 4  ;;  %v2970_v48 = vshll.u32 %v6490_v34, 16  ;;  %v6891_v54 = vcombine.low %v5437_v27, %v5440_v44  ;;  %v2957_v60 = vor.u32 %v2956_v58, %v2953_v43 }
 0x13a   : > { %v2966_v55 = vrot.slane %v2964_v18, 4  ;;  %v6860_v61 = vrot.slane %v6840_v52, 9  ;;  %v5443_v56 = vrot.slane %v6841_v12, 5  ;;  %v5446_v0 = vrot.slane %v6842_v50, 5 }
 0x13b   : > { %v2949_v53 = vsel %vm8224_vm2, %v2944_v42, %v2948_v26  ;;  %v2972_v59 = vrot.slane %v2970_v48, 5  ;;  %v2958_v62 = vrot.slane %v2957_v60, 4  ;;  %v2975_v30 = vshrl.u32 %v6491_v51, 16 }
 0x13c   : > { %v6523_v57 = vcombine.low %v2939_v41, %v2949_v53  ;;  %v2967_v63 = vor.u32 %v2966_v55, %v2962_v45  ;;  %v5444_v36 = vsel %vm8324_vm5, %v6860_v61, %v5443_v56  ;;  %v5445_v1 = vrot.slane %v5443_v56, 4 }
 0x13d   : > { %7701 = vmatmul.mubr.bf16.gmra.mrb[20].mxu0 %v6889_v29  ;;  %v6492_v29 = vld [vmem:[%s8201_s18 + $0xc4] sm:$0xf]  ;;  %v2978_v2 = vshll.u32 %v6491_v51, 16  ;;  %v2963_v6 = vsel %vm8224_vm2, %v2958_v62, %v2962_v45  ;;  %v2977_v8 = vrot.slane %v2975_v30, 4  ;;  %v2994_v38 = vshll.u32 %v6493_v16, 16  ;;  %s6936_s18 = sshll.u32 %s9298_s16, 7 }
 0x13e   : > { %7704 = vmatprep.mubr.bf16.mxu0 %v6890_v20  ;;  %v2984_v3 = vshll.u32 %v6492_v29, 16  ;;  %v2968_v7 = vrot.slane %v2967_v63, 4  ;;  %v2988_v9 = vshrl.u32 %v6492_v29, 16  ;;  %v5447_v11 = vsel %vm8324_vm5, %v5445_v1, %v5446_v0  ;;  %s9255_s21 = scalar_lea.vmem %s9290_s2, %s6936_s18 }
 0x13f   : > { %7513 = vmatmul.mubr.bf16.gmra.mrb[24].mxu1 %v6523_v57  ;;  %v2980_v13 = vrot.slane %v2978_v2, 5  ;;  %v6892_v15 = vcombine.low %v5444_v36, %v5447_v11  ;;  %v6861_v19 = vrot.slane %v6843_v5, 9  ;;  %v5450_v22 = vrot.slane %v6844_v10, 5 }
 0x140   : > { %v2986_v14 = vrot.slane %v2984_v3, 5  ;;  %v2973_v47 = vsel %vm8224_vm2, %v2968_v7, %v2972_v59  ;;  %v2990_v17 = vrot.slane %v2988_v9, 4  ;;  %v2996_v24 = vrot.slane %v2994_v38, 5 }
 0x141   : > { %v6524_v20 = vcombine.low %v2963_v6, %v2973_v47  ;;  %v2981_v21 = vor.u32 %v2980_v13, %v2977_v8  ;;  %v5453_v25 = vrot.slane %v6845_v49, 5  ;;  %v5451_v28 = vsel %vm8324_vm5, %v6861_v19, %v5450_v22 }
 0x142   : > { %v2991_v23 = vor.u32 %v2990_v17, %v2986_v14  ;;  %v5452_v31 = vrot.slane %v5450_v22, 4 }
 0x143   : > { %7516 = vmatprep.mubr.bf16.mxu1 %v6524_v20  ;;  %v2982_v26 = vrot.slane %v2981_v21, 4 }
 0x144   : > { %v2992_v32 = vrot.slane %v2991_v23, 4  ;;  %v5454_v35 = vsel %vm8324_vm5, %v5452_v31, %v5453_v25 }
 0x145   : > { %7705 = vmatmul.mubr.bf16.gmra.mrb[24].mxu0 %v6891_v54  ;;  %v2987_v34 = vsel %vm8224_vm2, %v2982_v26, %v2986_v14  ;;  %v6893_v40 = vcombine.low %v5451_v28, %v5454_v35 }
 0x146   : > { %7708 = vmatprep.mubr.bf16.mxu0 %v6892_v15  ;;  %v2997_v39 = vsel %vm8224_vm2, %v2992_v32, %v2996_v24 }
 0x147   : > { %v6525_v27 = vcombine.low %v2987_v34, %v2997_v39 }
 0x149   : > { %7517 = vmatmul.mubr.bf16.gmra.mrb[28].mxu1 %v6525_v27 }
 0x14d   : > { %7709 = vmatmul.mubr.bf16.gmra.mrb[28].mxu0 %v6893_v40 }
 0x1c2   : > { %v7442_v37 = vpop.f32.mrb[0].mxu1 }
 0x1c3   : > { %v2375_v46 = vpop.f32.mrb[1].mxu1 }
 0x1c4   : > { %v7443_v52 = vpop.f32.mrb[2].mxu1 }
 0x1c5   : > { %v2378_v42 = vpop.f32.mrb[3].mxu1 }
 0x1ca   : > { %v7446_v43 = vpop.f32.mrb[4].mxu1 }
 0x1cb   : > { %v2391_v58 = vpop.f32.mrb[5].mxu1 }
 0x1cc   : > { %v7447_v18 = vpop.f32.mrb[6].mxu1 }
 0x1cd   : > { %v2394_v12 = vpop.f32.mrb[7].mxu1 }
 0x1d2   : > { %v7450_v41 = vpop.f32.mrb[8].mxu1 }
 0x1d3   : > { %v2407_v44 = vpop.f32.mrb[9].mxu1 }
 0x1d4   : > { %v7451_v4 = vpop.f32.mrb[10].mxu1 }
 0x1d5   : > { %v2410_v45 = vpop.f32.mrb[11].mxu1 }
 0x1da   : > { %v9243_v48 = vpop.f32.mrb[12].mxu1 }
 0x1db   : > { %v9245_v33 = vpop.f32.mrb[13].mxu1 }
 0x1dc   : > { %v9247_v50 = vpop.f32.mrb[14].mxu1 }
 0x1dd   : > { %v9249_v51 = vpop.f32.mrb[15].mxu1 }
 0x1e8   : > { %v7682_v53 = vpop.f32.mrb[0].mxu0 }
 0x1e9   : > { %v7728_v54 = vadd.f32 %v7682_v53, %v7442_v37  ;;  %v5650_v60 = vpop.f32.mrb[1].mxu0 }
 0x1ea   : > { %v7729_v55 = vadd.f32 %v5650_v60, %v2375_v46  ;;  %v7683_v29 = vpop.f32.mrb[2].mxu0 }
 0x1eb   : > { %v7730_v57 = vadd.f32 %v7683_v29, %v7443_v52  ;;  %v5653_v59 = vpop.f32.mrb[3].mxu0  ;;  %v6073_v30 = vmul.f32 %v7728_v54, %v7728_v54 }
 0x1ec   : > { %v7731_v61 = vadd.f32 %v5653_v59, %v2378_v42  ;;  %v6071_v62 = vmul.f32 %v7729_v55, %v7729_v55 }
 0x1ed   : > { %v6977_v56 = vpack.c.bf16 %v7730_v57, %v7728_v54  ;;  %v6074_v6 = vmul.f32 %v7730_v57, %v7730_v57 }
 0x1ee   : > { %v6972_v63 = vpack.c.bf16 %v7731_v61, %v7729_v55  ;;  %v6033_v0 = vadd.f32 %v7731_v61, %v7729_v55  ;;  %v6072_v16 = vmul.f32 %v7731_v61, %v7731_v61 }
 0x1ef   : > { %7049 = vst [vmem:[%s9255_s21 + $0x8] sm:$0xff] %v6977_v56  }
 0x1f0   : > { %6973 = vst [vmem:[%s9255_s21] sm:$0xff] %v6972_v63   ;;  %v6034_v36 = vadd.f32 %v7728_v54, %v6033_v0  ;;  %v6103_v1 = vadd.f32 %v6072_v16, %v6071_v62  ;;  %v7686_v2 = vpop.f32.mrb[4].mxu0 }
 0x1f1   : > { %v7732_v3 = vadd.f32 %v7686_v2, %v7446_v43  ;;  %v5666_v5 = vpop.f32.mrb[5].mxu0 }
 0x1f2   : > { %v6104_v7 = vadd.f32 %v6103_v1, %v6073_v30  ;;  %v7733_v8 = vadd.f32 %v5666_v5, %v2391_v58  ;;  %v6035_v9 = vadd.f32 %v7730_v57, %v6034_v36  ;;  %v7687_v10 = vpop.f32.mrb[6].mxu0 }
 0x1f3   : > { %v7734_v11 = vadd.f32 %v7687_v10, %v7447_v18  ;;  %v5669_v13 = vpop.f32.mrb[7].mxu0  ;;  %v6077_v22 = vmul.f32 %v7732_v3, %v7732_v3 }
 0x1f4   : > { %v6036_v14 = vadd.f32 %v7733_v8, %v6035_v9  ;;  %v6075_v38 = vmul.f32 %v7733_v8, %v7733_v8  ;;  %v6105_v49 = vadd.f32 %v6104_v7, %v6074_v6  ;;  %v7735_v47 = vadd.f32 %v5669_v13, %v2394_v12 }
 0x1f5   : > { %v6987_v15 = vpack.c.bf16 %v7734_v11, %v7732_v3  ;;  %v6078_v31 = vmul.f32 %v7734_v11, %v7734_v11 }
 0x1f6   : > { %v6106_v17 = vadd.f32 %v6105_v49, %v6075_v38  ;;  %v6982_v19 = vpack.c.bf16 %v7735_v47, %v7733_v8  ;;  %v6037_v20 = vadd.f32 %v7735_v47, %v6036_v14  ;;  %v6076_v21 = vmul.f32 %v7735_v47, %v7735_v47 }
 0x1f7   : > { %7051 = vst [vmem:[%s9255_s21 + $0x18] sm:$0xff] %v6987_v15  }
 0x1f8   : > { %7050 = vst [vmem:[%s9255_s21 + $0x10] sm:$0xff] %v6982_v19   ;;  %v6038_v23 = vadd.f32 %v7732_v3, %v6037_v20  ;;  %v6107_v24 = vadd.f32 %v6106_v17, %v6076_v21  ;;  %v7690_v25 = vpop.f32.mrb[8].mxu0 }
 0x1f9   : > { %v7736_v26 = vadd.f32 %v7690_v25, %v7450_v41  ;;  %v5682_v28 = vpop.f32.mrb[9].mxu0 }
 0x1fa   : > { %v6108_v32 = vadd.f32 %v6107_v24, %v6077_v22  ;;  %v7737_v34 = vadd.f32 %v5682_v28, %v2407_v44  ;;  %v6039_v35 = vadd.f32 %v7734_v11, %v6038_v23  ;;  %v7691_v39 = vpop.f32.mrb[10].mxu0 }
 0x1fb   : > { %v7738_v40 = vadd.f32 %v7691_v39, %v7451_v4  ;;  %v5685_v27 = vpop.f32.mrb[11].mxu0  ;;  %v6081_v60 = vmul.f32 %v7736_v26, %v7736_v26 }
 0x1fc   : > { %v6040_v37 = vadd.f32 %v7737_v34, %v6039_v35  ;;  %v6079_v46 = vmul.f32 %v7737_v34, %v7737_v34  ;;  %v6109_v52 = vadd.f32 %v6108_v32, %v6078_v31  ;;  %v7739_v42 = vadd.f32 %v5685_v27, %v2410_v45 }
 0x1fd   : > { %v6997_v43 = vpack.c.bf16 %v7738_v40, %v7736_v26  ;;  %v6082_v56 = vmul.f32 %v7738_v40, %v7738_v40 }
 0x1fe   : > { %v6110_v58 = vadd.f32 %v6109_v52, %v6079_v46  ;;  %v6992_v18 = vpack.c.bf16 %v7739_v42, %v7737_v34  ;;  %v6041_v12 = vadd.f32 %v7739_v42, %v6040_v37  ;;  %v6080_v53 = vmul.f32 %v7739_v42, %v7739_v42 }
 0x1ff   : > { %7053 = vst [vmem:[%s9255_s21 + $0x28] sm:$0xff] %v6997_v43  }
 0x200   : > { %7052 = vst [vmem:[%s9255_s21 + $0x20] sm:$0xff] %v6992_v18   ;;  %v6042_v44 = vadd.f32 %v7736_v26, %v6041_v12  ;;  %v6111_v55 = vadd.f32 %v6110_v58, %v6080_v53  ;;  %v7694_v29 = vpop.f32.mrb[12].mxu0 }
 0x201   : > { %v7740_v4 = vadd.f32 %v7694_v29, %v9243_v48  ;;  %v5698_v59 = vpop.f32.mrb[13].mxu0 }
 0x202   : > { %v7506_v41 = vpop.f32.mrb[16].mxu1  ;;  %v6112_v45 = vadd.f32 %v6111_v55, %v6081_v60  ;;  %v7741_v62 = vadd.f32 %v5698_v59, %v9245_v33  ;;  %v6043_v63 = vadd.f32 %v7738_v40, %v6042_v44  ;;  %v7695_v0 = vpop.f32.mrb[14].mxu0 }
 0x203   : > { %v3257_v54 = vpop.f32.mrb[17].mxu1  ;;  %v7742_v16 = vadd.f32 %v7695_v0, %v9247_v50  ;;  %v5701_v30 = vpop.f32.mrb[15].mxu0  ;;  %v6085_v9 = vmul.f32 %v7740_v4, %v7740_v4 }
 0x204   : > { %v7507_v57 = vpop.f32.mrb[18].mxu1  ;;  %v6044_v36 = vadd.f32 %v7741_v62, %v6043_v63  ;;  %v6083_v1 = vmul.f32 %v7741_v62, %v7741_v62  ;;  %v6113_v2 = vadd.f32 %v6112_v45, %v6082_v56  ;;  %v7743_v3 = vadd.f32 %v5701_v30, %v9249_v51 }
 0x205   : > { %v3260_v61 = vpop.f32.mrb[19].mxu1  ;;  %v7007_v5 = vpack.c.bf16 %v7742_v16, %v7740_v4  ;;  %v6086_v49 = vmul.f32 %v7742_v16, %v7742_v16 }
 0x206   : > { %v6114_v48 = vadd.f32 %v6113_v2, %v6083_v1  ;;  %v7002_v6 = vpack.c.bf16 %v7743_v3, %v7741_v62  ;;  %v6045_v7 = vadd.f32 %v7743_v3, %v6044_v36  ;;  %v6084_v8 = vmul.f32 %v7743_v3, %v7743_v3 }
 0x207   : > { %7055 = vst [vmem:[%s9255_s21 + $0x38] sm:$0xff] %v7007_v5  }
 0x208   : > { %7054 = vst [vmem:[%s9255_s21 + $0x30] sm:$0xff] %v7002_v6   ;;  %v6046_v33 = vadd.f32 %v7740_v4, %v6045_v7  ;;  %v6115_v10 = vadd.f32 %v6114_v48, %v6084_v8  ;;  %v7698_v11 = vpop.f32.mrb[16].mxu0 }
 0x209   : > { %v7744_v14 = vadd.f32 %v7698_v11, %v7506_v41  ;;  %v5714_v50 = vpop.f32.mrb[17].mxu0 }
 0x20a   : > { %v7510_v13 = vpop.f32.mrb[20].mxu1  ;;  %v6116_v47 = vadd.f32 %v6115_v10, %v6085_v9  ;;  %v7745_v15 = vadd.f32 %v5714_v50, %v3257_v54  ;;  %v6047_v51 = vadd.f32 %v7742_v16, %v6046_v33  ;;  %v7699_v17 = vpop.f32.mrb[18].mxu0 }
 0x20b   : > { %v3273_v38 = vpop.f32.mrb[21].mxu1  ;;  %v7746_v20 = vadd.f32 %v7699_v17, %v7507_v57  ;;  %v5717_v21 = vpop.f32.mrb[19].mxu0  ;;  %v6089_v39 = vmul.f32 %v7744_v14, %v7744_v14 }
 0x20c   : > { %v7511_v19 = vpop.f32.mrb[22].mxu1  ;;  %v6048_v23 = vadd.f32 %v7745_v15, %v6047_v51  ;;  %v6087_v24 = vmul.f32 %v7745_v15, %v7745_v15  ;;  %v6117_v25 = vadd.f32 %v6116_v47, %v6086_v49  ;;  %v7747_v26 = vadd.f32 %v5717_v21, %v3260_v61 }
 0x20d   : > { %v3276_v22 = vpop.f32.mrb[23].mxu1  ;;  %v7017_v28 = vpack.c.bf16 %v7746_v20, %v7744_v14  ;;  %v6090_v42 = vmul.f32 %v7746_v20, %v7746_v20 }
 0x20e   : > { %v6118_v31 = vadd.f32 %v6117_v25, %v6087_v24  ;;  %v7012_v32 = vpack.c.bf16 %v7747_v26, %v7745_v15  ;;  %v6049_v34 = vadd.f32 %v7747_v26, %v6048_v23  ;;  %v6088_v35 = vmul.f32 %v7747_v26, %v7747_v26 }
 0x20f   : > { %7057 = vst [vmem:[%s9255_s21 + $0x48] sm:$0xff] %v7017_v28  }
 0x210   : > { %7056 = vst [vmem:[%s9255_s21 + $0x40] sm:$0xff] %v7012_v32   ;;  %v6050_v40 = vadd.f32 %v7744_v14, %v6049_v34  ;;  %v6119_v27 = vadd.f32 %v6118_v31, %v6088_v35  ;;  %v7702_v37 = vpop.f32.mrb[20].mxu0 }
 0x211   : > { %v7748_v46 = vadd.f32 %v7702_v37, %v7510_v13  ;;  %v5730_v52 = vpop.f32.mrb[21].mxu0 }
 0x212   : > { %v6120_v43 = vadd.f32 %v6119_v27, %v6089_v39  ;;  %v7749_v58 = vadd.f32 %v5730_v52, %v3273_v38  ;;  %v6051_v18 = vadd.f32 %v7746_v20, %v6050_v40  ;;  %v7703_v12 = vpop.f32.mrb[22].mxu0  ;;  %v7514_v29 = vpop.f32.mrb[24].mxu1 }
 0x213   : > { %v7750_v53 = vadd.f32 %v7703_v12, %v7511_v19  ;;  %v5733_v41 = vpop.f32.mrb[23].mxu0  ;;  %v3289_v4 = vpop.f32.mrb[25].mxu1  ;;  %v6093_v0 = vmul.f32 %v7748_v46, %v7748_v46 }
 0x214   : > { %v6052_v54 = vadd.f32 %v7749_v58, %v6051_v18  ;;  %v6091_v60 = vmul.f32 %v7749_v58, %v7749_v58  ;;  %v6121_v44 = vadd.f32 %v6120_v43, %v6090_v42  ;;  %v7751_v55 = vadd.f32 %v5733_v41, %v3276_v22  ;;  %v7515_v62 = vpop.f32.mrb[26].mxu1 }
 0x215   : > { %v7027_v57 = vpack.c.bf16 %v7750_v53, %v7748_v46  ;;  %v3292_v63 = vpop.f32.mrb[27].mxu1  ;;  %v6094_v3 = vmul.f32 %v7750_v53, %v7750_v53 }
 0x216   : > { %v6122_v59 = vadd.f32 %v6121_v44, %v6091_v60  ;;  %v7022_v61 = vpack.c.bf16 %v7751_v55, %v7749_v58  ;;  %v6053_v56 = vadd.f32 %v7751_v55, %v6052_v54  ;;  %v6092_v45 = vmul.f32 %v7751_v55, %v7751_v55 }
 0x217   : > { %7059 = vst [vmem:[%s9255_s21 + $0x58] sm:$0xff] %v7027_v57  }
 0x218   : > { %7058 = vst [vmem:[%s9255_s21 + $0x50] sm:$0xff] %v7022_v61   ;;  %v6054_v16 = vadd.f32 %v7748_v46, %v6053_v56  ;;  %v6123_v30 = vadd.f32 %v6122_v59, %v6092_v45  ;;  %v7706_v36 = vpop.f32.mrb[24].mxu0 }
 0x219   : > { %v7752_v1 = vadd.f32 %v7706_v36, %v7514_v29  ;;  %v5746_v2 = vpop.f32.mrb[25].mxu0 }
 0x21a   : > { %v6124_v5 = vadd.f32 %v6123_v30, %v6093_v0  ;;  %v7753_v48 = vadd.f32 %v5746_v2, %v3289_v4  ;;  %v6055_v6 = vadd.f32 %v7750_v53, %v6054_v16  ;;  %v7707_v7 = vpop.f32.mrb[26].mxu0 }
 0x21b   : > { %v7754_v8 = vadd.f32 %v7707_v7, %v7515_v62  ;;  %v5749_v9 = vpop.f32.mrb[27].mxu0  ;;  %v6097_v15 = vmul.f32 %v7752_v1, %v7752_v1 }
 0x21c   : > { %v6056_v33 = vadd.f32 %v7753_v48, %v6055_v6  ;;  %v6095_v10 = vmul.f32 %v7753_v48, %v7753_v48  ;;  %v6125_v11 = vadd.f32 %v6124_v5, %v6094_v3  ;;  %v7755_v13 = vadd.f32 %v5749_v9, %v3292_v63  ;;  %v7518_v19 = vpop.f32.mrb[28].mxu1 }
 0x21d   : > { %v7037_v14 = vpack.c.bf16 %v7754_v8, %v7752_v1  ;;  %v3305_v22 = vpop.f32.mrb[29].mxu1  ;;  %v6098_v24 = vmul.f32 %v7754_v8, %v7754_v8 }
 0x21e   : > { %v6126_v50 = vadd.f32 %v6125_v11, %v6095_v10  ;;  %v7032_v38 = vpack.c.bf16 %v7755_v13, %v7753_v48  ;;  %v6057_v49 = vadd.f32 %v7755_v13, %v6056_v33  ;;  %v6096_v47 = vmul.f32 %v7755_v13, %v7755_v13  ;;  %v7519_v31 = vpop.f32.mrb[30].mxu1 }
 0x21f   : > { %7061 = vst [vmem:[%s9255_s21 + $0x68] sm:$0xff] %v7037_v14   ;;  %v3308_v35 = vpop.f32.mrb[31].mxu1 }
 0x220   : > { %7060 = vst [vmem:[%s9255_s21 + $0x60] sm:$0xff] %v7032_v38   ;;  %v6058_v51 = vadd.f32 %v7752_v1, %v6057_v49  ;;  %v6127_v17 = vadd.f32 %v6126_v50, %v6096_v47  ;;  %v7710_v20 = vpop.f32.mrb[28].mxu0 }
 0x221   : > { %v7756_v21 = vadd.f32 %v7710_v20, %v7518_v19  ;;  %v5762_v23 = vpop.f32.mrb[29].mxu0 }
 0x222   : > { %v6128_v25 = vadd.f32 %v6127_v17, %v6097_v15  ;;  %v7757_v26 = vadd.f32 %v5762_v23, %v3305_v22  ;;  %v6059_v28 = vadd.f32 %v7754_v8, %v6058_v51  ;;  %v7711_v32 = vpop.f32.mrb[30].mxu0 }
 0x223   : > { %v7758_v34 = vadd.f32 %v7711_v32, %v7519_v31  ;;  %v5765_v39 = vpop.f32.mrb[31].mxu0  ;;  %v6101_v12 = vmul.f32 %v7756_v21, %v7756_v21 }
 0x224   : > { %v6060_v40 = vadd.f32 %v7757_v26, %v6059_v28  ;;  %v6099_v27 = vmul.f32 %v7757_v26, %v7757_v26  ;;  %v6129_v37 = vadd.f32 %v6128_v25, %v6098_v24  ;;  %v7759_v46 = vadd.f32 %v5765_v39, %v3308_v35 }
 0x225   : > { %v7047_v52 = vpack.c.bf16 %v7758_v34, %v7756_v21  ;;  %v6102_v54 = vmul.f32 %v7758_v34, %v7758_v34 }
 0x226   : > { %v6130_v42 = vadd.f32 %v6129_v37, %v6099_v27  ;;  %v7042_v43 = vpack.c.bf16 %v7759_v46, %v7757_v26  ;;  %v6061_v58 = vadd.f32 %v7759_v46, %v6060_v40  ;;  %v6100_v18 = vmul.f32 %v7759_v46, %v7759_v46 }
 0x227   : > { %7063 = vst [vmem:[%s9255_s21 + $0x78] sm:$0xff] %v7047_v52  }
 0x228   : > { %7062 = vst [vmem:[%s9255_s21 + $0x70] sm:$0xff] %v7042_v43   ;;  %v6062_v53 = vadd.f32 %v7756_v21, %v6061_v58  ;;  %v6131_v41 = vadd.f32 %v6130_v42, %v6100_v18 }
 0x22a   : > { %v6063_v60 = vadd.f32 %v7758_v34, %v6062_v53  ;;  %v6132_v44 = vadd.f32 %v6131_v41, %v6101_v12 }
 0x22c   : > { %v6064_v55 = vrot.slane %v6063_v60, 4  ;;  %v6133_v29 = vadd.f32 %v6132_v44, %v6102_v54 }
 0x22e   : > { %v6065_v57 = vadd.f32 %v6064_v55, %v6063_v60  ;;  %v6134_v4 = vrot.slane %v6133_v29, 4 }
 0x230   : > { %v6066_v59 = vrot.slane %v6065_v57, 2  ;;  %v6135_v61 = vadd.f32 %v6134_v4, %v6133_v29 }
 0x232   : > { %v6067_v56 = vadd.f32 %v6066_v59, %v6065_v57  ;;  %v6136_v45 = vrot.slane %v6135_v61, 2 }
 0x234   : > { %v6068_v62 = vrot.slane %v6067_v56, 1  ;;  %v6137_v63 = vadd.f32 %v6136_v45, %v6135_v61 }
 0x236   : > { %v6069_v0 = vadd.f32 %v6068_v62, %v6067_v56  ;;  %v6138_v16 = vrot.slane %v6137_v63, 1 }
 0x238   : > { %6070 = vst [vmem:[%s211_s24] sm:$0x1] %v6069_v0  ;;  %v6139_v30 = vadd.f32 %v6138_v16, %v6137_v63 }
 0x23a   : > { %6140 = vst [vmem:[%s214_s27] sm:$0x1] %v6139_v30 }
 0x23b PF: > { %s15_s15 = sadd.s32 1, %s8127_s15  }
 0x23c   : > { %p12_p4 = scmp.ge.s32.totalorder %s15_s15, 4  }
 0x23e   :  { %14 = sbr.rel (!%p12_p4) target bundleno = 1 (0x1), region = 92 }

</bundles_post_ra>
